<compile_context>
chip_gen: v7x
topology: tpu7x:2x2x1
jax: 0.10.0
libtpu: 0.0.40
codegen_flags: <defaults>
</compile_context>

<pallas_src>
import jax
import jax.numpy as jnp
from jax.experimental import pallas as pl
from jax.experimental.pallas import tpu as pltpu

COLOR_CHANNELS = 3
IMAGE_HEIGHT = 32
IMAGE_WIDTH = 32
INPUT_SIZE = IMAGE_HEIGHT * IMAGE_WIDTH * COLOR_CHANNELS  # 3072
N_HIDDEN_UNITS = [512, 256, 128]
N_CLASSES = 10
PADDED_CLASSES = 128          # lane-dense logits; sliced to N_CLASSES in wrapper

H1, H2, H3 = N_HIDDEN_UNITS


def mlp_kernel(x_ref,
               w1_ref, b1_ref,
               w2_ref, b2_ref,
               w3_ref, b3_ref,
               w4_ref, b4_ref,
               o_ref):
    """Fused 4-layer MLP for one batch tile; all weights are VMEM-resident."""
    # f32 -> bf16 cast fused into the kernel (VPU work, hidden under MXU slack).
    x = x_ref[...].astype(jnp.bfloat16)

    h = jnp.dot(x, w1_ref[...], preferred_element_type=jnp.float32) + b1_ref[...]
    h = jnp.maximum(h, 0.0)

    h = jnp.dot(h.astype(jnp.bfloat16), w2_ref[...],
                preferred_element_type=jnp.float32) + b2_ref[...]
    h = jnp.maximum(h, 0.0)

    h = jnp.dot(h.astype(jnp.bfloat16), w3_ref[...],
                preferred_element_type=jnp.float32) + b3_ref[...]
    h = jnp.maximum(h, 0.0)

    # Dropout(p=0.25): identity in eval/inference mode (no mask, no scale).
    # TODO(synk): training-mode dropout would use pltpu.prng_seed / prng_random_bits.

    o_ref[...] = jnp.dot(h.astype(jnp.bfloat16), w4_ref[...],
                         preferred_element_type=jnp.float32) + b4_ref[...]


def _pick_tile_b(B):
    """Batch-tile size: one 16-aligned tile for B <= 256, else 256-row tiles.

    16-row granularity keeps bf16 activations packed (16,128) per vreg; 256-row
    tiles amortize the (VMEM-resident) weight stream and give an even tile
    count for 256 < B <= 512 so both v7x TensorCores get equal work.
    """
    if B <= 256:
        return max(16, ((B + 15) // 16) * 16)
    return 256


def mlp_forward(x_nchw, params):
    """x_nchw: (B, 3, 32, 32) float32.  Returns logits (B, N_CLASSES) float32."""
    (w1, b1), (w2, b2), (w3, b3), (w4, b4) = params
    B = x_nchw.shape[0]
    # Flatten exactly like torch's x.view(-1, input_size) (row-major NCHW).
    # Keep f32 here; the bf16 cast happens inside the kernel.
    x = x_nchw.reshape(B, INPUT_SIZE)

    tile_b = _pick_tile_b(B)
    b_pad = ((B + tile_b - 1) // tile_b) * tile_b
    if b_pad != B:
        x = jnp.pad(x, ((0, b_pad - B), (0, 0)))
    n_b = b_pad // tile_b

    matmul_macs = INPUT_SIZE * H1 + H1 * H2 + H2 * H3 + H3 * PADDED_CLASSES
    weight_bytes = (2 * matmul_macs                                   # bf16 weights
                    + 4 * (H1 + H2 + H3 + PADDED_CLASSES))            # f32 biases
    cost = pl.CostEstimate(
        flops=2 * b_pad * matmul_macs,
        transcendentals=0,
        bytes_accessed=(b_pad * INPUT_SIZE * 4          # f32 x read
                        + weight_bytes                  # weights read once
                        + b_pad * PADDED_CLASSES * 4),  # f32 logits write
    )

    grid_spec = pltpu.PrefetchScalarGridSpec(
        num_scalar_prefetch=0,
        grid=(n_b,),
        in_specs=[
            pl.BlockSpec((tile_b, INPUT_SIZE), lambda b: (b, 0)),        # x (f32)
            pl.BlockSpec((INPUT_SIZE, H1),     lambda b: (0, 0)),        # w1 (resident)
            pl.BlockSpec((1, H1),              lambda b: (0, 0)),        # b1
            pl.BlockSpec((H1, H2),             lambda b: (0, 0)),        # w2
            pl.BlockSpec((1, H2),              lambda b: (0, 0)),        # b2
            pl.BlockSpec((H2, H3),             lambda b: (0, 0)),        # w3
            pl.BlockSpec((1, H3),              lambda b: (0, 0)),        # b3
            pl.BlockSpec((H3, PADDED_CLASSES), lambda b: (0, 0)),        # w4 (padded)
            pl.BlockSpec((1, PADDED_CLASSES),  lambda b: (0, 0)),        # b4 (padded)
        ],
        out_specs=pl.BlockSpec((tile_b, PADDED_CLASSES), lambda b: (b, 0)),
    )

    logits = pl.pallas_call(
        mlp_kernel,
        out_shape=jax.ShapeDtypeStruct((b_pad, PADDED_CLASSES), jnp.float32),
        grid_spec=grid_spec,
        cost_estimate=cost,
        compiler_params=pltpu.CompilerParams(
            dimension_semantics=("parallel",)),
    )(x, w1, b1, w2, b2, w3, b3, w4, b4)

    return logits[:B, :N_CLASSES]


def mlp_reference(x_nchw, params):
    """Pure-JAX reference using the same bf16 weights / f32 accumulation."""
    (w1, b1), (w2, b2), (w3, b3), (w4, b4) = params
    x = x_nchw.reshape(x_nchw.shape[0], INPUT_SIZE).astype(jnp.bfloat16)
    h = jnp.maximum(jnp.dot(x, w1, preferred_element_type=jnp.float32) + b1, 0.0)
    h = jnp.maximum(jnp.dot(h.astype(jnp.bfloat16), w2,
                            preferred_element_type=jnp.float32) + b2, 0.0)
    h = jnp.maximum(jnp.dot(h.astype(jnp.bfloat16), w3,
                            preferred_element_type=jnp.float32) + b3, 0.0)
    out = jnp.dot(h.astype(jnp.bfloat16), w4,
                  preferred_element_type=jnp.float32) + b4
    return out[:, :N_CLASSES]


def init_params(key):
    """Mimics torch.nn.Linear default init (U[-1/sqrt(fan_in), 1/sqrt(fan_in)]).
    Weights stored (in_features, out_features) in bf16; biases (1, out) in f32.
    The last layer is zero-padded to 128 output lanes."""
    dims = [INPUT_SIZE] + N_HIDDEN_UNITS + [N_CLASSES]
    params = []
    keys = jax.random.split(key, len(dims) - 1)
    last = len(dims) - 2
    for idx, (k, fan_in, fan_out) in enumerate(zip(keys, dims[:-1], dims[1:])):
        kw, kb = jax.random.split(k)
        bound = 1.0 / (fan_in ** 0.5)
        w = jax.random.uniform(kw, (fan_in, fan_out), jnp.float32, -bound, bound)
        b = jax.random.uniform(kb, (1, fan_out), jnp.float32, -bound, bound)
        if idx == last:  # pad logits to lane-dense 128
            w = jnp.pad(w, ((0, 0), (0, PADDED_CLASSES - fan_out)))
            b = jnp.pad(b, ((0, 0), (0, PADDED_CLASSES - fan_out)))
        params.append((w.astype(jnp.bfloat16), b.astype(jnp.float32)))
    return params


if __name__ == "__main__":
    key = jax.random.PRNGKey(0)
    k_params, k_x = jax.random.split(key)

    params = init_params(k_params)
    # Small batch of NCHW images, consistent with the module's expected input
    # (channels/spatial are fixed by input_size = 3*32*32).
    B = 4
    x = jax.random.normal(k_x, (B, COLOR_CHANNELS, IMAGE_HEIGHT, IMAGE_WIDTH),
                          dtype=jnp.float32)

    fwd = jax.jit(lambda inp: mlp_forward(inp, params))
    out = jax.block_until_ready(fwd(x))
    assert out.shape == (B, N_CLASSES), out.shape
    assert out.dtype == jnp.float32, out.dtype

    ref = jax.block_until_ready(mlp_reference(x, params))
    assert jnp.allclose(out, ref, atol=5e-2, rtol=5e-2), \
        float(jnp.max(jnp.abs(out - ref)))

    print("KERNEL_OK")
</pallas_src>

<mosaic_0001>
module attributes {stable_mosaic.version = 11 : i64} {
  func.func @mlp_kernel(%arg0: i32, %arg1: memref<16x3072xf32, #tpu.memory_space<vmem>>, %arg2: memref<3072x512xbf16, #tpu.memory_space<vmem>>, %arg3: memref<1x512xf32, #tpu.memory_space<vmem>>, %arg4: memref<512x256xbf16, #tpu.memory_space<vmem>>, %arg5: memref<1x256xf32, #tpu.memory_space<vmem>>, %arg6: memref<256x128xbf16, #tpu.memory_space<vmem>>, %arg7: memref<1x128xf32, #tpu.memory_space<vmem>>, %arg8: memref<128x128xbf16, #tpu.memory_space<vmem>>, %arg9: memref<1x128xf32, #tpu.memory_space<vmem>>, %arg10: memref<16x128xf32, #tpu.memory_space<vmem>>) attributes {dimension_semantics = [#tpu.dimension_semantics<parallel>], iteration_bounds = array<i64: 1>, scalar_prefetch = 0 : i64, scratch_operands = 0 : i64, tpu.core_type = #tpu.core_type<tc>, window_params = [{transform_indices = @transform_0, window_bounds = array<i64: 16, 3072>}, {pipeline_mode = #tpu.pipeline_mode<synchronous>, transform_indices = @transform_1, window_bounds = array<i64: 3072, 512>}, {pipeline_mode = #tpu.pipeline_mode<synchronous>, transform_indices = @transform_2, window_bounds = array<i64: 1, 512>}, {pipeline_mode = #tpu.pipeline_mode<synchronous>, transform_indices = @transform_3, window_bounds = array<i64: 512, 256>}, {pipeline_mode = #tpu.pipeline_mode<synchronous>, transform_indices = @transform_4, window_bounds = array<i64: 1, 256>}, {pipeline_mode = #tpu.pipeline_mode<synchronous>, transform_indices = @transform_5, window_bounds = array<i64: 256, 128>}, {pipeline_mode = #tpu.pipeline_mode<synchronous>, transform_indices = @transform_6, window_bounds = array<i64: 1, 128>}, {pipeline_mode = #tpu.pipeline_mode<synchronous>, transform_indices = @transform_7, window_bounds = array<i64: 128, 128>}, {pipeline_mode = #tpu.pipeline_mode<synchronous>, transform_indices = @transform_8, window_bounds = array<i64: 1, 128>}, {transform_indices = @transform_9, window_bounds = array<i64: 16, 128>}]} {
    %c0 = arith.constant 0 : index
    %c0_0 = arith.constant 0 : index
    %0 = vector.load %arg1[%c0, %c0_0] : memref<16x3072xf32, #tpu.memory_space<vmem>>, vector<16x3072xf32>
    %1 = arith.truncf %0 : vector<16x3072xf32> to vector<16x3072xbf16>
    %c0_1 = arith.constant 0 : index
    %c0_2 = arith.constant 0 : index
    %2 = vector.load %arg2[%c0_1, %c0_2] : memref<3072x512xbf16, #tpu.memory_space<vmem>>, vector<3072x512xbf16>
    %cst = arith.constant dense<0.000000e+00> : vector<16x512xf32>
    %3 = tpu.matmul %1, %2, %cst {dimension_numbers = #tpu.dot_dimension_numbers<[1], [0], [0], [1], [0, 0, 1, 1], [], []>} : vector<16x3072xbf16>, vector<3072x512xbf16>, vector<16x512xf32> -> vector<16x512xf32>
    %c0_3 = arith.constant 0 : index
    %c0_4 = arith.constant 0 : index
    %4 = vector.load %arg3[%c0_3, %c0_4] : memref<1x512xf32, #tpu.memory_space<vmem>>, vector<1x512xf32>
    %5 = vector.broadcast %4 : vector<1x512xf32> to vector<16x512xf32>
    %6 = arith.addf %3, %5 : vector<16x512xf32>
    %cst_5 = arith.constant 0.000000e+00 : f32
    %7 = vector.broadcast %cst_5 : f32 to vector<16x512xf32>
    %8 = arith.maximumf %6, %7 : vector<16x512xf32>
    %9 = arith.truncf %8 : vector<16x512xf32> to vector<16x512xbf16>
    %c0_6 = arith.constant 0 : index
    %c0_7 = arith.constant 0 : index
    %10 = vector.load %arg4[%c0_6, %c0_7] : memref<512x256xbf16, #tpu.memory_space<vmem>>, vector<512x256xbf16>
    %cst_8 = arith.constant dense<0.000000e+00> : vector<16x256xf32>
    %11 = tpu.matmul %9, %10, %cst_8 {dimension_numbers = #tpu.dot_dimension_numbers<[1], [0], [0], [1], [0, 0, 1, 1], [], []>} : vector<16x512xbf16>, vector<512x256xbf16>, vector<16x256xf32> -> vector<16x256xf32>
    %c0_9 = arith.constant 0 : index
    %c0_10 = arith.constant 0 : index
    %12 = vector.load %arg5[%c0_9, %c0_10] : memref<1x256xf32, #tpu.memory_space<vmem>>, vector<1x256xf32>
    %13 = vector.broadcast %12 : vector<1x256xf32> to vector<16x256xf32>
    %14 = arith.addf %11, %13 : vector<16x256xf32>
    %cst_11 = arith.constant 0.000000e+00 : f32
    %15 = vector.broadcast %cst_11 : f32 to vector<16x256xf32>
    %16 = arith.maximumf %14, %15 : vector<16x256xf32>
    %17 = arith.truncf %16 : vector<16x256xf32> to vector<16x256xbf16>
    %c0_12 = arith.constant 0 : index
    %c0_13 = arith.constant 0 : index
    %18 = vector.load %arg6[%c0_12, %c0_13] : memref<256x128xbf16, #tpu.memory_space<vmem>>, vector<256x128xbf16>
    %cst_14 = arith.constant dense<0.000000e+00> : vector<16x128xf32>
    %19 = tpu.matmul %17, %18, %cst_14 {dimension_numbers = #tpu.dot_dimension_numbers<[1], [0], [0], [1], [0, 0, 1, 1], [], []>} : vector<16x256xbf16>, vector<256x128xbf16>, vector<16x128xf32> -> vector<16x128xf32>
    %c0_15 = arith.constant 0 : index
    %c0_16 = arith.constant 0 : index
    %20 = vector.load %arg7[%c0_15, %c0_16] : memref<1x128xf32, #tpu.memory_space<vmem>>, vector<1x128xf32>
    %21 = vector.broadcast %20 : vector<1x128xf32> to vector<16x128xf32>
    %22 = arith.addf %19, %21 : vector<16x128xf32>
    %cst_17 = arith.constant 0.000000e+00 : f32
    %23 = vector.broadcast %cst_17 : f32 to vector<16x128xf32>
    %24 = arith.maximumf %22, %23 : vector<16x128xf32>
    %25 = arith.truncf %24 : vector<16x128xf32> to vector<16x128xbf16>
    %c0_18 = arith.constant 0 : index
    %c0_19 = arith.constant 0 : index
    %26 = vector.load %arg8[%c0_18, %c0_19] : memref<128x128xbf16, #tpu.memory_space<vmem>>, vector<128x128xbf16>
    %cst_20 = arith.constant dense<0.000000e+00> : vector<16x128xf32>
    %27 = tpu.matmul %25, %26, %cst_20 {dimension_numbers = #tpu.dot_dimension_numbers<[1], [0], [0], [1], [0, 0, 1, 1], [], []>} : vector<16x128xbf16>, vector<128x128xbf16>, vector<16x128xf32> -> vector<16x128xf32>
    %c0_21 = arith.constant 0 : index
    %c0_22 = arith.constant 0 : index
    %28 = vector.load %arg9[%c0_21, %c0_22] : memref<1x128xf32, #tpu.memory_space<vmem>>, vector<1x128xf32>
    %29 = vector.broadcast %28 : vector<1x128xf32> to vector<16x128xf32>
    %30 = arith.addf %27, %29 : vector<16x128xf32>
    %c0_23 = arith.constant 0 : index
    %c0_24 = arith.constant 0 : index
    %31 = vector.load %arg10[%c0_23, %c0_24] : memref<16x128xf32, #tpu.memory_space<vmem>>, vector<16x128xf32>
    tpu.vector_store %arg10[%c0_23, %c0_24], %30 {strides = array<i32>} : memref<16x128xf32, #tpu.memory_space<vmem>>, vector<16x128xf32>,
    return
  }
  func.func @transform_0(%arg0: i32) -> (i32, i32) {
    %c0_i32 = arith.constant 0 : i32
    %c0_i32_0 = arith.constant 0 : i32
    return %arg0, %c0_i32 : i32, i32
  }
  func.func @transform_1(%arg0: i32) -> (i32, i32) {
    %c0_i32 = arith.constant 0 : i32
    %c0_i32_0 = arith.constant 0 : i32
    %c0_i32_1 = arith.constant 0 : i32
    return %c0_i32, %c0_i32_0 : i32, i32
  }
  func.func @transform_2(%arg0: i32) -> (i32, i32) {
    %c0_i32 = arith.constant 0 : i32
    %c0_i32_0 = arith.constant 0 : i32
    %c0_i32_1 = arith.constant 0 : i32
    return %c0_i32, %c0_i32_0 : i32, i32
  }
  func.func @transform_3(%arg0: i32) -> (i32, i32) {
    %c0_i32 = arith.constant 0 : i32
    %c0_i32_0 = arith.constant 0 : i32
    %c0_i32_1 = arith.constant 0 : i32
    return %c0_i32, %c0_i32_0 : i32, i32
  }
  func.func @transform_4(%arg0: i32) -> (i32, i32) {
    %c0_i32 = arith.constant 0 : i32
    %c0_i32_0 = arith.constant 0 : i32
    %c0_i32_1 = arith.constant 0 : i32
    return %c0_i32, %c0_i32_0 : i32, i32
  }
  func.func @transform_5(%arg0: i32) -> (i32, i32) {
    %c0_i32 = arith.constant 0 : i32
    %c0_i32_0 = arith.constant 0 : i32
    %c0_i32_1 = arith.constant 0 : i32
    return %c0_i32, %c0_i32_0 : i32, i32
  }
  func.func @transform_6(%arg0: i32) -> (i32, i32) {
    %c0_i32 = arith.constant 0 : i32
    %c0_i32_0 = arith.constant 0 : i32
    %c0_i32_1 = arith.constant 0 : i32
    return %c0_i32, %c0_i32_0 : i32, i32
  }
  func.func @transform_7(%arg0: i32) -> (i32, i32) {
    %c0_i32 = arith.constant 0 : i32
    %c0_i32_0 = arith.constant 0 : i32
    %c0_i32_1 = arith.constant 0 : i32
    return %c0_i32, %c0_i32_0 : i32, i32
  }
  func.func @transform_8(%arg0: i32) -> (i32, i32) {
    %c0_i32 = arith.constant 0 : i32
    %c0_i32_0 = arith.constant 0 : i32
    %c0_i32_1 = arith.constant 0 : i32
    return %c0_i32, %c0_i32_0 : i32, i32
  }
  func.func @transform_9(%arg0: i32) -> (i32, i32) {
    %c0_i32 = arith.constant 0 : i32
    %c0_i32_0 = arith.constant 0 : i32
    return %arg0, %c0_i32 : i32, i32
  }
}

</mosaic_0001>

<bundles_post_ra>
// kernel: _lambda_.1
= control target key start
LH: loop header
LB: loop body
LE: loop exit
PB: predicated region body
PF: predicated region fallthrough
CT: control target
= control target key end

     0   :  { %vm8852_vm0 = vmmov 0   ;;  %s11650_s1 = inlined_call_operand.vmem [shape: bf16[3072,512], index: 1, kind: input, shape index: {}]   ;;  %s11651_s0 = inlined_call_operand.vmem [shape: f32[16,3072], index: 0, kind: input, shape index: {}]   ;;  %s11652_s3 = inlined_call_operand.vmem [shape: bf16[512,256], index: 3, kind: input, shape index: {}]   ;;  %s11653_s5 = inlined_call_operand.vmem [shape: bf16[256,128], index: 5, kind: input, shape index: {}]   ;;  %s11654_s2 = inlined_call_operand.vmem [shape: f32[1,512], index: 2, kind: input, shape index: {}]   ;;  %s11655_s7 = inlined_call_operand.vmem [shape: bf16[128,128], index: 7, kind: input, shape index: {}]   ;;  %s11656_s4 = inlined_call_operand.vmem [shape: f32[1,256], index: 4, kind: input, shape index: {}]   ;;  %s11657_s6 = inlined_call_operand.vmem [shape: f32[1,128], index: 6, kind: input, shape index: {}]   ;;  %s11658_s8 = inlined_call_operand.vmem [shape: f32[1,128], index: 8, kind: input, shape index: {}]   ;;  %s11659_s9 = inlined_call_operand.vmem [shape: f32[16,128], index: 9, kind: output, shape index: {}]  }
   0x1   :  { %v7579_v0 = vld [vmem:[%s11650_s1 + $0x4] ss:$16 sps:$4 sm:$0xff]   ;;  %v7581_v1 = vld [vmem:[%s11650_s1 + $0xc] ss:$16 sps:$4 sm:$0xff]   ;;  %v7583_v2 = vld [vmem:[%s11650_s1] ss:$16 sps:$4 sm:$0xff]  }
   0x2   :  { %4735 = vmatprep.subr.bf16.mxu0 %v7579_v0  ;;  %v7584_v3 = vld [vmem:[%s11650_s1 + $0x8] ss:$16 sps:$4 sm:$0xff]   ;;  %5251 = vmatprep.subr.bf16.mxu1 %v7581_v1  ;;  %v7585_v4 = vld [vmem:[%s11650_s1 + $0x24] ss:$16 sps:$4 sm:$0xff]   ;;  %v7587_v5 = vld [vmem:[%s11650_s1 + $0x2c] ss:$16 sps:$4 sm:$0xff]  }
   0x3   :  { %4736 = vmatpush1.bf16.msra.mxu0 %v7583_v2  ;;  %5252 = vmatpush1.bf16.msra.mxu1 %v7584_v3  ;;  %v7589_v6 = vld [vmem:[%s11650_s1 + $0x20] ss:$16 sps:$4 sm:$0xff]   ;;  %v7590_v7 = vld [vmem:[%s11650_s1 + $0x28] ss:$16 sps:$4 sm:$0xff]   ;;  %v7591_v8 = vld [vmem:[%s11650_s1 + $0x44] ss:$16 sps:$4 sm:$0xff]  }
   0x4   :  { %4737 = vmatprep.subr.bf16.mxu0 %v7585_v4  ;;  %5253 = vmatprep.subr.bf16.mxu1 %v7587_v5  ;;  %v7593_v9 = vld [vmem:[%s11650_s1 + $0x4c] ss:$16 sps:$4 sm:$0xff]   ;;  %v7595_v10 = vld [vmem:[%s11650_s1 + $0x40] ss:$16 sps:$4 sm:$0xff]   ;;  %v7596_v11 = vld [vmem:[%s11650_s1 + $0x48] ss:$16 sps:$4 sm:$0xff]  }
   0x5   :  { %v7597_v12 = vld [vmem:[%s11650_s1 + $0x64] ss:$16 sps:$4 sm:$0xff]   ;;  %v7599_v13 = vld [vmem:[%s11650_s1 + $0x6c] ss:$16 sps:$4 sm:$0xff]   ;;  %v7601_v14 = vld [vmem:[%s11650_s1 + $0x60] ss:$16 sps:$4 sm:$0xff]  }
   0x6   :  { %v7602_v15 = vld [vmem:[%s11650_s1 + $0x68] ss:$16 sps:$4 sm:$0xff]   ;;  %v7603_v16 = vld [vmem:[%s11650_s1 + $0x84] ss:$16 sps:$4 sm:$0xff]   ;;  %v7605_v17 = vld [vmem:[%s11650_s1 + $0x8c] ss:$16 sps:$4 sm:$0xff]  }
   0x7   :  { %4738 = vmatpush1.bf16.msra.mxu0 %v7589_v6  ;;  %5254 = vmatpush1.bf16.msra.mxu1 %v7590_v7  ;;  %v7607_v18 = vld [vmem:[%s11650_s1 + $0x80] ss:$16 sps:$4 sm:$0xff]   ;;  %v7608_v19 = vld [vmem:[%s11650_s1 + $0x88] ss:$16 sps:$4 sm:$0xff]   ;;  %v7609_v20 = vld [vmem:[%s11650_s1 + $0xa4] ss:$16 sps:$4 sm:$0xff]  }
   0x8   :  { %4739 = vmatprep.subr.bf16.mxu0 %v7591_v8  ;;  %5255 = vmatprep.subr.bf16.mxu1 %v7593_v9  ;;  %v7611_v21 = vld [vmem:[%s11650_s1 + $0xac] ss:$16 sps:$4 sm:$0xff]   ;;  %v7613_v22 = vld [vmem:[%s11650_s1 + $0xa0] ss:$16 sps:$4 sm:$0xff]   ;;  %v7614_v23 = vld [vmem:[%s11650_s1 + $0xa8] ss:$16 sps:$4 sm:$0xff]  }
   0x9   :  { %v7615_v24 = vld [vmem:[%s11650_s1 + $0xc4] ss:$16 sps:$4 sm:$0xff]   ;;  %v7617_v25 = vld [vmem:[%s11650_s1 + $0xcc] ss:$16 sps:$4 sm:$0xff]   ;;  %v7619_v26 = vld [vmem:[%s11650_s1 + $0xc0] ss:$16 sps:$4 sm:$0xff]  }
   0xa   :  { %v7620_v27 = vld [vmem:[%s11650_s1 + $0xc8] ss:$16 sps:$4 sm:$0xff]   ;;  %v7621_v28 = vld [vmem:[%s11650_s1 + $0xe4] ss:$16 sps:$4 sm:$0xff]   ;;  %v7623_v29 = vld [vmem:[%s11650_s1 + $0xec] ss:$16 sps:$4 sm:$0xff]  }
   0xb   :  { %4740 = vmatpush1.bf16.msra.mxu0 %v7595_v10  ;;  %5256 = vmatpush1.bf16.msra.mxu1 %v7596_v11  ;;  %v7625_v30 = vld [vmem:[%s11650_s1 + $0xe0] ss:$16 sps:$4 sm:$0xff]   ;;  %v7626_v31 = vld [vmem:[%s11650_s1 + $0xe8] ss:$16 sps:$4 sm:$0xff]   ;;  %v7627_v32 = vld [vmem:[%s11650_s1 + $0x104] ss:$16 sps:$4 sm:$0xff]  }
   0xc   :  { %4741 = vmatprep.subr.bf16.mxu0 %v7597_v12  ;;  %5257 = vmatprep.subr.bf16.mxu1 %v7599_v13  ;;  %v7629_v33 = vld [vmem:[%s11650_s1 + $0x10c] ss:$16 sps:$4 sm:$0xff]   ;;  %v7631_v34 = vld [vmem:[%s11650_s1 + $0x100] ss:$16 sps:$4 sm:$0xff]   ;;  %v7632_v35 = vld [vmem:[%s11650_s1 + $0x108] ss:$16 sps:$4 sm:$0xff]  }
   0xd   :  { %v7633_v36 = vld [vmem:[%s11650_s1 + $0x124] ss:$16 sps:$4 sm:$0xff]   ;;  %v7635_v37 = vld [vmem:[%s11650_s1 + $0x12c] ss:$16 sps:$4 sm:$0xff]   ;;  %v7637_v38 = vld [vmem:[%s11650_s1 + $0x120] ss:$16 sps:$4 sm:$0xff]  }
   0xe   :  { %v7638_v39 = vld [vmem:[%s11650_s1 + $0x128] ss:$16 sps:$4 sm:$0xff]   ;;  %v7639_v40 = vld [vmem:[%s11650_s1 + $0x144] ss:$16 sps:$4 sm:$0xff]   ;;  %v7641_v41 = vld [vmem:[%s11650_s1 + $0x14c] ss:$16 sps:$4 sm:$0xff]  }
   0xf   :  { %4742 = vmatpush1.bf16.msra.mxu0 %v7601_v14  ;;  %5258 = vmatpush1.bf16.msra.mxu1 %v7602_v15  ;;  %v7643_v42 = vld [vmem:[%s11650_s1 + $0x140] ss:$16 sps:$4 sm:$0xff]   ;;  %v7644_v43 = vld [vmem:[%s11650_s1 + $0x148] ss:$16 sps:$4 sm:$0xff]   ;;  %v7645_v44 = vld [vmem:[%s11650_s1 + $0x164] ss:$16 sps:$4 sm:$0xff]  }
  0x10   :  { %4743 = vmatprep.subr.bf16.mxu0 %v7603_v16  ;;  %5259 = vmatprep.subr.bf16.mxu1 %v7605_v17  ;;  %v7647_v45 = vld [vmem:[%s11650_s1 + $0x16c] ss:$16 sps:$4 sm:$0xff]   ;;  %v7649_v48 = vld [vmem:[%s11650_s1 + $0x160] ss:$16 sps:$4 sm:$0xff]   ;;  %v7650_v49 = vld [vmem:[%s11650_s1 + $0x168] ss:$16 sps:$4 sm:$0xff]  }
  0x11   :  { %v34_v46 = vld [vmem:[%s11651_s0 + $0x8] sm:$0xff]  ;;  %v7651_v51 = vld [vmem:[%s11650_s1 + $0x184] ss:$16 sps:$4 sm:$0xff]   ;;  %v7655_v53 = vld [vmem:[%s11650_s1 + $0x180] ss:$16 sps:$4 sm:$0xff]  }
  0x12   :  { %v58_v47 = vld [vmem:[%s11651_s0 + $0xc8] sm:$0xff]  ;;  %v7657_v55 = vld [vmem:[%s11650_s1 + $0x1a4] ss:$16 sps:$4 sm:$0xff]   ;;  %v7661_v57 = vld [vmem:[%s11650_s1 + $0x1a0] ss:$16 sps:$4 sm:$0xff]  }
  0x13   :  { %4744 = vmatpush1.bf16.msra.mxu0 %v7607_v18  ;;  %5260 = vmatpush1.bf16.msra.mxu1 %v7608_v19  ;;  %v82_v50 = vpack.c.bf16 %v58_v47, %v34_v46  ;;  %v7653_v52 = vld [vmem:[%s11650_s1 + $0x18c] ss:$16 sps:$4 sm:$0xff]   ;;  %v7656_v54 = vld [vmem:[%s11650_s1 + $0x188] ss:$16 sps:$4 sm:$0xff]   ;;  %v7663_v59 = vld [vmem:[%s11650_s1 + $0x1c4] ss:$16 sps:$4 sm:$0xff]  }
  0x14   :  { %4745 = vmatprep.subr.bf16.mxu0 %v7609_v20  ;;  %5261 = vmatprep.subr.bf16.mxu1 %v7611_v21  ;;  %v7659_v56 = vld [vmem:[%s11650_s1 + $0x1ac] ss:$16 sps:$4 sm:$0xff]   ;;  %v7662_v58 = vld [vmem:[%s11650_s1 + $0x1a8] ss:$16 sps:$4 sm:$0xff]   ;;  %v7667_v61 = vld [vmem:[%s11650_s1 + $0x1c0] ss:$16 sps:$4 sm:$0xff]  }
  0x15   :  { %4767 = vmatprep.mubr.bf16.mxu0 %v82_v50  ;;  %5283 = vmatprep.mubr.bf16.mxu1 %v82_v50  ;;  %v7665_v60 = vld [vmem:[%s11650_s1 + $0x1cc] ss:$16 sps:$4 sm:$0xff]   ;;  %v7668_v62 = vld [vmem:[%s11650_s1 + $0x1c8] ss:$16 sps:$4 sm:$0xff]   ;;  %v7669_v63 = vld [vmem:[%s11650_s1 + $0x1e4] ss:$16 sps:$4 sm:$0xff]  }
  0x16   :  { %v7671_v0 = vld [vmem:[%s11650_s1 + $0x1ec] ss:$16 sps:$4 sm:$0xff]   ;;  %v7673_v1 = vld [vmem:[%s11650_s1 + $0x1e0] ss:$16 sps:$4 sm:$0xff]   ;;  %v7674_v2 = vld [vmem:[%s11650_s1 + $0x1e8] ss:$16 sps:$4 sm:$0xff]  }
  0x17   :  { %4746 = vmatpush1.bf16.msra.mxu0 %v7613_v22  ;;  %5262 = vmatpush1.bf16.msra.mxu1 %v7614_v23  ;;  %v7677_v3 = vld [vmem:[%s11650_s1 + $0x204] ss:$16 sps:$4 sm:$0xff]   ;;  %v7680_v6 = vld [vmem:[%s11650_s1 + $0x20c] ss:$16 sps:$4 sm:$0xff]   ;;  %v7675_v7 = vld [vmem:[%s11650_s1 + $0x200] ss:$16 sps:$4 sm:$0xff]  }
  0x18   :  { %4747 = vmatprep.subr.bf16.mxu0 %v7615_v24  ;;  %5263 = vmatprep.subr.bf16.mxu1 %v7617_v25  ;;  %v33_v4 = vld [vmem:[%s11651_s0] sm:$0xff]  ;;  %v7678_v8 = vld [vmem:[%s11650_s1 + $0x208] ss:$16 sps:$4 sm:$0xff]   ;;  %v7686_v11 = vld [vmem:[%s11650_s1 + $0x22c] ss:$16 sps:$4 sm:$0xff]  }
  0x19   :  { %v57_v5 = vld [vmem:[%s11651_s0 + $0xc0] sm:$0xff]  ;;  %v7684_v13 = vld [vmem:[%s11650_s1 + $0x228] ss:$16 sps:$4 sm:$0xff]   ;;  %v7692_v15 = vld [vmem:[%s11650_s1 + $0x24c] ss:$16 sps:$4 sm:$0xff]  }
  0x1a   :  { %v81_v9 = vpack.c.bf16 %v57_v5, %v33_v4  ;;  %v7683_v10 = vld [vmem:[%s11650_s1 + $0x224] ss:$16 sps:$4 sm:$0xff]   ;;  %v7681_v12 = vld [vmem:[%s11650_s1 + $0x220] ss:$16 sps:$4 sm:$0xff]   ;;  %v7690_v17 = vld [vmem:[%s11650_s1 + $0x248] ss:$16 sps:$4 sm:$0xff]  }
  0x1b   :  { %4748 = vmatpush1.bf16.msra.mxu0 %v7619_v26  ;;  %5264 = vmatpush1.bf16.msra.mxu1 %v7620_v27  ;;  %v7689_v14 = vld [vmem:[%s11650_s1 + $0x244] ss:$16 sps:$4 sm:$0xff]   ;;  %v7687_v16 = vld [vmem:[%s11650_s1 + $0x240] ss:$16 sps:$4 sm:$0xff]   ;;  %v7698_v19 = vld [vmem:[%s11650_s1 + $0x26c] ss:$16 sps:$4 sm:$0xff]  }
  0x1c   :  { %4749 = vmatprep.subr.bf16.mxu0 %v7621_v28  ;;  %5265 = vmatprep.subr.bf16.mxu1 %v7623_v29  ;;  %v7695_v18 = vld [vmem:[%s11650_s1 + $0x264] ss:$16 sps:$4 sm:$0xff]   ;;  %v7693_v20 = vld [vmem:[%s11650_s1 + $0x260] ss:$16 sps:$4 sm:$0xff]   ;;  %v7696_v21 = vld [vmem:[%s11650_s1 + $0x268] ss:$16 sps:$4 sm:$0xff]  }
  0x1d   :  { %v7701_v22 = vld [vmem:[%s11650_s1 + $0x284] ss:$16 sps:$4 sm:$0xff]   ;;  %v7704_v23 = vld [vmem:[%s11650_s1 + $0x28c] ss:$16 sps:$4 sm:$0xff]   ;;  %v7699_v24 = vld [vmem:[%s11650_s1 + $0x280] ss:$16 sps:$4 sm:$0xff]  }
  0x1e   :  { %v7702_v25 = vld [vmem:[%s11650_s1 + $0x288] ss:$16 sps:$4 sm:$0xff]   ;;  %v7707_v26 = vld [vmem:[%s11650_s1 + $0x2a4] ss:$16 sps:$4 sm:$0xff]   ;;  %v7710_v27 = vld [vmem:[%s11650_s1 + $0x2ac] ss:$16 sps:$4 sm:$0xff]  }
  0x1f   :  { %4750 = vmatpush1.bf16.msra.mxu0 %v7625_v30  ;;  %5266 = vmatpush1.bf16.msra.mxu1 %v7626_v31  ;;  %v7705_v28 = vld [vmem:[%s11650_s1 + $0x2a0] ss:$16 sps:$4 sm:$0xff]   ;;  %v7708_v29 = vld [vmem:[%s11650_s1 + $0x2a8] ss:$16 sps:$4 sm:$0xff]   ;;  %v7713_v30 = vld [vmem:[%s11650_s1 + $0x2c4] ss:$16 sps:$4 sm:$0xff]  }
  0x20   :  { %4751 = vmatprep.subr.bf16.mxu0 %v7627_v32  ;;  %5267 = vmatprep.subr.bf16.mxu1 %v7629_v33  ;;  %v7716_v31 = vld [vmem:[%s11650_s1 + $0x2cc] ss:$16 sps:$4 sm:$0xff]   ;;  %v7729_v47 = vld [vmem:[%s11650_s1 + $0x320] ss:$16 sps:$4 sm:$0xff]   ;;  %v7762_v4 = vld [vmem:[%s11650_s1 + $0x3c8] ss:$16 sps:$4 sm:$0xff]  }
  0x21   :  { %v36_v32 = vld [vmem:[%s11651_s0 + $0x18] sm:$0xff]  ;;  %v7767_v5 = vld [vmem:[%s11650_s1 + $0x3e4] ss:$16 sps:$4 sm:$0xff]  }
  0x22   :  { %v60_v33 = vld [vmem:[%s11651_s0 + $0xd8] sm:$0xff] }
  0x23   :  { %4752 = vmatpush1.bf16.msra.mxu0 %v7631_v34  ;;  %5268 = vmatpush1.bf16.msra.mxu1 %v7632_v35  ;;  %v7711_v34 = vld [vmem:[%s11650_s1 + $0x2c0] ss:$16 sps:$4 sm:$0xff]   ;;  %v7714_v35 = vld [vmem:[%s11650_s1 + $0x2c8] ss:$16 sps:$4 sm:$0xff]   ;;  %v7734_v46 = vld [vmem:[%s11650_s1 + $0x32c] ss:$16 sps:$4 sm:$0xff]  }
  0x24   :  { %4753 = vmatprep.subr.bf16.mxu0 %v7633_v36  ;;  %5269 = vmatprep.subr.bf16.mxu1 %v7635_v37  ;;  %v84_v36 = vpack.c.bf16 %v60_v33, %v36_v32  ;;  %v7719_v37 = vld [vmem:[%s11650_s1 + $0x2e4] ss:$16 sps:$4 sm:$0xff]   ;;  %v7740_v50 = vld [vmem:[%s11650_s1 + $0x34c] ss:$16 sps:$4 sm:$0xff]   ;;  %v7795_v33 = vld [vmem:[%s11650_s1 + $0x480] ss:$16 sps:$4 sm:$0xff]  }
  0x25   :  { %v7800_v32 = vld [vmem:[%s11650_s1 + $0x48c] ss:$16 sps:$4 sm:$0xff]  }
  0x27   :  { %4754 = vmatpush1.bf16.msra.mxu0 %v7637_v38  ;;  %5270 = vmatpush1.bf16.msra.mxu1 %v7638_v39  ;;  %v7722_v38 = vld [vmem:[%s11650_s1 + $0x2ec] ss:$16 sps:$4 sm:$0xff]   ;;  %v7717_v39 = vld [vmem:[%s11650_s1 + $0x2e0] ss:$16 sps:$4 sm:$0xff]  }
  0x28   :  { %4755 = vmatprep.subr.bf16.mxu0 %v7639_v40  ;;  %5271 = vmatprep.subr.bf16.mxu1 %v7641_v41  ;;  %v7720_v40 = vld [vmem:[%s11650_s1 + $0x2e8] ss:$16 sps:$4 sm:$0xff]   ;;  %v7725_v41 = vld [vmem:[%s11650_s1 + $0x304] ss:$16 sps:$4 sm:$0xff]  }
  0x2b   :  { %4756 = vmatpush1.bf16.msra.mxu0 %v7643_v42  ;;  %5272 = vmatpush1.bf16.msra.mxu1 %v7644_v43  ;;  %v7728_v42 = vld [vmem:[%s11650_s1 + $0x30c] ss:$16 sps:$4 sm:$0xff]   ;;  %v7723_v43 = vld [vmem:[%s11650_s1 + $0x300] ss:$16 sps:$4 sm:$0xff]  }
  0x2c   :  { %4757 = vmatprep.subr.bf16.mxu0 %v7645_v44  ;;  %5273 = vmatprep.subr.bf16.mxu1 %v7647_v45  ;;  %v7726_v44 = vld [vmem:[%s11650_s1 + $0x308] ss:$16 sps:$4 sm:$0xff]   ;;  %v7731_v45 = vld [vmem:[%s11650_s1 + $0x324] ss:$16 sps:$4 sm:$0xff]  }
  0x2f   :  { %4758 = vmatpush1.bf16.msra.mxu0 %v7649_v48  ;;  %5274 = vmatpush1.bf16.msra.mxu1 %v7650_v49  ;;  %v7732_v48 = vld [vmem:[%s11650_s1 + $0x328] ss:$16 sps:$4 sm:$0xff]   ;;  %v7737_v49 = vld [vmem:[%s11650_s1 + $0x344] ss:$16 sps:$4 sm:$0xff]  }
  0x30   :  { %4759 = vmatprep.subr.bf16.mxu0 %v7651_v51  ;;  %5275 = vmatprep.subr.bf16.mxu1 %v7653_v52  ;;  %v7735_v51 = vld [vmem:[%s11650_s1 + $0x340] ss:$16 sps:$4 sm:$0xff]   ;;  %v7738_v52 = vld [vmem:[%s11650_s1 + $0x348] ss:$16 sps:$4 sm:$0xff]  }
  0x33   :  { %4760 = vmatpush1.bf16.msra.mxu0 %v7655_v53  ;;  %5276 = vmatpush1.bf16.msra.mxu1 %v7656_v54  ;;  %v7743_v53 = vld [vmem:[%s11650_s1 + $0x364] ss:$16 sps:$4 sm:$0xff]   ;;  %v7746_v54 = vld [vmem:[%s11650_s1 + $0x36c] ss:$16 sps:$4 sm:$0xff]  }
  0x34   :  { %4761 = vmatprep.subr.bf16.mxu0 %v7657_v55  ;;  %5277 = vmatprep.subr.bf16.mxu1 %v7659_v56  ;;  %v7741_v55 = vld [vmem:[%s11650_s1 + $0x360] ss:$16 sps:$4 sm:$0xff]   ;;  %v7744_v56 = vld [vmem:[%s11650_s1 + $0x368] ss:$16 sps:$4 sm:$0xff]  }
  0x37   :  { %4762 = vmatpush1.bf16.msra.mxu0 %v7661_v57  ;;  %5278 = vmatpush1.bf16.msra.mxu1 %v7662_v58  ;;  %v7749_v57 = vld [vmem:[%s11650_s1 + $0x384] ss:$16 sps:$4 sm:$0xff]   ;;  %v7752_v58 = vld [vmem:[%s11650_s1 + $0x38c] ss:$16 sps:$4 sm:$0xff]  }
  0x38   :  { %4763 = vmatprep.subr.bf16.mxu0 %v7663_v59  ;;  %5279 = vmatprep.subr.bf16.mxu1 %v7665_v60  ;;  %v7747_v59 = vld [vmem:[%s11650_s1 + $0x380] ss:$16 sps:$4 sm:$0xff]   ;;  %v7750_v60 = vld [vmem:[%s11650_s1 + $0x388] ss:$16 sps:$4 sm:$0xff]  }
  0x3b   :  { %4764 = vmatpush1.bf16.msra.mxu0 %v7667_v61  ;;  %5280 = vmatpush1.bf16.msra.mxu1 %v7668_v62  ;;  %v7755_v61 = vld [vmem:[%s11650_s1 + $0x3a4] ss:$16 sps:$4 sm:$0xff]   ;;  %v7758_v62 = vld [vmem:[%s11650_s1 + $0x3ac] ss:$16 sps:$4 sm:$0xff]  }
  0x3c   :  { %4765 = vmatprep.subr.bf16.mxu0 %v7669_v63  ;;  %5281 = vmatprep.subr.bf16.mxu1 %v7671_v0  ;;  %v7753_v63 = vld [vmem:[%s11650_s1 + $0x3a0] ss:$16 sps:$4 sm:$0xff]   ;;  %v7756_v0 = vld [vmem:[%s11650_s1 + $0x3a8] ss:$16 sps:$4 sm:$0xff]  }
  0x3f   :  { %4766 = vmatpush1.bf16.msra.mxu0 %v7673_v1  ;;  %5282 = vmatpush1.bf16.msra.mxu1 %v7674_v2  ;;  %v7761_v1 = vld [vmem:[%s11650_s1 + $0x3c4] ss:$16 sps:$4 sm:$0xff]   ;;  %v7764_v2 = vld [vmem:[%s11650_s1 + $0x3cc] ss:$16 sps:$4 sm:$0xff]  }
  0x40   :  { %4778 = vmatprep.subr.bf16.mxu0 %v7677_v3  ;;  %5294 = vmatprep.subr.bf16.mxu1 %v7680_v6  ;;  %v7759_v3 = vld [vmem:[%s11650_s1 + $0x3c0] ss:$16 sps:$4 sm:$0xff]   ;;  %v7770_v6 = vld [vmem:[%s11650_s1 + $0x3ec] ss:$16 sps:$4 sm:$0xff]  }
  0x42   :  { %4768 = vmatmul.mubr.bf16.vlgmr.msra.gmra.mrb[0].mxu0 %v81_v9  ;;  %5284 = vmatmul.mubr.bf16.vlgmr.msra.gmra.mrb[0].mxu1 %v81_v9  ;;  %v7773_v9 = vld [vmem:[%s11650_s1 + $0x404] ss:$16 sps:$4 sm:$0xff]  }
  0x43   :  { %4779 = vmatpush1.bf16.msra.mxu0 %v7675_v7  ;;  %5295 = vmatpush1.bf16.msra.mxu1 %v7678_v8  ;;  %v7765_v7 = vld [vmem:[%s11650_s1 + $0x3e0] ss:$16 sps:$4 sm:$0xff]   ;;  %v7768_v8 = vld [vmem:[%s11650_s1 + $0x3e8] ss:$16 sps:$4 sm:$0xff]  }
  0x44   :  { %4780 = vmatprep.subr.bf16.mxu0 %v7683_v10  ;;  %5296 = vmatprep.subr.bf16.mxu1 %v7686_v11  ;;  %v35_v10 = vld [vmem:[%s11651_s0 + $0x10] sm:$0xff] }
  0x45   :  { %4810 = vmatprep.mubr.bf16.mxu0 %v84_v36  ;;  %5326 = vmatprep.mubr.bf16.mxu1 %v84_v36  ;;  %v59_v11 = vld [vmem:[%s11651_s0 + $0xd0] sm:$0xff]  ;;  %v7806_v36 = vld [vmem:[%s11650_s1 + $0x4ac] ss:$16 sps:$4 sm:$0xff]  }
  0x47   :  { %4781 = vmatpush1.bf16.msra.mxu0 %v7681_v12  ;;  %5297 = vmatpush1.bf16.msra.mxu1 %v7684_v13  ;;  %v7776_v12 = vld [vmem:[%s11650_s1 + $0x40c] ss:$16 sps:$4 sm:$0xff]   ;;  %v7771_v13 = vld [vmem:[%s11650_s1 + $0x400] ss:$16 sps:$4 sm:$0xff]  }
  0x48   :  { %4782 = vmatprep.subr.bf16.mxu0 %v7689_v14  ;;  %5298 = vmatprep.subr.bf16.mxu1 %v7692_v15  ;;  %v7774_v14 = vld [vmem:[%s11650_s1 + $0x408] ss:$16 sps:$4 sm:$0xff]   ;;  %v83_v15 = vpack.c.bf16 %v59_v11, %v35_v10  ;;  %v7863_v11 = vld [vmem:[%s11650_s1 + $0x5e4] ss:$16 sps:$4 sm:$0xff]  }
  0x49   :  { %v7858_v10 = vld [vmem:[%s11650_s1 + $0x5c8] ss:$16 sps:$4 sm:$0xff]  }
  0x4b   :  { %4783 = vmatpush1.bf16.msra.mxu0 %v7687_v16  ;;  %5299 = vmatpush1.bf16.msra.mxu1 %v7690_v17  ;;  %v7779_v16 = vld [vmem:[%s11650_s1 + $0x424] ss:$16 sps:$4 sm:$0xff]   ;;  %v7782_v17 = vld [vmem:[%s11650_s1 + $0x42c] ss:$16 sps:$4 sm:$0xff]  }
  0x4c   :  { %4784 = vmatprep.subr.bf16.mxu0 %v7695_v18  ;;  %5300 = vmatprep.subr.bf16.mxu1 %v7698_v19  ;;  %v38_v18 = vld [vmem:[%s11651_s0 + $0x28] sm:$0xff] }
  0x4d   :  { %v62_v19 = vld [vmem:[%s11651_s0 + $0xe8] sm:$0xff] }
  0x4f   :  { %4785 = vmatpush1.bf16.msra.mxu0 %v7693_v20  ;;  %5301 = vmatpush1.bf16.msra.mxu1 %v7696_v21  ;;  %v7777_v20 = vld [vmem:[%s11650_s1 + $0x420] ss:$16 sps:$4 sm:$0xff]   ;;  %v7780_v21 = vld [vmem:[%s11650_s1 + $0x428] ss:$16 sps:$4 sm:$0xff]  }
  0x50   :  { %4786 = vmatprep.subr.bf16.mxu0 %v7701_v22  ;;  %5302 = vmatprep.subr.bf16.mxu1 %v7704_v23  ;;  %v86_v22 = vpack.c.bf16 %v62_v19, %v38_v18  ;;  %v7785_v23 = vld [vmem:[%s11650_s1 + $0x444] ss:$16 sps:$4 sm:$0xff]   ;;  %v7872_v18 = vld [vmem:[%s11650_s1 + $0x60c] ss:$16 sps:$4 sm:$0xff]   ;;  %v7867_v19 = vld [vmem:[%s11650_s1 + $0x600] ss:$16 sps:$4 sm:$0xff]  }
  0x53   :  { %4787 = vmatpush1.bf16.msra.mxu0 %v7699_v24  ;;  %5303 = vmatpush1.bf16.msra.mxu1 %v7702_v25  ;;  %v7788_v24 = vld [vmem:[%s11650_s1 + $0x44c] ss:$16 sps:$4 sm:$0xff]   ;;  %v7783_v25 = vld [vmem:[%s11650_s1 + $0x440] ss:$16 sps:$4 sm:$0xff]  }
  0x54   :  { %4788 = vmatprep.subr.bf16.mxu0 %v7707_v26  ;;  %5304 = vmatprep.subr.bf16.mxu1 %v7710_v27  ;;  %v7786_v26 = vld [vmem:[%s11650_s1 + $0x448] ss:$16 sps:$4 sm:$0xff]   ;;  %v7791_v27 = vld [vmem:[%s11650_s1 + $0x464] ss:$16 sps:$4 sm:$0xff]  }
  0x57   :  { %4789 = vmatpush1.bf16.msra.mxu0 %v7705_v28  ;;  %5305 = vmatpush1.bf16.msra.mxu1 %v7708_v29  ;;  %v7794_v28 = vld [vmem:[%s11650_s1 + $0x46c] ss:$16 sps:$4 sm:$0xff]   ;;  %v7789_v29 = vld [vmem:[%s11650_s1 + $0x460] ss:$16 sps:$4 sm:$0xff]  }
  0x58   :  { %4790 = vmatprep.subr.bf16.mxu0 %v7713_v30  ;;  %5306 = vmatprep.subr.bf16.mxu1 %v7716_v31  ;;  %v7792_v30 = vld [vmem:[%s11650_s1 + $0x468] ss:$16 sps:$4 sm:$0xff]   ;;  %v7797_v31 = vld [vmem:[%s11650_s1 + $0x484] ss:$16 sps:$4 sm:$0xff]  }
  0x5b   :  { %4791 = vmatpush1.bf16.msra.mxu0 %v7711_v34  ;;  %5307 = vmatpush1.bf16.msra.mxu1 %v7714_v35  ;;  %v7798_v34 = vld [vmem:[%s11650_s1 + $0x488] ss:$16 sps:$4 sm:$0xff]   ;;  %v7803_v35 = vld [vmem:[%s11650_s1 + $0x4a4] ss:$16 sps:$4 sm:$0xff]  }
  0x5c   :  { %4792 = vmatprep.subr.bf16.mxu0 %v7719_v37  ;;  %5308 = vmatprep.subr.bf16.mxu1 %v7722_v38  ;;  %v7801_v37 = vld [vmem:[%s11650_s1 + $0x4a0] ss:$16 sps:$4 sm:$0xff]   ;;  %v7804_v38 = vld [vmem:[%s11650_s1 + $0x4a8] ss:$16 sps:$4 sm:$0xff]  }
  0x5f   :  { %4793 = vmatpush1.bf16.msra.mxu0 %v7717_v39  ;;  %5309 = vmatpush1.bf16.msra.mxu1 %v7720_v40  ;;  %v7809_v39 = vld [vmem:[%s11650_s1 + $0x4c4] ss:$16 sps:$4 sm:$0xff]   ;;  %v7812_v40 = vld [vmem:[%s11650_s1 + $0x4cc] ss:$16 sps:$4 sm:$0xff]  }
  0x60   :  { %4794 = vmatprep.subr.bf16.mxu0 %v7725_v41  ;;  %5310 = vmatprep.subr.bf16.mxu1 %v7728_v42  ;;  %v7807_v41 = vld [vmem:[%s11650_s1 + $0x4c0] ss:$16 sps:$4 sm:$0xff]   ;;  %v7810_v42 = vld [vmem:[%s11650_s1 + $0x4c8] ss:$16 sps:$4 sm:$0xff]  }
  0x63   :  { %4795 = vmatpush1.bf16.msra.mxu0 %v7723_v43  ;;  %5311 = vmatpush1.bf16.msra.mxu1 %v7726_v44  ;;  %v7815_v43 = vld [vmem:[%s11650_s1 + $0x4e4] ss:$16 sps:$4 sm:$0xff]   ;;  %v7818_v44 = vld [vmem:[%s11650_s1 + $0x4ec] ss:$16 sps:$4 sm:$0xff]  }
  0x64   :  { %4796 = vmatprep.subr.bf16.mxu0 %v7731_v45  ;;  %5312 = vmatprep.subr.bf16.mxu1 %v7734_v46  ;;  %v7813_v45 = vld [vmem:[%s11650_s1 + $0x4e0] ss:$16 sps:$4 sm:$0xff]   ;;  %v7816_v46 = vld [vmem:[%s11650_s1 + $0x4e8] ss:$16 sps:$4 sm:$0xff]  }
  0x67   :  { %4797 = vmatpush1.bf16.msra.mxu0 %v7729_v47  ;;  %5313 = vmatpush1.bf16.msra.mxu1 %v7732_v48  ;;  %v7821_v47 = vld [vmem:[%s11650_s1 + $0x504] ss:$16 sps:$4 sm:$0xff]   ;;  %v7824_v48 = vld [vmem:[%s11650_s1 + $0x50c] ss:$16 sps:$4 sm:$0xff]  }
  0x68   :  { %4798 = vmatprep.subr.bf16.mxu0 %v7737_v49  ;;  %5314 = vmatprep.subr.bf16.mxu1 %v7740_v50  ;;  %v7819_v49 = vld [vmem:[%s11650_s1 + $0x500] ss:$16 sps:$4 sm:$0xff]   ;;  %v7822_v50 = vld [vmem:[%s11650_s1 + $0x508] ss:$16 sps:$4 sm:$0xff]  }
  0x6b   :  { %4799 = vmatpush1.bf16.msra.mxu0 %v7735_v51  ;;  %5315 = vmatpush1.bf16.msra.mxu1 %v7738_v52  ;;  %v7827_v51 = vld [vmem:[%s11650_s1 + $0x524] ss:$16 sps:$4 sm:$0xff]   ;;  %v7830_v52 = vld [vmem:[%s11650_s1 + $0x52c] ss:$16 sps:$4 sm:$0xff]  }
  0x6c   :  { %4800 = vmatprep.subr.bf16.mxu0 %v7743_v53  ;;  %5316 = vmatprep.subr.bf16.mxu1 %v7746_v54  ;;  %v7825_v53 = vld [vmem:[%s11650_s1 + $0x520] ss:$16 sps:$4 sm:$0xff]   ;;  %v7828_v54 = vld [vmem:[%s11650_s1 + $0x528] ss:$16 sps:$4 sm:$0xff]  }
  0x6f   :  { %4801 = vmatpush1.bf16.msra.mxu0 %v7741_v55  ;;  %5317 = vmatpush1.bf16.msra.mxu1 %v7744_v56  ;;  %v7833_v55 = vld [vmem:[%s11650_s1 + $0x544] ss:$16 sps:$4 sm:$0xff]   ;;  %v7836_v56 = vld [vmem:[%s11650_s1 + $0x54c] ss:$16 sps:$4 sm:$0xff]  }
  0x70   :  { %4802 = vmatprep.subr.bf16.mxu0 %v7749_v57  ;;  %5318 = vmatprep.subr.bf16.mxu1 %v7752_v58  ;;  %v7831_v57 = vld [vmem:[%s11650_s1 + $0x540] ss:$16 sps:$4 sm:$0xff]   ;;  %v7834_v58 = vld [vmem:[%s11650_s1 + $0x548] ss:$16 sps:$4 sm:$0xff]  }
  0x73   :  { %4803 = vmatpush1.bf16.msra.mxu0 %v7747_v59  ;;  %5319 = vmatpush1.bf16.msra.mxu1 %v7750_v60  ;;  %v7839_v59 = vld [vmem:[%s11650_s1 + $0x564] ss:$16 sps:$4 sm:$0xff]   ;;  %v7842_v60 = vld [vmem:[%s11650_s1 + $0x56c] ss:$16 sps:$4 sm:$0xff]  }
  0x74   :  { %4804 = vmatprep.subr.bf16.mxu0 %v7755_v61  ;;  %5320 = vmatprep.subr.bf16.mxu1 %v7758_v62  ;;  %v7837_v61 = vld [vmem:[%s11650_s1 + $0x560] ss:$16 sps:$4 sm:$0xff]   ;;  %v7840_v62 = vld [vmem:[%s11650_s1 + $0x568] ss:$16 sps:$4 sm:$0xff]  }
  0x77   :  { %4805 = vmatpush1.bf16.msra.mxu0 %v7753_v63  ;;  %5321 = vmatpush1.bf16.msra.mxu1 %v7756_v0  ;;  %v7845_v63 = vld [vmem:[%s11650_s1 + $0x584] ss:$16 sps:$4 sm:$0xff]   ;;  %v7848_v0 = vld [vmem:[%s11650_s1 + $0x58c] ss:$16 sps:$4 sm:$0xff]  }
  0x78   :  { %4806 = vmatprep.subr.bf16.mxu0 %v7761_v1  ;;  %5322 = vmatprep.subr.bf16.mxu1 %v7764_v2  ;;  %v7843_v1 = vld [vmem:[%s11650_s1 + $0x580] ss:$16 sps:$4 sm:$0xff]   ;;  %v7846_v2 = vld [vmem:[%s11650_s1 + $0x588] ss:$16 sps:$4 sm:$0xff]  }
  0x7b   :  { %4807 = vmatpush1.bf16.msra.mxu0 %v7759_v3  ;;  %5323 = vmatpush1.bf16.msra.mxu1 %v7762_v4  ;;  %v7851_v3 = vld [vmem:[%s11650_s1 + $0x5a4] ss:$16 sps:$4 sm:$0xff]   ;;  %v7854_v4 = vld [vmem:[%s11650_s1 + $0x5ac] ss:$16 sps:$4 sm:$0xff]  }
  0x7c   :  { %4808 = vmatprep.subr.bf16.mxu0 %v7767_v5  ;;  %5324 = vmatprep.subr.bf16.mxu1 %v7770_v6  ;;  %v7849_v5 = vld [vmem:[%s11650_s1 + $0x5a0] ss:$16 sps:$4 sm:$0xff]   ;;  %v7852_v6 = vld [vmem:[%s11650_s1 + $0x5a8] ss:$16 sps:$4 sm:$0xff]  }
  0x7f   :  { %4809 = vmatpush1.bf16.msra.mxu0 %v7765_v7  ;;  %5325 = vmatpush1.bf16.msra.mxu1 %v7768_v8  ;;  %v7857_v7 = vld [vmem:[%s11650_s1 + $0x5c4] ss:$16 sps:$4 sm:$0xff]   ;;  %v7860_v8 = vld [vmem:[%s11650_s1 + $0x5cc] ss:$16 sps:$4 sm:$0xff]  }
  0x80   :  { %4821 = vmatprep.subr.bf16.mxu0 %v7773_v9  ;;  %5337 = vmatprep.subr.bf16.mxu1 %v7776_v12  ;;  %v7855_v9 = vld [vmem:[%s11650_s1 + $0x5c0] ss:$16 sps:$4 sm:$0xff]   ;;  %v7866_v12 = vld [vmem:[%s11650_s1 + $0x5ec] ss:$16 sps:$4 sm:$0xff]  }
  0x82   :  { %4811 = vmatmul.mubr.bf16.vlgmr.msra.gmra.mrb[0].mxu0 %v83_v15  ;;  %5327 = vmatmul.mubr.bf16.vlgmr.msra.gmra.mrb[0].mxu1 %v83_v15  ;;  %v7869_v15 = vld [vmem:[%s11650_s1 + $0x604] ss:$16 sps:$4 sm:$0xff]  }
  0x83   :  { %4822 = vmatpush1.bf16.msra.mxu0 %v7771_v13  ;;  %5338 = vmatpush1.bf16.msra.mxu1 %v7774_v14  ;;  %v7861_v13 = vld [vmem:[%s11650_s1 + $0x5e0] ss:$16 sps:$4 sm:$0xff]   ;;  %v7864_v14 = vld [vmem:[%s11650_s1 + $0x5e8] ss:$16 sps:$4 sm:$0xff]  }
  0x84   :  { %4823 = vmatprep.subr.bf16.mxu0 %v7779_v16  ;;  %5339 = vmatprep.subr.bf16.mxu1 %v7782_v17  ;;  %v37_v16 = vld [vmem:[%s11651_s0 + $0x20] sm:$0xff] }
  0x85   :  { %4853 = vmatprep.mubr.bf16.mxu0 %v86_v22  ;;  %5369 = vmatprep.mubr.bf16.mxu1 %v86_v22  ;;  %v61_v17 = vld [vmem:[%s11651_s0 + $0xe0] sm:$0xff]  ;;  %v40_v22 = vld [vmem:[%s11651_s0 + $0x38] sm:$0xff] }
  0x87   :  { %4824 = vmatpush1.bf16.msra.mxu0 %v7777_v20  ;;  %5340 = vmatpush1.bf16.msra.mxu1 %v7780_v21  ;;  %v7870_v20 = vld [vmem:[%s11650_s1 + $0x608] ss:$16 sps:$4 sm:$0xff]   ;;  %v85_v21 = vpack.c.bf16 %v61_v17, %v37_v16  ;;  %v7959_v17 = vld [vmem:[%s11650_s1 + $0x7e4] ss:$16 sps:$4 sm:$0xff]  }
  0x88   :  { %4825 = vmatprep.subr.bf16.mxu0 %v7785_v23  ;;  %5341 = vmatprep.subr.bf16.mxu1 %v7788_v24  ;;  %v64_v23 = vld [vmem:[%s11651_s0 + $0xf8] sm:$0xff]  ;;  %v7875_v24 = vld [vmem:[%s11650_s1 + $0x624] ss:$16 sps:$4 sm:$0xff]  }
  0x89   :  { %v7954_v16 = vld [vmem:[%s11650_s1 + $0x7c8] ss:$16 sps:$4 sm:$0xff]  }
  0x8b   :  { %4826 = vmatpush1.bf16.msra.mxu0 %v7783_v25  ;;  %5342 = vmatpush1.bf16.msra.mxu1 %v7786_v26  ;;  %v7878_v25 = vld [vmem:[%s11650_s1 + $0x62c] ss:$16 sps:$4 sm:$0xff]   ;;  %v88_v26 = vpack.c.bf16 %v64_v23, %v40_v22  ;;  %v39_v22 = vld [vmem:[%s11651_s0 + $0x30] sm:$0xff] }
  0x8c   :  { %4827 = vmatprep.subr.bf16.mxu0 %v7791_v27  ;;  %5343 = vmatprep.subr.bf16.mxu1 %v7794_v28  ;;  %v7873_v27 = vld [vmem:[%s11650_s1 + $0x620] ss:$16 sps:$4 sm:$0xff]   ;;  %v7876_v28 = vld [vmem:[%s11650_s1 + $0x628] ss:$16 sps:$4 sm:$0xff]  }
  0x8d   :  { %v63_v23 = vld [vmem:[%s11651_s0 + $0xf0] sm:$0xff] }
  0x8f   :  { %4828 = vmatpush1.bf16.msra.mxu0 %v7789_v29  ;;  %5344 = vmatpush1.bf16.msra.mxu1 %v7792_v30  ;;  %v7881_v29 = vld [vmem:[%s11650_s1 + $0x644] ss:$16 sps:$4 sm:$0xff]   ;;  %v7884_v30 = vld [vmem:[%s11650_s1 + $0x64c] ss:$16 sps:$4 sm:$0xff]  }
  0x90   :  { %4829 = vmatprep.subr.bf16.mxu0 %v7797_v31  ;;  %5345 = vmatprep.subr.bf16.mxu1 %v7800_v32  ;;  %v7879_v31 = vld [vmem:[%s11650_s1 + $0x640] ss:$16 sps:$4 sm:$0xff]   ;;  %v7882_v32 = vld [vmem:[%s11650_s1 + $0x648] ss:$16 sps:$4 sm:$0xff]  }
  0x93   :  { %4830 = vmatpush1.bf16.msra.mxu0 %v7795_v33  ;;  %5346 = vmatpush1.bf16.msra.mxu1 %v7798_v34  ;;  %v7887_v33 = vld [vmem:[%s11650_s1 + $0x664] ss:$16 sps:$4 sm:$0xff]   ;;  %v7890_v34 = vld [vmem:[%s11650_s1 + $0x66c] ss:$16 sps:$4 sm:$0xff]  }
  0x94   :  { %4831 = vmatprep.subr.bf16.mxu0 %v7803_v35  ;;  %5347 = vmatprep.subr.bf16.mxu1 %v7806_v36  ;;  %v7885_v35 = vld [vmem:[%s11650_s1 + $0x660] ss:$16 sps:$4 sm:$0xff]   ;;  %v7888_v36 = vld [vmem:[%s11650_s1 + $0x668] ss:$16 sps:$4 sm:$0xff]  }
  0x97   :  { %4832 = vmatpush1.bf16.msra.mxu0 %v7801_v37  ;;  %5348 = vmatpush1.bf16.msra.mxu1 %v7804_v38  ;;  %v7893_v37 = vld [vmem:[%s11650_s1 + $0x684] ss:$16 sps:$4 sm:$0xff]   ;;  %v7896_v38 = vld [vmem:[%s11650_s1 + $0x68c] ss:$16 sps:$4 sm:$0xff]  }
  0x98   :  { %4833 = vmatprep.subr.bf16.mxu0 %v7809_v39  ;;  %5349 = vmatprep.subr.bf16.mxu1 %v7812_v40  ;;  %v7891_v39 = vld [vmem:[%s11650_s1 + $0x680] ss:$16 sps:$4 sm:$0xff]   ;;  %v7894_v40 = vld [vmem:[%s11650_s1 + $0x688] ss:$16 sps:$4 sm:$0xff]  }
  0x9b   :  { %4834 = vmatpush1.bf16.msra.mxu0 %v7807_v41  ;;  %5350 = vmatpush1.bf16.msra.mxu1 %v7810_v42  ;;  %v7899_v41 = vld [vmem:[%s11650_s1 + $0x6a4] ss:$16 sps:$4 sm:$0xff]   ;;  %v7902_v42 = vld [vmem:[%s11650_s1 + $0x6ac] ss:$16 sps:$4 sm:$0xff]  }
  0x9c   :  { %4835 = vmatprep.subr.bf16.mxu0 %v7815_v43  ;;  %5351 = vmatprep.subr.bf16.mxu1 %v7818_v44  ;;  %v7897_v43 = vld [vmem:[%s11650_s1 + $0x6a0] ss:$16 sps:$4 sm:$0xff]   ;;  %v7900_v44 = vld [vmem:[%s11650_s1 + $0x6a8] ss:$16 sps:$4 sm:$0xff]  }
  0x9f   :  { %4836 = vmatpush1.bf16.msra.mxu0 %v7813_v45  ;;  %5352 = vmatpush1.bf16.msra.mxu1 %v7816_v46  ;;  %v7905_v45 = vld [vmem:[%s11650_s1 + $0x6c4] ss:$16 sps:$4 sm:$0xff]   ;;  %v7908_v46 = vld [vmem:[%s11650_s1 + $0x6cc] ss:$16 sps:$4 sm:$0xff]  }
  0xa0   :  { %4837 = vmatprep.subr.bf16.mxu0 %v7821_v47  ;;  %5353 = vmatprep.subr.bf16.mxu1 %v7824_v48  ;;  %v7903_v47 = vld [vmem:[%s11650_s1 + $0x6c0] ss:$16 sps:$4 sm:$0xff]   ;;  %v7906_v48 = vld [vmem:[%s11650_s1 + $0x6c8] ss:$16 sps:$4 sm:$0xff]  }
  0xa3   :  { %4838 = vmatpush1.bf16.msra.mxu0 %v7819_v49  ;;  %5354 = vmatpush1.bf16.msra.mxu1 %v7822_v50  ;;  %v7911_v49 = vld [vmem:[%s11650_s1 + $0x6e4] ss:$16 sps:$4 sm:$0xff]   ;;  %v7914_v50 = vld [vmem:[%s11650_s1 + $0x6ec] ss:$16 sps:$4 sm:$0xff]  }
  0xa4   :  { %4839 = vmatprep.subr.bf16.mxu0 %v7827_v51  ;;  %5355 = vmatprep.subr.bf16.mxu1 %v7830_v52  ;;  %v7909_v51 = vld [vmem:[%s11650_s1 + $0x6e0] ss:$16 sps:$4 sm:$0xff]   ;;  %v7912_v52 = vld [vmem:[%s11650_s1 + $0x6e8] ss:$16 sps:$4 sm:$0xff]  }
  0xa7   :  { %4840 = vmatpush1.bf16.msra.mxu0 %v7825_v53  ;;  %5356 = vmatpush1.bf16.msra.mxu1 %v7828_v54  ;;  %v7917_v53 = vld [vmem:[%s11650_s1 + $0x704] ss:$16 sps:$4 sm:$0xff]   ;;  %v7920_v54 = vld [vmem:[%s11650_s1 + $0x70c] ss:$16 sps:$4 sm:$0xff]  }
  0xa8   :  { %4841 = vmatprep.subr.bf16.mxu0 %v7833_v55  ;;  %5357 = vmatprep.subr.bf16.mxu1 %v7836_v56  ;;  %v7915_v55 = vld [vmem:[%s11650_s1 + $0x700] ss:$16 sps:$4 sm:$0xff]   ;;  %v7918_v56 = vld [vmem:[%s11650_s1 + $0x708] ss:$16 sps:$4 sm:$0xff]  }
  0xab   :  { %4842 = vmatpush1.bf16.msra.mxu0 %v7831_v57  ;;  %5358 = vmatpush1.bf16.msra.mxu1 %v7834_v58  ;;  %v7923_v57 = vld [vmem:[%s11650_s1 + $0x724] ss:$16 sps:$4 sm:$0xff]   ;;  %v7926_v58 = vld [vmem:[%s11650_s1 + $0x72c] ss:$16 sps:$4 sm:$0xff]  }
  0xac   :  { %4843 = vmatprep.subr.bf16.mxu0 %v7839_v59  ;;  %5359 = vmatprep.subr.bf16.mxu1 %v7842_v60  ;;  %v7921_v59 = vld [vmem:[%s11650_s1 + $0x720] ss:$16 sps:$4 sm:$0xff]   ;;  %v7924_v60 = vld [vmem:[%s11650_s1 + $0x728] ss:$16 sps:$4 sm:$0xff]  }
  0xaf   :  { %4844 = vmatpush1.bf16.msra.mxu0 %v7837_v61  ;;  %5360 = vmatpush1.bf16.msra.mxu1 %v7840_v62  ;;  %v7929_v61 = vld [vmem:[%s11650_s1 + $0x744] ss:$16 sps:$4 sm:$0xff]   ;;  %v7932_v62 = vld [vmem:[%s11650_s1 + $0x74c] ss:$16 sps:$4 sm:$0xff]  }
  0xb0   :  { %4845 = vmatprep.subr.bf16.mxu0 %v7845_v63  ;;  %5361 = vmatprep.subr.bf16.mxu1 %v7848_v0  ;;  %v7927_v63 = vld [vmem:[%s11650_s1 + $0x740] ss:$16 sps:$4 sm:$0xff]   ;;  %v7930_v0 = vld [vmem:[%s11650_s1 + $0x748] ss:$16 sps:$4 sm:$0xff]  }
  0xb3   :  { %4846 = vmatpush1.bf16.msra.mxu0 %v7843_v1  ;;  %5362 = vmatpush1.bf16.msra.mxu1 %v7846_v2  ;;  %v7935_v1 = vld [vmem:[%s11650_s1 + $0x764] ss:$16 sps:$4 sm:$0xff]   ;;  %v7938_v2 = vld [vmem:[%s11650_s1 + $0x76c] ss:$16 sps:$4 sm:$0xff]  }
  0xb4   :  { %4847 = vmatprep.subr.bf16.mxu0 %v7851_v3  ;;  %5363 = vmatprep.subr.bf16.mxu1 %v7854_v4  ;;  %v7933_v3 = vld [vmem:[%s11650_s1 + $0x760] ss:$16 sps:$4 sm:$0xff]   ;;  %v7936_v4 = vld [vmem:[%s11650_s1 + $0x768] ss:$16 sps:$4 sm:$0xff]  }
  0xb7   :  { %4848 = vmatpush1.bf16.msra.mxu0 %v7849_v5  ;;  %5364 = vmatpush1.bf16.msra.mxu1 %v7852_v6  ;;  %v7941_v5 = vld [vmem:[%s11650_s1 + $0x784] ss:$16 sps:$4 sm:$0xff]   ;;  %v7944_v6 = vld [vmem:[%s11650_s1 + $0x78c] ss:$16 sps:$4 sm:$0xff]  }
  0xb8   :  { %4849 = vmatprep.subr.bf16.mxu0 %v7857_v7  ;;  %5365 = vmatprep.subr.bf16.mxu1 %v7860_v8  ;;  %v7939_v7 = vld [vmem:[%s11650_s1 + $0x780] ss:$16 sps:$4 sm:$0xff]   ;;  %v7942_v8 = vld [vmem:[%s11650_s1 + $0x788] ss:$16 sps:$4 sm:$0xff]  }
  0xbb   :  { %4850 = vmatpush1.bf16.msra.mxu0 %v7855_v9  ;;  %5366 = vmatpush1.bf16.msra.mxu1 %v7858_v10  ;;  %v7947_v9 = vld [vmem:[%s11650_s1 + $0x7a4] ss:$16 sps:$4 sm:$0xff]   ;;  %v7950_v10 = vld [vmem:[%s11650_s1 + $0x7ac] ss:$16 sps:$4 sm:$0xff]  }
  0xbc   :  { %4851 = vmatprep.subr.bf16.mxu0 %v7863_v11  ;;  %5367 = vmatprep.subr.bf16.mxu1 %v7866_v12  ;;  %v7945_v11 = vld [vmem:[%s11650_s1 + $0x7a0] ss:$16 sps:$4 sm:$0xff]   ;;  %v7948_v12 = vld [vmem:[%s11650_s1 + $0x7a8] ss:$16 sps:$4 sm:$0xff]  }
  0xbf   :  { %4852 = vmatpush1.bf16.msra.mxu0 %v7861_v13  ;;  %5368 = vmatpush1.bf16.msra.mxu1 %v7864_v14  ;;  %v7953_v13 = vld [vmem:[%s11650_s1 + $0x7c4] ss:$16 sps:$4 sm:$0xff]   ;;  %v7956_v14 = vld [vmem:[%s11650_s1 + $0x7cc] ss:$16 sps:$4 sm:$0xff]  }
  0xc0   :  { %4864 = vmatprep.subr.bf16.mxu0 %v7869_v15  ;;  %5380 = vmatprep.subr.bf16.mxu1 %v7872_v18  ;;  %v7951_v15 = vld [vmem:[%s11650_s1 + $0x7c0] ss:$16 sps:$4 sm:$0xff]   ;;  %v7962_v18 = vld [vmem:[%s11650_s1 + $0x7ec] ss:$16 sps:$4 sm:$0xff]  }
  0xc2   :  { %4854 = vmatmul.mubr.bf16.vlgmr.msra.gmra.mrb[0].mxu0 %v85_v21  ;;  %5370 = vmatmul.mubr.bf16.vlgmr.msra.gmra.mrb[0].mxu1 %v85_v21  ;;  %v7965_v21 = vld [vmem:[%s11650_s1 + $0x804] ss:$16 sps:$4 sm:$0xff]  }
  0xc3   :  { %4865 = vmatpush1.bf16.msra.mxu0 %v7867_v19  ;;  %5381 = vmatpush1.bf16.msra.mxu1 %v7870_v20  ;;  %v7957_v19 = vld [vmem:[%s11650_s1 + $0x7e0] ss:$16 sps:$4 sm:$0xff]   ;;  %v7960_v20 = vld [vmem:[%s11650_s1 + $0x7e8] ss:$16 sps:$4 sm:$0xff]  }
  0xc4   :  { %4866 = vmatprep.subr.bf16.mxu0 %v7875_v24  ;;  %5382 = vmatprep.subr.bf16.mxu1 %v7878_v25  ;;  %v7968_v24 = vld [vmem:[%s11650_s1 + $0x80c] ss:$16 sps:$4 sm:$0xff]   ;;  %v7963_v25 = vld [vmem:[%s11650_s1 + $0x800] ss:$16 sps:$4 sm:$0xff]  }
  0xc5   :  { %4896 = vmatprep.mubr.bf16.mxu0 %v88_v26  ;;  %5412 = vmatprep.mubr.bf16.mxu1 %v88_v26  ;;  %v7966_v26 = vld [vmem:[%s11650_s1 + $0x808] ss:$16 sps:$4 sm:$0xff]  }
  0xc7   :  { %4867 = vmatpush1.bf16.msra.mxu0 %v7873_v27  ;;  %5383 = vmatpush1.bf16.msra.mxu1 %v7876_v28  ;;  %v87_v27 = vpack.c.bf16 %v63_v23, %v39_v22  ;;  %v42_v28 = vld [vmem:[%s11651_s0 + $0x48] sm:$0xff]  ;;  %v8055_v23 = vld [vmem:[%s11650_s1 + $0x9e4] ss:$16 sps:$4 sm:$0xff]  }
  0xc8   :  { %4868 = vmatprep.subr.bf16.mxu0 %v7881_v29  ;;  %5384 = vmatprep.subr.bf16.mxu1 %v7884_v30  ;;  %v66_v29 = vld [vmem:[%s11651_s0 + $0x108] sm:$0xff]  ;;  %v7971_v30 = vld [vmem:[%s11650_s1 + $0x824] ss:$16 sps:$4 sm:$0xff]  }
  0xc9   :  { %v8050_v22 = vld [vmem:[%s11650_s1 + $0x9c8] ss:$16 sps:$4 sm:$0xff]  }
  0xcb   :  { %4869 = vmatpush1.bf16.msra.mxu0 %v7879_v31  ;;  %5385 = vmatpush1.bf16.msra.mxu1 %v7882_v32  ;;  %v7974_v31 = vld [vmem:[%s11650_s1 + $0x82c] ss:$16 sps:$4 sm:$0xff]   ;;  %v90_v32 = vpack.c.bf16 %v66_v29, %v42_v28  ;;  %v41_v29 = vld [vmem:[%s11651_s0 + $0x40] sm:$0xff] }
  0xcc   :  { %4870 = vmatprep.subr.bf16.mxu0 %v7887_v33  ;;  %5386 = vmatprep.subr.bf16.mxu1 %v7890_v34  ;;  %v7969_v33 = vld [vmem:[%s11650_s1 + $0x820] ss:$16 sps:$4 sm:$0xff]   ;;  %v7972_v34 = vld [vmem:[%s11650_s1 + $0x828] ss:$16 sps:$4 sm:$0xff]   ;;  %v8064_v28 = vld [vmem:[%s11650_s1 + $0xa0c] ss:$16 sps:$4 sm:$0xff]  }
  0xcf   :  { %4871 = vmatpush1.bf16.msra.mxu0 %v7885_v35  ;;  %5387 = vmatpush1.bf16.msra.mxu1 %v7888_v36  ;;  %v7977_v35 = vld [vmem:[%s11650_s1 + $0x844] ss:$16 sps:$4 sm:$0xff]   ;;  %v7980_v36 = vld [vmem:[%s11650_s1 + $0x84c] ss:$16 sps:$4 sm:$0xff]  }
  0xd0   :  { %4872 = vmatprep.subr.bf16.mxu0 %v7893_v37  ;;  %5388 = vmatprep.subr.bf16.mxu1 %v7896_v38  ;;  %v7975_v37 = vld [vmem:[%s11650_s1 + $0x840] ss:$16 sps:$4 sm:$0xff]   ;;  %v7978_v38 = vld [vmem:[%s11650_s1 + $0x848] ss:$16 sps:$4 sm:$0xff]  }
  0xd3   :  { %4873 = vmatpush1.bf16.msra.mxu0 %v7891_v39  ;;  %5389 = vmatpush1.bf16.msra.mxu1 %v7894_v40  ;;  %v7983_v39 = vld [vmem:[%s11650_s1 + $0x864] ss:$16 sps:$4 sm:$0xff]   ;;  %v7986_v40 = vld [vmem:[%s11650_s1 + $0x86c] ss:$16 sps:$4 sm:$0xff]  }
  0xd4   :  { %4874 = vmatprep.subr.bf16.mxu0 %v7899_v41  ;;  %5390 = vmatprep.subr.bf16.mxu1 %v7902_v42  ;;  %v7981_v41 = vld [vmem:[%s11650_s1 + $0x860] ss:$16 sps:$4 sm:$0xff]   ;;  %v7984_v42 = vld [vmem:[%s11650_s1 + $0x868] ss:$16 sps:$4 sm:$0xff]  }
  0xd7   :  { %4875 = vmatpush1.bf16.msra.mxu0 %v7897_v43  ;;  %5391 = vmatpush1.bf16.msra.mxu1 %v7900_v44  ;;  %v7989_v43 = vld [vmem:[%s11650_s1 + $0x884] ss:$16 sps:$4 sm:$0xff]   ;;  %v7992_v44 = vld [vmem:[%s11650_s1 + $0x88c] ss:$16 sps:$4 sm:$0xff]  }
  0xd8   :  { %4876 = vmatprep.subr.bf16.mxu0 %v7905_v45  ;;  %5392 = vmatprep.subr.bf16.mxu1 %v7908_v46  ;;  %v7987_v45 = vld [vmem:[%s11650_s1 + $0x880] ss:$16 sps:$4 sm:$0xff]   ;;  %v7990_v46 = vld [vmem:[%s11650_s1 + $0x888] ss:$16 sps:$4 sm:$0xff]  }
  0xdb   :  { %4877 = vmatpush1.bf16.msra.mxu0 %v7903_v47  ;;  %5393 = vmatpush1.bf16.msra.mxu1 %v7906_v48  ;;  %v7995_v47 = vld [vmem:[%s11650_s1 + $0x8a4] ss:$16 sps:$4 sm:$0xff]   ;;  %v7998_v48 = vld [vmem:[%s11650_s1 + $0x8ac] ss:$16 sps:$4 sm:$0xff]  }
  0xdc   :  { %4878 = vmatprep.subr.bf16.mxu0 %v7911_v49  ;;  %5394 = vmatprep.subr.bf16.mxu1 %v7914_v50  ;;  %v7993_v49 = vld [vmem:[%s11650_s1 + $0x8a0] ss:$16 sps:$4 sm:$0xff]   ;;  %v7996_v50 = vld [vmem:[%s11650_s1 + $0x8a8] ss:$16 sps:$4 sm:$0xff]  }
  0xdf   :  { %4879 = vmatpush1.bf16.msra.mxu0 %v7909_v51  ;;  %5395 = vmatpush1.bf16.msra.mxu1 %v7912_v52  ;;  %v8001_v51 = vld [vmem:[%s11650_s1 + $0x8c4] ss:$16 sps:$4 sm:$0xff]   ;;  %v8004_v52 = vld [vmem:[%s11650_s1 + $0x8cc] ss:$16 sps:$4 sm:$0xff]  }
  0xe0   :  { %4880 = vmatprep.subr.bf16.mxu0 %v7917_v53  ;;  %5396 = vmatprep.subr.bf16.mxu1 %v7920_v54  ;;  %v7999_v53 = vld [vmem:[%s11650_s1 + $0x8c0] ss:$16 sps:$4 sm:$0xff]   ;;  %v8002_v54 = vld [vmem:[%s11650_s1 + $0x8c8] ss:$16 sps:$4 sm:$0xff]  }
  0xe3   :  { %4881 = vmatpush1.bf16.msra.mxu0 %v7915_v55  ;;  %5397 = vmatpush1.bf16.msra.mxu1 %v7918_v56  ;;  %v8007_v55 = vld [vmem:[%s11650_s1 + $0x8e4] ss:$16 sps:$4 sm:$0xff]   ;;  %v8010_v56 = vld [vmem:[%s11650_s1 + $0x8ec] ss:$16 sps:$4 sm:$0xff]  }
  0xe4   :  { %4882 = vmatprep.subr.bf16.mxu0 %v7923_v57  ;;  %5398 = vmatprep.subr.bf16.mxu1 %v7926_v58  ;;  %v8005_v57 = vld [vmem:[%s11650_s1 + $0x8e0] ss:$16 sps:$4 sm:$0xff]   ;;  %v8008_v58 = vld [vmem:[%s11650_s1 + $0x8e8] ss:$16 sps:$4 sm:$0xff]  }
  0xe7   :  { %4883 = vmatpush1.bf16.msra.mxu0 %v7921_v59  ;;  %5399 = vmatpush1.bf16.msra.mxu1 %v7924_v60  ;;  %v8013_v59 = vld [vmem:[%s11650_s1 + $0x904] ss:$16 sps:$4 sm:$0xff]   ;;  %v8016_v60 = vld [vmem:[%s11650_s1 + $0x90c] ss:$16 sps:$4 sm:$0xff]  }
  0xe8   :  { %4884 = vmatprep.subr.bf16.mxu0 %v7929_v61  ;;  %5400 = vmatprep.subr.bf16.mxu1 %v7932_v62  ;;  %v8011_v61 = vld [vmem:[%s11650_s1 + $0x900] ss:$16 sps:$4 sm:$0xff]   ;;  %v8014_v62 = vld [vmem:[%s11650_s1 + $0x908] ss:$16 sps:$4 sm:$0xff]  }
  0xeb   :  { %4885 = vmatpush1.bf16.msra.mxu0 %v7927_v63  ;;  %5401 = vmatpush1.bf16.msra.mxu1 %v7930_v0  ;;  %v8019_v63 = vld [vmem:[%s11650_s1 + $0x924] ss:$16 sps:$4 sm:$0xff]   ;;  %v8022_v0 = vld [vmem:[%s11650_s1 + $0x92c] ss:$16 sps:$4 sm:$0xff]  }
  0xec   :  { %4886 = vmatprep.subr.bf16.mxu0 %v7935_v1  ;;  %5402 = vmatprep.subr.bf16.mxu1 %v7938_v2  ;;  %v8017_v1 = vld [vmem:[%s11650_s1 + $0x920] ss:$16 sps:$4 sm:$0xff]   ;;  %v8020_v2 = vld [vmem:[%s11650_s1 + $0x928] ss:$16 sps:$4 sm:$0xff]  }
  0xef   :  { %4887 = vmatpush1.bf16.msra.mxu0 %v7933_v3  ;;  %5403 = vmatpush1.bf16.msra.mxu1 %v7936_v4  ;;  %v8025_v3 = vld [vmem:[%s11650_s1 + $0x944] ss:$16 sps:$4 sm:$0xff]   ;;  %v8028_v4 = vld [vmem:[%s11650_s1 + $0x94c] ss:$16 sps:$4 sm:$0xff]  }
  0xf0   :  { %4888 = vmatprep.subr.bf16.mxu0 %v7941_v5  ;;  %5404 = vmatprep.subr.bf16.mxu1 %v7944_v6  ;;  %v8023_v5 = vld [vmem:[%s11650_s1 + $0x940] ss:$16 sps:$4 sm:$0xff]   ;;  %v8026_v6 = vld [vmem:[%s11650_s1 + $0x948] ss:$16 sps:$4 sm:$0xff]  }
  0xf3   :  { %4889 = vmatpush1.bf16.msra.mxu0 %v7939_v7  ;;  %5405 = vmatpush1.bf16.msra.mxu1 %v7942_v8  ;;  %v8031_v7 = vld [vmem:[%s11650_s1 + $0x964] ss:$16 sps:$4 sm:$0xff]   ;;  %v8034_v8 = vld [vmem:[%s11650_s1 + $0x96c] ss:$16 sps:$4 sm:$0xff]  }
  0xf4   :  { %4890 = vmatprep.subr.bf16.mxu0 %v7947_v9  ;;  %5406 = vmatprep.subr.bf16.mxu1 %v7950_v10  ;;  %v8029_v9 = vld [vmem:[%s11650_s1 + $0x960] ss:$16 sps:$4 sm:$0xff]   ;;  %v8032_v10 = vld [vmem:[%s11650_s1 + $0x968] ss:$16 sps:$4 sm:$0xff]  }
  0xf7   :  { %4891 = vmatpush1.bf16.msra.mxu0 %v7945_v11  ;;  %5407 = vmatpush1.bf16.msra.mxu1 %v7948_v12  ;;  %v8037_v11 = vld [vmem:[%s11650_s1 + $0x984] ss:$16 sps:$4 sm:$0xff]   ;;  %v8040_v12 = vld [vmem:[%s11650_s1 + $0x98c] ss:$16 sps:$4 sm:$0xff]  }
  0xf8   :  { %4892 = vmatprep.subr.bf16.mxu0 %v7953_v13  ;;  %5408 = vmatprep.subr.bf16.mxu1 %v7956_v14  ;;  %v8035_v13 = vld [vmem:[%s11650_s1 + $0x980] ss:$16 sps:$4 sm:$0xff]   ;;  %v8038_v14 = vld [vmem:[%s11650_s1 + $0x988] ss:$16 sps:$4 sm:$0xff]  }
  0xfb   :  { %4893 = vmatpush1.bf16.msra.mxu0 %v7951_v15  ;;  %5409 = vmatpush1.bf16.msra.mxu1 %v7954_v16  ;;  %v8043_v15 = vld [vmem:[%s11650_s1 + $0x9a4] ss:$16 sps:$4 sm:$0xff]   ;;  %v8046_v16 = vld [vmem:[%s11650_s1 + $0x9ac] ss:$16 sps:$4 sm:$0xff]  }
  0xfc   :  { %4894 = vmatprep.subr.bf16.mxu0 %v7959_v17  ;;  %5410 = vmatprep.subr.bf16.mxu1 %v7962_v18  ;;  %v8041_v17 = vld [vmem:[%s11650_s1 + $0x9a0] ss:$16 sps:$4 sm:$0xff]   ;;  %v8044_v18 = vld [vmem:[%s11650_s1 + $0x9a8] ss:$16 sps:$4 sm:$0xff]  }
  0xff   :  { %4895 = vmatpush1.bf16.msra.mxu0 %v7957_v19  ;;  %5411 = vmatpush1.bf16.msra.mxu1 %v7960_v20  ;;  %v8049_v19 = vld [vmem:[%s11650_s1 + $0x9c4] ss:$16 sps:$4 sm:$0xff]   ;;  %v8052_v20 = vld [vmem:[%s11650_s1 + $0x9cc] ss:$16 sps:$4 sm:$0xff]  }
 0x100   :  { %4907 = vmatprep.subr.bf16.mxu0 %v7965_v21  ;;  %5423 = vmatprep.subr.bf16.mxu1 %v7968_v24  ;;  %v8047_v21 = vld [vmem:[%s11650_s1 + $0x9c0] ss:$16 sps:$4 sm:$0xff]   ;;  %v8058_v24 = vld [vmem:[%s11650_s1 + $0x9ec] ss:$16 sps:$4 sm:$0xff]  }
 0x102   :  { %4897 = vmatmul.mubr.bf16.vlgmr.msra.gmra.mrb[0].mxu0 %v87_v27  ;;  %5413 = vmatmul.mubr.bf16.vlgmr.msra.gmra.mrb[0].mxu1 %v87_v27  ;;  %v8061_v27 = vld [vmem:[%s11650_s1 + $0xa04] ss:$16 sps:$4 sm:$0xff]  }
 0x103   :  { %4908 = vmatpush1.bf16.msra.mxu0 %v7963_v25  ;;  %5424 = vmatpush1.bf16.msra.mxu1 %v7966_v26  ;;  %v8053_v25 = vld [vmem:[%s11650_s1 + $0x9e0] ss:$16 sps:$4 sm:$0xff]   ;;  %v8056_v26 = vld [vmem:[%s11650_s1 + $0x9e8] ss:$16 sps:$4 sm:$0xff]  }
 0x104   :  { %4909 = vmatprep.subr.bf16.mxu0 %v7971_v30  ;;  %5425 = vmatprep.subr.bf16.mxu1 %v7974_v31  ;;  %v65_v30 = vld [vmem:[%s11651_s0 + $0x100] sm:$0xff]  ;;  %v44_v31 = vld [vmem:[%s11651_s0 + $0x58] sm:$0xff] }
 0x105   :  { %4939 = vmatprep.mubr.bf16.mxu0 %v90_v32  ;;  %5455 = vmatprep.mubr.bf16.mxu1 %v90_v32  ;;  %v68_v32 = vld [vmem:[%s11651_s0 + $0x118] sm:$0xff] }
 0x107   :  { %4910 = vmatpush1.bf16.msra.mxu0 %v7969_v33  ;;  %5426 = vmatpush1.bf16.msra.mxu1 %v7972_v34  ;;  %v89_v33 = vpack.c.bf16 %v65_v30, %v41_v29  ;;  %v8059_v34 = vld [vmem:[%s11650_s1 + $0xa00] ss:$16 sps:$4 sm:$0xff]   ;;  %v8151_v29 = vld [vmem:[%s11650_s1 + $0xbe4] ss:$16 sps:$4 sm:$0xff]   ;;  %v8154_v30 = vld [vmem:[%s11650_s1 + $0xbec] ss:$16 sps:$4 sm:$0xff]  }
 0x108   :  { %4911 = vmatprep.subr.bf16.mxu0 %v7977_v35  ;;  %5427 = vmatprep.subr.bf16.mxu1 %v7980_v36  ;;  %v8062_v35 = vld [vmem:[%s11650_s1 + $0xa08] ss:$16 sps:$4 sm:$0xff]   ;;  %v8067_v36 = vld [vmem:[%s11650_s1 + $0xa24] ss:$16 sps:$4 sm:$0xff]  }
 0x10b   :  { %4912 = vmatpush1.bf16.msra.mxu0 %v7975_v37  ;;  %5428 = vmatpush1.bf16.msra.mxu1 %v7978_v38  ;;  %v8070_v37 = vld [vmem:[%s11650_s1 + $0xa2c] ss:$16 sps:$4 sm:$0xff]   ;;  %v92_v38 = vpack.c.bf16 %v68_v32, %v44_v31  ;;  %v8149_v31 = vld [vmem:[%s11650_s1 + $0xbe0] ss:$16 sps:$4 sm:$0xff]   ;;  %v8152_v32 = vld [vmem:[%s11650_s1 + $0xbe8] ss:$16 sps:$4 sm:$0xff]  }
 0x10c   :  { %4913 = vmatprep.subr.bf16.mxu0 %v7983_v39  ;;  %5429 = vmatprep.subr.bf16.mxu1 %v7986_v40  ;;  %v8065_v39 = vld [vmem:[%s11650_s1 + $0xa20] ss:$16 sps:$4 sm:$0xff]   ;;  %v8068_v40 = vld [vmem:[%s11650_s1 + $0xa28] ss:$16 sps:$4 sm:$0xff]  }
 0x10f   :  { %4914 = vmatpush1.bf16.msra.mxu0 %v7981_v41  ;;  %5430 = vmatpush1.bf16.msra.mxu1 %v7984_v42  ;;  %v8073_v41 = vld [vmem:[%s11650_s1 + $0xa44] ss:$16 sps:$4 sm:$0xff]   ;;  %v8076_v42 = vld [vmem:[%s11650_s1 + $0xa4c] ss:$16 sps:$4 sm:$0xff]  }
 0x110   :  { %4915 = vmatprep.subr.bf16.mxu0 %v7989_v43  ;;  %5431 = vmatprep.subr.bf16.mxu1 %v7992_v44  ;;  %v8071_v43 = vld [vmem:[%s11650_s1 + $0xa40] ss:$16 sps:$4 sm:$0xff]   ;;  %v8074_v44 = vld [vmem:[%s11650_s1 + $0xa48] ss:$16 sps:$4 sm:$0xff]  }
 0x113   :  { %4916 = vmatpush1.bf16.msra.mxu0 %v7987_v45  ;;  %5432 = vmatpush1.bf16.msra.mxu1 %v7990_v46  ;;  %v8079_v45 = vld [vmem:[%s11650_s1 + $0xa64] ss:$16 sps:$4 sm:$0xff]   ;;  %v8082_v46 = vld [vmem:[%s11650_s1 + $0xa6c] ss:$16 sps:$4 sm:$0xff]  }
 0x114   :  { %4917 = vmatprep.subr.bf16.mxu0 %v7995_v47  ;;  %5433 = vmatprep.subr.bf16.mxu1 %v7998_v48  ;;  %v8077_v47 = vld [vmem:[%s11650_s1 + $0xa60] ss:$16 sps:$4 sm:$0xff]   ;;  %v8080_v48 = vld [vmem:[%s11650_s1 + $0xa68] ss:$16 sps:$4 sm:$0xff]  }
 0x117   :  { %4918 = vmatpush1.bf16.msra.mxu0 %v7993_v49  ;;  %5434 = vmatpush1.bf16.msra.mxu1 %v7996_v50  ;;  %v8085_v49 = vld [vmem:[%s11650_s1 + $0xa84] ss:$16 sps:$4 sm:$0xff]   ;;  %v8088_v50 = vld [vmem:[%s11650_s1 + $0xa8c] ss:$16 sps:$4 sm:$0xff]  }
 0x118   :  { %4919 = vmatprep.subr.bf16.mxu0 %v8001_v51  ;;  %5435 = vmatprep.subr.bf16.mxu1 %v8004_v52  ;;  %v8083_v51 = vld [vmem:[%s11650_s1 + $0xa80] ss:$16 sps:$4 sm:$0xff]   ;;  %v8086_v52 = vld [vmem:[%s11650_s1 + $0xa88] ss:$16 sps:$4 sm:$0xff]  }
 0x11b   :  { %4920 = vmatpush1.bf16.msra.mxu0 %v7999_v53  ;;  %5436 = vmatpush1.bf16.msra.mxu1 %v8002_v54  ;;  %v8091_v53 = vld [vmem:[%s11650_s1 + $0xaa4] ss:$16 sps:$4 sm:$0xff]   ;;  %v8094_v54 = vld [vmem:[%s11650_s1 + $0xaac] ss:$16 sps:$4 sm:$0xff]  }
 0x11c   :  { %4921 = vmatprep.subr.bf16.mxu0 %v8007_v55  ;;  %5437 = vmatprep.subr.bf16.mxu1 %v8010_v56  ;;  %v8089_v55 = vld [vmem:[%s11650_s1 + $0xaa0] ss:$16 sps:$4 sm:$0xff]   ;;  %v8092_v56 = vld [vmem:[%s11650_s1 + $0xaa8] ss:$16 sps:$4 sm:$0xff]  }
 0x11f   :  { %4922 = vmatpush1.bf16.msra.mxu0 %v8005_v57  ;;  %5438 = vmatpush1.bf16.msra.mxu1 %v8008_v58  ;;  %v8097_v57 = vld [vmem:[%s11650_s1 + $0xac4] ss:$16 sps:$4 sm:$0xff]   ;;  %v8100_v58 = vld [vmem:[%s11650_s1 + $0xacc] ss:$16 sps:$4 sm:$0xff]  }
 0x120   :  { %4923 = vmatprep.subr.bf16.mxu0 %v8013_v59  ;;  %5439 = vmatprep.subr.bf16.mxu1 %v8016_v60  ;;  %v8095_v59 = vld [vmem:[%s11650_s1 + $0xac0] ss:$16 sps:$4 sm:$0xff]   ;;  %v8098_v60 = vld [vmem:[%s11650_s1 + $0xac8] ss:$16 sps:$4 sm:$0xff]  }
 0x123   :  { %4924 = vmatpush1.bf16.msra.mxu0 %v8011_v61  ;;  %5440 = vmatpush1.bf16.msra.mxu1 %v8014_v62  ;;  %v8103_v61 = vld [vmem:[%s11650_s1 + $0xae4] ss:$16 sps:$4 sm:$0xff]   ;;  %v8106_v62 = vld [vmem:[%s11650_s1 + $0xaec] ss:$16 sps:$4 sm:$0xff]  }
 0x124   :  { %4925 = vmatprep.subr.bf16.mxu0 %v8019_v63  ;;  %5441 = vmatprep.subr.bf16.mxu1 %v8022_v0  ;;  %v8101_v63 = vld [vmem:[%s11650_s1 + $0xae0] ss:$16 sps:$4 sm:$0xff]   ;;  %v8104_v0 = vld [vmem:[%s11650_s1 + $0xae8] ss:$16 sps:$4 sm:$0xff]  }
 0x127   :  { %4926 = vmatpush1.bf16.msra.mxu0 %v8017_v1  ;;  %5442 = vmatpush1.bf16.msra.mxu1 %v8020_v2  ;;  %v8109_v1 = vld [vmem:[%s11650_s1 + $0xb04] ss:$16 sps:$4 sm:$0xff]   ;;  %v8112_v2 = vld [vmem:[%s11650_s1 + $0xb0c] ss:$16 sps:$4 sm:$0xff]  }
 0x128   :  { %4927 = vmatprep.subr.bf16.mxu0 %v8025_v3  ;;  %5443 = vmatprep.subr.bf16.mxu1 %v8028_v4  ;;  %v8107_v3 = vld [vmem:[%s11650_s1 + $0xb00] ss:$16 sps:$4 sm:$0xff]   ;;  %v8110_v4 = vld [vmem:[%s11650_s1 + $0xb08] ss:$16 sps:$4 sm:$0xff]  }
 0x12b   :  { %4928 = vmatpush1.bf16.msra.mxu0 %v8023_v5  ;;  %5444 = vmatpush1.bf16.msra.mxu1 %v8026_v6  ;;  %v8115_v5 = vld [vmem:[%s11650_s1 + $0xb24] ss:$16 sps:$4 sm:$0xff]   ;;  %v8118_v6 = vld [vmem:[%s11650_s1 + $0xb2c] ss:$16 sps:$4 sm:$0xff]  }
 0x12c   :  { %4929 = vmatprep.subr.bf16.mxu0 %v8031_v7  ;;  %5445 = vmatprep.subr.bf16.mxu1 %v8034_v8  ;;  %v8113_v7 = vld [vmem:[%s11650_s1 + $0xb20] ss:$16 sps:$4 sm:$0xff]   ;;  %v8116_v8 = vld [vmem:[%s11650_s1 + $0xb28] ss:$16 sps:$4 sm:$0xff]  }
 0x12f   :  { %4930 = vmatpush1.bf16.msra.mxu0 %v8029_v9  ;;  %5446 = vmatpush1.bf16.msra.mxu1 %v8032_v10  ;;  %v8121_v9 = vld [vmem:[%s11650_s1 + $0xb44] ss:$16 sps:$4 sm:$0xff]   ;;  %v8124_v10 = vld [vmem:[%s11650_s1 + $0xb4c] ss:$16 sps:$4 sm:$0xff]  }
 0x130   :  { %4931 = vmatprep.subr.bf16.mxu0 %v8037_v11  ;;  %5447 = vmatprep.subr.bf16.mxu1 %v8040_v12  ;;  %v8119_v11 = vld [vmem:[%s11650_s1 + $0xb40] ss:$16 sps:$4 sm:$0xff]   ;;  %v8122_v12 = vld [vmem:[%s11650_s1 + $0xb48] ss:$16 sps:$4 sm:$0xff]  }
 0x133   :  { %4932 = vmatpush1.bf16.msra.mxu0 %v8035_v13  ;;  %5448 = vmatpush1.bf16.msra.mxu1 %v8038_v14  ;;  %v8127_v13 = vld [vmem:[%s11650_s1 + $0xb64] ss:$16 sps:$4 sm:$0xff]   ;;  %v8130_v14 = vld [vmem:[%s11650_s1 + $0xb6c] ss:$16 sps:$4 sm:$0xff]  }
 0x134   :  { %4933 = vmatprep.subr.bf16.mxu0 %v8043_v15  ;;  %5449 = vmatprep.subr.bf16.mxu1 %v8046_v16  ;;  %v8125_v15 = vld [vmem:[%s11650_s1 + $0xb60] ss:$16 sps:$4 sm:$0xff]   ;;  %v8128_v16 = vld [vmem:[%s11650_s1 + $0xb68] ss:$16 sps:$4 sm:$0xff]  }
 0x137   :  { %4934 = vmatpush1.bf16.msra.mxu0 %v8041_v17  ;;  %5450 = vmatpush1.bf16.msra.mxu1 %v8044_v18  ;;  %v8133_v17 = vld [vmem:[%s11650_s1 + $0xb84] ss:$16 sps:$4 sm:$0xff]   ;;  %v8136_v18 = vld [vmem:[%s11650_s1 + $0xb8c] ss:$16 sps:$4 sm:$0xff]  }
 0x138   :  { %4935 = vmatprep.subr.bf16.mxu0 %v8049_v19  ;;  %5451 = vmatprep.subr.bf16.mxu1 %v8052_v20  ;;  %v8131_v19 = vld [vmem:[%s11650_s1 + $0xb80] ss:$16 sps:$4 sm:$0xff]   ;;  %v8134_v20 = vld [vmem:[%s11650_s1 + $0xb88] ss:$16 sps:$4 sm:$0xff]  }
 0x13b   :  { %4936 = vmatpush1.bf16.msra.mxu0 %v8047_v21  ;;  %5452 = vmatpush1.bf16.msra.mxu1 %v8050_v22  ;;  %v8139_v21 = vld [vmem:[%s11650_s1 + $0xba4] ss:$16 sps:$4 sm:$0xff]   ;;  %v8142_v22 = vld [vmem:[%s11650_s1 + $0xbac] ss:$16 sps:$4 sm:$0xff]  }
 0x13c   :  { %4937 = vmatprep.subr.bf16.mxu0 %v8055_v23  ;;  %5453 = vmatprep.subr.bf16.mxu1 %v8058_v24  ;;  %v8137_v23 = vld [vmem:[%s11650_s1 + $0xba0] ss:$16 sps:$4 sm:$0xff]   ;;  %v8140_v24 = vld [vmem:[%s11650_s1 + $0xba8] ss:$16 sps:$4 sm:$0xff]  }
 0x13f   :  { %4938 = vmatpush1.bf16.msra.mxu0 %v8053_v25  ;;  %5454 = vmatpush1.bf16.msra.mxu1 %v8056_v26  ;;  %v8145_v25 = vld [vmem:[%s11650_s1 + $0xbc4] ss:$16 sps:$4 sm:$0xff]   ;;  %v8148_v26 = vld [vmem:[%s11650_s1 + $0xbcc] ss:$16 sps:$4 sm:$0xff]  }
 0x140   :  { %4950 = vmatprep.subr.bf16.mxu0 %v8061_v27  ;;  %5466 = vmatprep.subr.bf16.mxu1 %v8064_v28  ;;  %v8143_v27 = vld [vmem:[%s11650_s1 + $0xbc0] ss:$16 sps:$4 sm:$0xff]   ;;  %v8146_v28 = vld [vmem:[%s11650_s1 + $0xbc8] ss:$16 sps:$4 sm:$0xff]  }
 0x142   :  { %4940 = vmatmul.mubr.bf16.vlgmr.msra.gmra.mrb[0].mxu0 %v89_v33  ;;  %5456 = vmatmul.mubr.bf16.vlgmr.msra.gmra.mrb[0].mxu1 %v89_v33  ;;  %v8157_v33 = vld [vmem:[%s11650_s1 + $0xc04] ss:$16 sps:$4 sm:$0xff]  }
 0x143   :  { %4951 = vmatpush1.bf16.msra.mxu0 %v8059_v34  ;;  %5467 = vmatpush1.bf16.msra.mxu1 %v8062_v35  ;;  %v8160_v34 = vld [vmem:[%s11650_s1 + $0xc0c] ss:$16 sps:$4 sm:$0xff]   ;;  %v43_v35 = vld [vmem:[%s11651_s0 + $0x50] sm:$0xff] }
 0x144   :  { %4952 = vmatprep.subr.bf16.mxu0 %v8067_v36  ;;  %5468 = vmatprep.subr.bf16.mxu1 %v8070_v37  ;;  %v67_v36 = vld [vmem:[%s11651_s0 + $0x110] sm:$0xff]  ;;  %v46_v37 = vld [vmem:[%s11651_s0 + $0x68] sm:$0xff] }
 0x145   :  { %4982 = vmatprep.mubr.bf16.mxu0 %v92_v38  ;;  %5498 = vmatprep.mubr.bf16.mxu1 %v92_v38  ;;  %v70_v38 = vld [vmem:[%s11651_s0 + $0x128] sm:$0xff] }
 0x147   :  { %4953 = vmatpush1.bf16.msra.mxu0 %v8065_v39  ;;  %5469 = vmatpush1.bf16.msra.mxu1 %v8068_v40  ;;  %v91_v39 = vpack.c.bf16 %v67_v36, %v43_v35  ;;  %v8155_v40 = vld [vmem:[%s11650_s1 + $0xc00] ss:$16 sps:$4 sm:$0xff]   ;;  %v8247_v35 = vld [vmem:[%s11650_s1 + $0xde4] ss:$16 sps:$4 sm:$0xff]   ;;  %v8250_v36 = vld [vmem:[%s11650_s1 + $0xdec] ss:$16 sps:$4 sm:$0xff]  }
 0x148   :  { %4954 = vmatprep.subr.bf16.mxu0 %v8073_v41  ;;  %5470 = vmatprep.subr.bf16.mxu1 %v8076_v42  ;;  %v8158_v41 = vld [vmem:[%s11650_s1 + $0xc08] ss:$16 sps:$4 sm:$0xff]   ;;  %v8163_v42 = vld [vmem:[%s11650_s1 + $0xc24] ss:$16 sps:$4 sm:$0xff]  }
 0x14b   :  { %4955 = vmatpush1.bf16.msra.mxu0 %v8071_v43  ;;  %5471 = vmatpush1.bf16.msra.mxu1 %v8074_v44  ;;  %v8166_v43 = vld [vmem:[%s11650_s1 + $0xc2c] ss:$16 sps:$4 sm:$0xff]   ;;  %v94_v44 = vpack.c.bf16 %v70_v38, %v46_v37  ;;  %v8245_v37 = vld [vmem:[%s11650_s1 + $0xde0] ss:$16 sps:$4 sm:$0xff]   ;;  %v8248_v38 = vld [vmem:[%s11650_s1 + $0xde8] ss:$16 sps:$4 sm:$0xff]  }
 0x14c   :  { %4956 = vmatprep.subr.bf16.mxu0 %v8079_v45  ;;  %5472 = vmatprep.subr.bf16.mxu1 %v8082_v46  ;;  %v8161_v45 = vld [vmem:[%s11650_s1 + $0xc20] ss:$16 sps:$4 sm:$0xff]   ;;  %v8164_v46 = vld [vmem:[%s11650_s1 + $0xc28] ss:$16 sps:$4 sm:$0xff]  }
 0x14f   :  { %4957 = vmatpush1.bf16.msra.mxu0 %v8077_v47  ;;  %5473 = vmatpush1.bf16.msra.mxu1 %v8080_v48  ;;  %v8169_v47 = vld [vmem:[%s11650_s1 + $0xc44] ss:$16 sps:$4 sm:$0xff]   ;;  %v8172_v48 = vld [vmem:[%s11650_s1 + $0xc4c] ss:$16 sps:$4 sm:$0xff]  }
 0x150   :  { %4958 = vmatprep.subr.bf16.mxu0 %v8085_v49  ;;  %5474 = vmatprep.subr.bf16.mxu1 %v8088_v50  ;;  %v8167_v49 = vld [vmem:[%s11650_s1 + $0xc40] ss:$16 sps:$4 sm:$0xff]   ;;  %v8170_v50 = vld [vmem:[%s11650_s1 + $0xc48] ss:$16 sps:$4 sm:$0xff]  }
 0x153   :  { %4959 = vmatpush1.bf16.msra.mxu0 %v8083_v51  ;;  %5475 = vmatpush1.bf16.msra.mxu1 %v8086_v52  ;;  %v8175_v51 = vld [vmem:[%s11650_s1 + $0xc64] ss:$16 sps:$4 sm:$0xff]   ;;  %v8178_v52 = vld [vmem:[%s11650_s1 + $0xc6c] ss:$16 sps:$4 sm:$0xff]  }
 0x154   :  { %4960 = vmatprep.subr.bf16.mxu0 %v8091_v53  ;;  %5476 = vmatprep.subr.bf16.mxu1 %v8094_v54  ;;  %v8173_v53 = vld [vmem:[%s11650_s1 + $0xc60] ss:$16 sps:$4 sm:$0xff]   ;;  %v8176_v54 = vld [vmem:[%s11650_s1 + $0xc68] ss:$16 sps:$4 sm:$0xff]  }
 0x157   :  { %4961 = vmatpush1.bf16.msra.mxu0 %v8089_v55  ;;  %5477 = vmatpush1.bf16.msra.mxu1 %v8092_v56  ;;  %v8181_v55 = vld [vmem:[%s11650_s1 + $0xc84] ss:$16 sps:$4 sm:$0xff]   ;;  %v8184_v56 = vld [vmem:[%s11650_s1 + $0xc8c] ss:$16 sps:$4 sm:$0xff]  }
 0x158   :  { %4962 = vmatprep.subr.bf16.mxu0 %v8097_v57  ;;  %5478 = vmatprep.subr.bf16.mxu1 %v8100_v58  ;;  %v8179_v57 = vld [vmem:[%s11650_s1 + $0xc80] ss:$16 sps:$4 sm:$0xff]   ;;  %v8182_v58 = vld [vmem:[%s11650_s1 + $0xc88] ss:$16 sps:$4 sm:$0xff]  }
 0x15b   :  { %4963 = vmatpush1.bf16.msra.mxu0 %v8095_v59  ;;  %5479 = vmatpush1.bf16.msra.mxu1 %v8098_v60  ;;  %v8187_v59 = vld [vmem:[%s11650_s1 + $0xca4] ss:$16 sps:$4 sm:$0xff]   ;;  %v8190_v60 = vld [vmem:[%s11650_s1 + $0xcac] ss:$16 sps:$4 sm:$0xff]  }
 0x15c   :  { %4964 = vmatprep.subr.bf16.mxu0 %v8103_v61  ;;  %5480 = vmatprep.subr.bf16.mxu1 %v8106_v62  ;;  %v8185_v61 = vld [vmem:[%s11650_s1 + $0xca0] ss:$16 sps:$4 sm:$0xff]   ;;  %v8188_v62 = vld [vmem:[%s11650_s1 + $0xca8] ss:$16 sps:$4 sm:$0xff]  }
 0x15f   :  { %4965 = vmatpush1.bf16.msra.mxu0 %v8101_v63  ;;  %5481 = vmatpush1.bf16.msra.mxu1 %v8104_v0  ;;  %v8193_v63 = vld [vmem:[%s11650_s1 + $0xcc4] ss:$16 sps:$4 sm:$0xff]   ;;  %v8196_v0 = vld [vmem:[%s11650_s1 + $0xccc] ss:$16 sps:$4 sm:$0xff]  }
 0x160   :  { %4966 = vmatprep.subr.bf16.mxu0 %v8109_v1  ;;  %5482 = vmatprep.subr.bf16.mxu1 %v8112_v2  ;;  %v8191_v1 = vld [vmem:[%s11650_s1 + $0xcc0] ss:$16 sps:$4 sm:$0xff]   ;;  %v8194_v2 = vld [vmem:[%s11650_s1 + $0xcc8] ss:$16 sps:$4 sm:$0xff]  }
 0x163   :  { %4967 = vmatpush1.bf16.msra.mxu0 %v8107_v3  ;;  %5483 = vmatpush1.bf16.msra.mxu1 %v8110_v4  ;;  %v8199_v3 = vld [vmem:[%s11650_s1 + $0xce4] ss:$16 sps:$4 sm:$0xff]   ;;  %v8202_v4 = vld [vmem:[%s11650_s1 + $0xcec] ss:$16 sps:$4 sm:$0xff]  }
 0x164   :  { %4968 = vmatprep.subr.bf16.mxu0 %v8115_v5  ;;  %5484 = vmatprep.subr.bf16.mxu1 %v8118_v6  ;;  %v8197_v5 = vld [vmem:[%s11650_s1 + $0xce0] ss:$16 sps:$4 sm:$0xff]   ;;  %v8200_v6 = vld [vmem:[%s11650_s1 + $0xce8] ss:$16 sps:$4 sm:$0xff]  }
 0x167   :  { %4969 = vmatpush1.bf16.msra.mxu0 %v8113_v7  ;;  %5485 = vmatpush1.bf16.msra.mxu1 %v8116_v8  ;;  %v8205_v7 = vld [vmem:[%s11650_s1 + $0xd04] ss:$16 sps:$4 sm:$0xff]   ;;  %v8208_v8 = vld [vmem:[%s11650_s1 + $0xd0c] ss:$16 sps:$4 sm:$0xff]  }
 0x168   :  { %4970 = vmatprep.subr.bf16.mxu0 %v8121_v9  ;;  %5486 = vmatprep.subr.bf16.mxu1 %v8124_v10  ;;  %v8203_v9 = vld [vmem:[%s11650_s1 + $0xd00] ss:$16 sps:$4 sm:$0xff]   ;;  %v8206_v10 = vld [vmem:[%s11650_s1 + $0xd08] ss:$16 sps:$4 sm:$0xff]  }
 0x16b   :  { %4971 = vmatpush1.bf16.msra.mxu0 %v8119_v11  ;;  %5487 = vmatpush1.bf16.msra.mxu1 %v8122_v12  ;;  %v8211_v11 = vld [vmem:[%s11650_s1 + $0xd24] ss:$16 sps:$4 sm:$0xff]   ;;  %v8214_v12 = vld [vmem:[%s11650_s1 + $0xd2c] ss:$16 sps:$4 sm:$0xff]  }
 0x16c   :  { %4972 = vmatprep.subr.bf16.mxu0 %v8127_v13  ;;  %5488 = vmatprep.subr.bf16.mxu1 %v8130_v14  ;;  %v8209_v13 = vld [vmem:[%s11650_s1 + $0xd20] ss:$16 sps:$4 sm:$0xff]   ;;  %v8212_v14 = vld [vmem:[%s11650_s1 + $0xd28] ss:$16 sps:$4 sm:$0xff]  }
 0x16f   :  { %4973 = vmatpush1.bf16.msra.mxu0 %v8125_v15  ;;  %5489 = vmatpush1.bf16.msra.mxu1 %v8128_v16  ;;  %v8217_v15 = vld [vmem:[%s11650_s1 + $0xd44] ss:$16 sps:$4 sm:$0xff]   ;;  %v8220_v16 = vld [vmem:[%s11650_s1 + $0xd4c] ss:$16 sps:$4 sm:$0xff]  }
 0x170   :  { %4974 = vmatprep.subr.bf16.mxu0 %v8133_v17  ;;  %5490 = vmatprep.subr.bf16.mxu1 %v8136_v18  ;;  %v8215_v17 = vld [vmem:[%s11650_s1 + $0xd40] ss:$16 sps:$4 sm:$0xff]   ;;  %v8218_v18 = vld [vmem:[%s11650_s1 + $0xd48] ss:$16 sps:$4 sm:$0xff]  }
 0x173   :  { %4975 = vmatpush1.bf16.msra.mxu0 %v8131_v19  ;;  %5491 = vmatpush1.bf16.msra.mxu1 %v8134_v20  ;;  %v8223_v19 = vld [vmem:[%s11650_s1 + $0xd64] ss:$16 sps:$4 sm:$0xff]   ;;  %v8226_v20 = vld [vmem:[%s11650_s1 + $0xd6c] ss:$16 sps:$4 sm:$0xff]  }
 0x174   :  { %4976 = vmatprep.subr.bf16.mxu0 %v8139_v21  ;;  %5492 = vmatprep.subr.bf16.mxu1 %v8142_v22  ;;  %v8221_v21 = vld [vmem:[%s11650_s1 + $0xd60] ss:$16 sps:$4 sm:$0xff]   ;;  %v8224_v22 = vld [vmem:[%s11650_s1 + $0xd68] ss:$16 sps:$4 sm:$0xff]  }
 0x177   :  { %4977 = vmatpush1.bf16.msra.mxu0 %v8137_v23  ;;  %5493 = vmatpush1.bf16.msra.mxu1 %v8140_v24  ;;  %v8229_v23 = vld [vmem:[%s11650_s1 + $0xd84] ss:$16 sps:$4 sm:$0xff]   ;;  %v8232_v24 = vld [vmem:[%s11650_s1 + $0xd8c] ss:$16 sps:$4 sm:$0xff]  }
 0x178   :  { %4978 = vmatprep.subr.bf16.mxu0 %v8145_v25  ;;  %5494 = vmatprep.subr.bf16.mxu1 %v8148_v26  ;;  %v8227_v25 = vld [vmem:[%s11650_s1 + $0xd80] ss:$16 sps:$4 sm:$0xff]   ;;  %v8230_v26 = vld [vmem:[%s11650_s1 + $0xd88] ss:$16 sps:$4 sm:$0xff]  }
 0x17b   :  { %4979 = vmatpush1.bf16.msra.mxu0 %v8143_v27  ;;  %5495 = vmatpush1.bf16.msra.mxu1 %v8146_v28  ;;  %v8235_v27 = vld [vmem:[%s11650_s1 + $0xda4] ss:$16 sps:$4 sm:$0xff]   ;;  %v8238_v28 = vld [vmem:[%s11650_s1 + $0xdac] ss:$16 sps:$4 sm:$0xff]  }
 0x17c   :  { %4980 = vmatprep.subr.bf16.mxu0 %v8151_v29  ;;  %5496 = vmatprep.subr.bf16.mxu1 %v8154_v30  ;;  %v8233_v29 = vld [vmem:[%s11650_s1 + $0xda0] ss:$16 sps:$4 sm:$0xff]   ;;  %v8236_v30 = vld [vmem:[%s11650_s1 + $0xda8] ss:$16 sps:$4 sm:$0xff]  }
 0x17f   :  { %4981 = vmatpush1.bf16.msra.mxu0 %v8149_v31  ;;  %5497 = vmatpush1.bf16.msra.mxu1 %v8152_v32  ;;  %v8241_v31 = vld [vmem:[%s11650_s1 + $0xdc4] ss:$16 sps:$4 sm:$0xff]   ;;  %v8244_v32 = vld [vmem:[%s11650_s1 + $0xdcc] ss:$16 sps:$4 sm:$0xff]  }
 0x180   :  { %4993 = vmatprep.subr.bf16.mxu0 %v8157_v33  ;;  %5509 = vmatprep.subr.bf16.mxu1 %v8160_v34  ;;  %v8239_v33 = vld [vmem:[%s11650_s1 + $0xdc0] ss:$16 sps:$4 sm:$0xff]   ;;  %v8242_v34 = vld [vmem:[%s11650_s1 + $0xdc8] ss:$16 sps:$4 sm:$0xff]  }
 0x182   :  { %4983 = vmatmul.mubr.bf16.vlgmr.msra.gmra.mrb[0].mxu0 %v91_v39  ;;  %5499 = vmatmul.mubr.bf16.vlgmr.msra.gmra.mrb[0].mxu1 %v91_v39  ;;  %v8253_v39 = vld [vmem:[%s11650_s1 + $0xe04] ss:$16 sps:$4 sm:$0xff]  }
 0x183   :  { %4994 = vmatpush1.bf16.msra.mxu0 %v8155_v40  ;;  %5510 = vmatpush1.bf16.msra.mxu1 %v8158_v41  ;;  %v8256_v40 = vld [vmem:[%s11650_s1 + $0xe0c] ss:$16 sps:$4 sm:$0xff]   ;;  %v45_v41 = vld [vmem:[%s11651_s0 + $0x60] sm:$0xff] }
 0x184   :  { %4995 = vmatprep.subr.bf16.mxu0 %v8163_v42  ;;  %5511 = vmatprep.subr.bf16.mxu1 %v8166_v43  ;;  %v69_v42 = vld [vmem:[%s11651_s0 + $0x120] sm:$0xff]  ;;  %v48_v43 = vld [vmem:[%s11651_s0 + $0x78] sm:$0xff] }
 0x185   :  { %5025 = vmatprep.mubr.bf16.mxu0 %v94_v44  ;;  %5541 = vmatprep.mubr.bf16.mxu1 %v94_v44  ;;  %v72_v44 = vld [vmem:[%s11651_s0 + $0x138] sm:$0xff] }
 0x187   :  { %4996 = vmatpush1.bf16.msra.mxu0 %v8161_v45  ;;  %5512 = vmatpush1.bf16.msra.mxu1 %v8164_v46  ;;  %v93_v45 = vpack.c.bf16 %v69_v42, %v45_v41  ;;  %v8251_v46 = vld [vmem:[%s11650_s1 + $0xe00] ss:$16 sps:$4 sm:$0xff]   ;;  %v8343_v41 = vld [vmem:[%s11650_s1 + $0xfe4] ss:$16 sps:$4 sm:$0xff]   ;;  %v8346_v42 = vld [vmem:[%s11650_s1 + $0xfec] ss:$16 sps:$4 sm:$0xff]  }
 0x188   :  { %4997 = vmatprep.subr.bf16.mxu0 %v8169_v47  ;;  %5513 = vmatprep.subr.bf16.mxu1 %v8172_v48  ;;  %v8254_v47 = vld [vmem:[%s11650_s1 + $0xe08] ss:$16 sps:$4 sm:$0xff]   ;;  %v8259_v48 = vld [vmem:[%s11650_s1 + $0xe24] ss:$16 sps:$4 sm:$0xff]  }
 0x18b   :  { %4998 = vmatpush1.bf16.msra.mxu0 %v8167_v49  ;;  %5514 = vmatpush1.bf16.msra.mxu1 %v8170_v50  ;;  %v8262_v49 = vld [vmem:[%s11650_s1 + $0xe2c] ss:$16 sps:$4 sm:$0xff]   ;;  %v96_v50 = vpack.c.bf16 %v72_v44, %v48_v43  ;;  %v8341_v43 = vld [vmem:[%s11650_s1 + $0xfe0] ss:$16 sps:$4 sm:$0xff]   ;;  %v8344_v44 = vld [vmem:[%s11650_s1 + $0xfe8] ss:$16 sps:$4 sm:$0xff]  }
 0x18c   :  { %4999 = vmatprep.subr.bf16.mxu0 %v8175_v51  ;;  %5515 = vmatprep.subr.bf16.mxu1 %v8178_v52  ;;  %v8257_v51 = vld [vmem:[%s11650_s1 + $0xe20] ss:$16 sps:$4 sm:$0xff]   ;;  %v8260_v52 = vld [vmem:[%s11650_s1 + $0xe28] ss:$16 sps:$4 sm:$0xff]  }
 0x18f   :  { %5000 = vmatpush1.bf16.msra.mxu0 %v8173_v53  ;;  %5516 = vmatpush1.bf16.msra.mxu1 %v8176_v54  ;;  %v8265_v53 = vld [vmem:[%s11650_s1 + $0xe44] ss:$16 sps:$4 sm:$0xff]   ;;  %v8268_v54 = vld [vmem:[%s11650_s1 + $0xe4c] ss:$16 sps:$4 sm:$0xff]  }
 0x190   :  { %5001 = vmatprep.subr.bf16.mxu0 %v8181_v55  ;;  %5517 = vmatprep.subr.bf16.mxu1 %v8184_v56  ;;  %v8263_v55 = vld [vmem:[%s11650_s1 + $0xe40] ss:$16 sps:$4 sm:$0xff]   ;;  %v8266_v56 = vld [vmem:[%s11650_s1 + $0xe48] ss:$16 sps:$4 sm:$0xff]  }
 0x193   :  { %5002 = vmatpush1.bf16.msra.mxu0 %v8179_v57  ;;  %5518 = vmatpush1.bf16.msra.mxu1 %v8182_v58  ;;  %v8271_v57 = vld [vmem:[%s11650_s1 + $0xe64] ss:$16 sps:$4 sm:$0xff]   ;;  %v8274_v58 = vld [vmem:[%s11650_s1 + $0xe6c] ss:$16 sps:$4 sm:$0xff]  }
 0x194   :  { %5003 = vmatprep.subr.bf16.mxu0 %v8187_v59  ;;  %5519 = vmatprep.subr.bf16.mxu1 %v8190_v60  ;;  %v8269_v59 = vld [vmem:[%s11650_s1 + $0xe60] ss:$16 sps:$4 sm:$0xff]   ;;  %v8272_v60 = vld [vmem:[%s11650_s1 + $0xe68] ss:$16 sps:$4 sm:$0xff]  }
 0x197   :  { %5004 = vmatpush1.bf16.msra.mxu0 %v8185_v61  ;;  %5520 = vmatpush1.bf16.msra.mxu1 %v8188_v62  ;;  %v8277_v61 = vld [vmem:[%s11650_s1 + $0xe84] ss:$16 sps:$4 sm:$0xff]   ;;  %v8280_v62 = vld [vmem:[%s11650_s1 + $0xe8c] ss:$16 sps:$4 sm:$0xff]  }
 0x198   :  { %5005 = vmatprep.subr.bf16.mxu0 %v8193_v63  ;;  %5521 = vmatprep.subr.bf16.mxu1 %v8196_v0  ;;  %v8275_v63 = vld [vmem:[%s11650_s1 + $0xe80] ss:$16 sps:$4 sm:$0xff]   ;;  %v8278_v0 = vld [vmem:[%s11650_s1 + $0xe88] ss:$16 sps:$4 sm:$0xff]  }
 0x19b   :  { %5006 = vmatpush1.bf16.msra.mxu0 %v8191_v1  ;;  %5522 = vmatpush1.bf16.msra.mxu1 %v8194_v2  ;;  %v8283_v1 = vld [vmem:[%s11650_s1 + $0xea4] ss:$16 sps:$4 sm:$0xff]   ;;  %v8286_v2 = vld [vmem:[%s11650_s1 + $0xeac] ss:$16 sps:$4 sm:$0xff]  }
 0x19c   :  { %5007 = vmatprep.subr.bf16.mxu0 %v8199_v3  ;;  %5523 = vmatprep.subr.bf16.mxu1 %v8202_v4  ;;  %v8281_v3 = vld [vmem:[%s11650_s1 + $0xea0] ss:$16 sps:$4 sm:$0xff]   ;;  %v8284_v4 = vld [vmem:[%s11650_s1 + $0xea8] ss:$16 sps:$4 sm:$0xff]  }
 0x19f   :  { %5008 = vmatpush1.bf16.msra.mxu0 %v8197_v5  ;;  %5524 = vmatpush1.bf16.msra.mxu1 %v8200_v6  ;;  %v8289_v5 = vld [vmem:[%s11650_s1 + $0xec4] ss:$16 sps:$4 sm:$0xff]   ;;  %v8292_v6 = vld [vmem:[%s11650_s1 + $0xecc] ss:$16 sps:$4 sm:$0xff]  }
 0x1a0   :  { %5009 = vmatprep.subr.bf16.mxu0 %v8205_v7  ;;  %5525 = vmatprep.subr.bf16.mxu1 %v8208_v8  ;;  %v8287_v7 = vld [vmem:[%s11650_s1 + $0xec0] ss:$16 sps:$4 sm:$0xff]   ;;  %v8290_v8 = vld [vmem:[%s11650_s1 + $0xec8] ss:$16 sps:$4 sm:$0xff]  }
 0x1a3   :  { %5010 = vmatpush1.bf16.msra.mxu0 %v8203_v9  ;;  %5526 = vmatpush1.bf16.msra.mxu1 %v8206_v10  ;;  %v8295_v9 = vld [vmem:[%s11650_s1 + $0xee4] ss:$16 sps:$4 sm:$0xff]   ;;  %v8298_v10 = vld [vmem:[%s11650_s1 + $0xeec] ss:$16 sps:$4 sm:$0xff]  }
 0x1a4   :  { %5011 = vmatprep.subr.bf16.mxu0 %v8211_v11  ;;  %5527 = vmatprep.subr.bf16.mxu1 %v8214_v12  ;;  %v8293_v11 = vld [vmem:[%s11650_s1 + $0xee0] ss:$16 sps:$4 sm:$0xff]   ;;  %v8296_v12 = vld [vmem:[%s11650_s1 + $0xee8] ss:$16 sps:$4 sm:$0xff]  }
 0x1a7   :  { %5012 = vmatpush1.bf16.msra.mxu0 %v8209_v13  ;;  %5528 = vmatpush1.bf16.msra.mxu1 %v8212_v14  ;;  %v8301_v13 = vld [vmem:[%s11650_s1 + $0xf04] ss:$16 sps:$4 sm:$0xff]   ;;  %v8304_v14 = vld [vmem:[%s11650_s1 + $0xf0c] ss:$16 sps:$4 sm:$0xff]  }
 0x1a8   :  { %5013 = vmatprep.subr.bf16.mxu0 %v8217_v15  ;;  %5529 = vmatprep.subr.bf16.mxu1 %v8220_v16  ;;  %v8299_v15 = vld [vmem:[%s11650_s1 + $0xf00] ss:$16 sps:$4 sm:$0xff]   ;;  %v8302_v16 = vld [vmem:[%s11650_s1 + $0xf08] ss:$16 sps:$4 sm:$0xff]  }
 0x1ab   :  { %5014 = vmatpush1.bf16.msra.mxu0 %v8215_v17  ;;  %5530 = vmatpush1.bf16.msra.mxu1 %v8218_v18  ;;  %v8307_v17 = vld [vmem:[%s11650_s1 + $0xf24] ss:$16 sps:$4 sm:$0xff]   ;;  %v8310_v18 = vld [vmem:[%s11650_s1 + $0xf2c] ss:$16 sps:$4 sm:$0xff]  }
 0x1ac   :  { %5015 = vmatprep.subr.bf16.mxu0 %v8223_v19  ;;  %5531 = vmatprep.subr.bf16.mxu1 %v8226_v20  ;;  %v8305_v19 = vld [vmem:[%s11650_s1 + $0xf20] ss:$16 sps:$4 sm:$0xff]   ;;  %v8308_v20 = vld [vmem:[%s11650_s1 + $0xf28] ss:$16 sps:$4 sm:$0xff]  }
 0x1af   :  { %5016 = vmatpush1.bf16.msra.mxu0 %v8221_v21  ;;  %5532 = vmatpush1.bf16.msra.mxu1 %v8224_v22  ;;  %v8313_v21 = vld [vmem:[%s11650_s1 + $0xf44] ss:$16 sps:$4 sm:$0xff]   ;;  %v8316_v22 = vld [vmem:[%s11650_s1 + $0xf4c] ss:$16 sps:$4 sm:$0xff]  }
 0x1b0   :  { %5017 = vmatprep.subr.bf16.mxu0 %v8229_v23  ;;  %5533 = vmatprep.subr.bf16.mxu1 %v8232_v24  ;;  %v8311_v23 = vld [vmem:[%s11650_s1 + $0xf40] ss:$16 sps:$4 sm:$0xff]   ;;  %v8314_v24 = vld [vmem:[%s11650_s1 + $0xf48] ss:$16 sps:$4 sm:$0xff]  }
 0x1b3   :  { %5018 = vmatpush1.bf16.msra.mxu0 %v8227_v25  ;;  %5534 = vmatpush1.bf16.msra.mxu1 %v8230_v26  ;;  %v8319_v25 = vld [vmem:[%s11650_s1 + $0xf64] ss:$16 sps:$4 sm:$0xff]   ;;  %v8322_v26 = vld [vmem:[%s11650_s1 + $0xf6c] ss:$16 sps:$4 sm:$0xff]  }
 0x1b4   :  { %5019 = vmatprep.subr.bf16.mxu0 %v8235_v27  ;;  %5535 = vmatprep.subr.bf16.mxu1 %v8238_v28  ;;  %v8317_v27 = vld [vmem:[%s11650_s1 + $0xf60] ss:$16 sps:$4 sm:$0xff]   ;;  %v8320_v28 = vld [vmem:[%s11650_s1 + $0xf68] ss:$16 sps:$4 sm:$0xff]  }
 0x1b7   :  { %5020 = vmatpush1.bf16.msra.mxu0 %v8233_v29  ;;  %5536 = vmatpush1.bf16.msra.mxu1 %v8236_v30  ;;  %v8325_v29 = vld [vmem:[%s11650_s1 + $0xf84] ss:$16 sps:$4 sm:$0xff]   ;;  %v8328_v30 = vld [vmem:[%s11650_s1 + $0xf8c] ss:$16 sps:$4 sm:$0xff]  }
 0x1b8   :  { %5021 = vmatprep.subr.bf16.mxu0 %v8241_v31  ;;  %5537 = vmatprep.subr.bf16.mxu1 %v8244_v32  ;;  %v8323_v31 = vld [vmem:[%s11650_s1 + $0xf80] ss:$16 sps:$4 sm:$0xff]   ;;  %v8326_v32 = vld [vmem:[%s11650_s1 + $0xf88] ss:$16 sps:$4 sm:$0xff]  }
 0x1bb   :  { %5022 = vmatpush1.bf16.msra.mxu0 %v8239_v33  ;;  %5538 = vmatpush1.bf16.msra.mxu1 %v8242_v34  ;;  %v8331_v33 = vld [vmem:[%s11650_s1 + $0xfa4] ss:$16 sps:$4 sm:$0xff]   ;;  %v8334_v34 = vld [vmem:[%s11650_s1 + $0xfac] ss:$16 sps:$4 sm:$0xff]  }
 0x1bc   :  { %5023 = vmatprep.subr.bf16.mxu0 %v8247_v35  ;;  %5539 = vmatprep.subr.bf16.mxu1 %v8250_v36  ;;  %v8329_v35 = vld [vmem:[%s11650_s1 + $0xfa0] ss:$16 sps:$4 sm:$0xff]   ;;  %v8332_v36 = vld [vmem:[%s11650_s1 + $0xfa8] ss:$16 sps:$4 sm:$0xff]  }
 0x1bf   :  { %5024 = vmatpush1.bf16.msra.mxu0 %v8245_v37  ;;  %5540 = vmatpush1.bf16.msra.mxu1 %v8248_v38  ;;  %v8337_v37 = vld [vmem:[%s11650_s1 + $0xfc4] ss:$16 sps:$4 sm:$0xff]   ;;  %v8340_v38 = vld [vmem:[%s11650_s1 + $0xfcc] ss:$16 sps:$4 sm:$0xff]  }
 0x1c0   :  { %5036 = vmatprep.subr.bf16.mxu0 %v8253_v39  ;;  %5552 = vmatprep.subr.bf16.mxu1 %v8256_v40  ;;  %v8335_v39 = vld [vmem:[%s11650_s1 + $0xfc0] ss:$16 sps:$4 sm:$0xff]   ;;  %v8338_v40 = vld [vmem:[%s11650_s1 + $0xfc8] ss:$16 sps:$4 sm:$0xff]  }
 0x1c2   :  { %5026 = vmatmul.mubr.bf16.vlgmr.msra.gmra.mrb[0].mxu0 %v93_v45  ;;  %5542 = vmatmul.mubr.bf16.vlgmr.msra.gmra.mrb[0].mxu1 %v93_v45  ;;  %v47_v45 = vld [vmem:[%s11651_s0 + $0x70] sm:$0xff] }
 0x1c3   :  { %5037 = vmatpush1.bf16.msra.mxu0 %v8251_v46  ;;  %5553 = vmatpush1.bf16.msra.mxu1 %v8254_v47  ;;  %v71_v46 = vld [vmem:[%s11651_s0 + $0x130] sm:$0xff] }
 0x1c4   :  { %5038 = vmatprep.subr.bf16.mxu0 %v8259_v48  ;;  %5554 = vmatprep.subr.bf16.mxu1 %v8262_v49  ;;  %v8349_v47 = vld [vmem:[%s11650_s1 + $0x1004] ss:$16 sps:$4 sm:$0xff]   ;;  %v8352_v48 = vld [vmem:[%s11650_s1 + $0x100c] ss:$16 sps:$4 sm:$0xff]   ;;  %v95_v49 = vpack.c.bf16 %v71_v46, %v47_v45  ;;  %v8431_v45 = vld [vmem:[%s11650_s1 + $0x11c0] ss:$16 sps:$4 sm:$0xff]  }
 0x1c5   :  { %5068 = vmatprep.mubr.bf16.mxu0 %v96_v50  ;;  %5584 = vmatprep.mubr.bf16.mxu1 %v96_v50  ;;  %v50_v50 = vld [vmem:[%s11651_s0 + $0x88] sm:$0xff] }
 0x1c6   :  { %v8434_v46 = vld [vmem:[%s11650_s1 + $0x11c8] ss:$16 sps:$4 sm:$0xff]  }
 0x1c7   :  { %5039 = vmatpush1.bf16.msra.mxu0 %v8257_v51  ;;  %5555 = vmatpush1.bf16.msra.mxu1 %v8260_v52  ;;  %v74_v51 = vld [vmem:[%s11651_s0 + $0x148] sm:$0xff]  ;;  %v8347_v52 = vld [vmem:[%s11650_s1 + $0x1000] ss:$16 sps:$4 sm:$0xff]  }
 0x1c8   :  { %5040 = vmatprep.subr.bf16.mxu0 %v8265_v53  ;;  %5556 = vmatprep.subr.bf16.mxu1 %v8268_v54  ;;  %v8350_v53 = vld [vmem:[%s11650_s1 + $0x1008] ss:$16 sps:$4 sm:$0xff]   ;;  %v8355_v54 = vld [vmem:[%s11650_s1 + $0x1024] ss:$16 sps:$4 sm:$0xff]  }
 0x1cb   :  { %5041 = vmatpush1.bf16.msra.mxu0 %v8263_v55  ;;  %5557 = vmatpush1.bf16.msra.mxu1 %v8266_v56  ;;  %v8358_v55 = vld [vmem:[%s11650_s1 + $0x102c] ss:$16 sps:$4 sm:$0xff]   ;;  %v98_v56 = vpack.c.bf16 %v74_v51, %v50_v50  ;;  %v8440_v50 = vld [vmem:[%s11650_s1 + $0x11e8] ss:$16 sps:$4 sm:$0xff]   ;;  %v49_v51 = vld [vmem:[%s11651_s0 + $0x80] sm:$0xff] }
 0x1cc   :  { %5042 = vmatprep.subr.bf16.mxu0 %v8271_v57  ;;  %5558 = vmatprep.subr.bf16.mxu1 %v8274_v58  ;;  %v8353_v57 = vld [vmem:[%s11650_s1 + $0x1020] ss:$16 sps:$4 sm:$0xff]   ;;  %v8356_v58 = vld [vmem:[%s11650_s1 + $0x1028] ss:$16 sps:$4 sm:$0xff]  }
 0x1cf   :  { %5043 = vmatpush1.bf16.msra.mxu0 %v8269_v59  ;;  %5559 = vmatpush1.bf16.msra.mxu1 %v8272_v60  ;;  %v8361_v59 = vld [vmem:[%s11650_s1 + $0x1044] ss:$16 sps:$4 sm:$0xff]   ;;  %v8364_v60 = vld [vmem:[%s11650_s1 + $0x104c] ss:$16 sps:$4 sm:$0xff]  }
 0x1d0   :  { %5044 = vmatprep.subr.bf16.mxu0 %v8277_v61  ;;  %5560 = vmatprep.subr.bf16.mxu1 %v8280_v62  ;;  %v8359_v61 = vld [vmem:[%s11650_s1 + $0x1040] ss:$16 sps:$4 sm:$0xff]   ;;  %v8362_v62 = vld [vmem:[%s11650_s1 + $0x1048] ss:$16 sps:$4 sm:$0xff]  }
 0x1d3   :  { %5045 = vmatpush1.bf16.msra.mxu0 %v8275_v63  ;;  %5561 = vmatpush1.bf16.msra.mxu1 %v8278_v0  ;;  %v8367_v63 = vld [vmem:[%s11650_s1 + $0x1064] ss:$16 sps:$4 sm:$0xff]   ;;  %v8370_v0 = vld [vmem:[%s11650_s1 + $0x106c] ss:$16 sps:$4 sm:$0xff]  }
 0x1d4   :  { %5046 = vmatprep.subr.bf16.mxu0 %v8283_v1  ;;  %5562 = vmatprep.subr.bf16.mxu1 %v8286_v2  ;;  %v8365_v1 = vld [vmem:[%s11650_s1 + $0x1060] ss:$16 sps:$4 sm:$0xff]   ;;  %v8368_v2 = vld [vmem:[%s11650_s1 + $0x1068] ss:$16 sps:$4 sm:$0xff]  }
 0x1d7   :  { %5047 = vmatpush1.bf16.msra.mxu0 %v8281_v3  ;;  %5563 = vmatpush1.bf16.msra.mxu1 %v8284_v4  ;;  %v8373_v3 = vld [vmem:[%s11650_s1 + $0x1084] ss:$16 sps:$4 sm:$0xff]   ;;  %v8376_v4 = vld [vmem:[%s11650_s1 + $0x108c] ss:$16 sps:$4 sm:$0xff]  }
 0x1d8   :  { %5048 = vmatprep.subr.bf16.mxu0 %v8289_v5  ;;  %5564 = vmatprep.subr.bf16.mxu1 %v8292_v6  ;;  %v8371_v5 = vld [vmem:[%s11650_s1 + $0x1080] ss:$16 sps:$4 sm:$0xff]   ;;  %v8374_v6 = vld [vmem:[%s11650_s1 + $0x1088] ss:$16 sps:$4 sm:$0xff]  }
 0x1db   :  { %5049 = vmatpush1.bf16.msra.mxu0 %v8287_v7  ;;  %5565 = vmatpush1.bf16.msra.mxu1 %v8290_v8  ;;  %v8379_v7 = vld [vmem:[%s11650_s1 + $0x10a4] ss:$16 sps:$4 sm:$0xff]   ;;  %v8382_v8 = vld [vmem:[%s11650_s1 + $0x10ac] ss:$16 sps:$4 sm:$0xff]  }
 0x1dc   :  { %5050 = vmatprep.subr.bf16.mxu0 %v8295_v9  ;;  %5566 = vmatprep.subr.bf16.mxu1 %v8298_v10  ;;  %v8377_v9 = vld [vmem:[%s11650_s1 + $0x10a0] ss:$16 sps:$4 sm:$0xff]   ;;  %v8380_v10 = vld [vmem:[%s11650_s1 + $0x10a8] ss:$16 sps:$4 sm:$0xff]  }
 0x1df   :  { %5051 = vmatpush1.bf16.msra.mxu0 %v8293_v11  ;;  %5567 = vmatpush1.bf16.msra.mxu1 %v8296_v12  ;;  %v8385_v11 = vld [vmem:[%s11650_s1 + $0x10c4] ss:$16 sps:$4 sm:$0xff]   ;;  %v8388_v12 = vld [vmem:[%s11650_s1 + $0x10cc] ss:$16 sps:$4 sm:$0xff]  }
 0x1e0   :  { %5052 = vmatprep.subr.bf16.mxu0 %v8301_v13  ;;  %5568 = vmatprep.subr.bf16.mxu1 %v8304_v14  ;;  %v8383_v13 = vld [vmem:[%s11650_s1 + $0x10c0] ss:$16 sps:$4 sm:$0xff]   ;;  %v8386_v14 = vld [vmem:[%s11650_s1 + $0x10c8] ss:$16 sps:$4 sm:$0xff]  }
 0x1e3   :  { %5053 = vmatpush1.bf16.msra.mxu0 %v8299_v15  ;;  %5569 = vmatpush1.bf16.msra.mxu1 %v8302_v16  ;;  %v8391_v15 = vld [vmem:[%s11650_s1 + $0x10e4] ss:$16 sps:$4 sm:$0xff]   ;;  %v8394_v16 = vld [vmem:[%s11650_s1 + $0x10ec] ss:$16 sps:$4 sm:$0xff]  }
 0x1e4   :  { %5054 = vmatprep.subr.bf16.mxu0 %v8307_v17  ;;  %5570 = vmatprep.subr.bf16.mxu1 %v8310_v18  ;;  %v8389_v17 = vld [vmem:[%s11650_s1 + $0x10e0] ss:$16 sps:$4 sm:$0xff]   ;;  %v8392_v18 = vld [vmem:[%s11650_s1 + $0x10e8] ss:$16 sps:$4 sm:$0xff]  }
 0x1e7   :  { %5055 = vmatpush1.bf16.msra.mxu0 %v8305_v19  ;;  %5571 = vmatpush1.bf16.msra.mxu1 %v8308_v20  ;;  %v8397_v19 = vld [vmem:[%s11650_s1 + $0x1104] ss:$16 sps:$4 sm:$0xff]   ;;  %v8400_v20 = vld [vmem:[%s11650_s1 + $0x110c] ss:$16 sps:$4 sm:$0xff]  }
 0x1e8   :  { %5056 = vmatprep.subr.bf16.mxu0 %v8313_v21  ;;  %5572 = vmatprep.subr.bf16.mxu1 %v8316_v22  ;;  %v8395_v21 = vld [vmem:[%s11650_s1 + $0x1100] ss:$16 sps:$4 sm:$0xff]   ;;  %v8398_v22 = vld [vmem:[%s11650_s1 + $0x1108] ss:$16 sps:$4 sm:$0xff]  }
 0x1eb   :  { %5057 = vmatpush1.bf16.msra.mxu0 %v8311_v23  ;;  %5573 = vmatpush1.bf16.msra.mxu1 %v8314_v24  ;;  %v8403_v23 = vld [vmem:[%s11650_s1 + $0x1124] ss:$16 sps:$4 sm:$0xff]   ;;  %v8406_v24 = vld [vmem:[%s11650_s1 + $0x112c] ss:$16 sps:$4 sm:$0xff]  }
 0x1ec   :  { %5058 = vmatprep.subr.bf16.mxu0 %v8319_v25  ;;  %5574 = vmatprep.subr.bf16.mxu1 %v8322_v26  ;;  %v8401_v25 = vld [vmem:[%s11650_s1 + $0x1120] ss:$16 sps:$4 sm:$0xff]   ;;  %v8404_v26 = vld [vmem:[%s11650_s1 + $0x1128] ss:$16 sps:$4 sm:$0xff]  }
 0x1ef   :  { %5059 = vmatpush1.bf16.msra.mxu0 %v8317_v27  ;;  %5575 = vmatpush1.bf16.msra.mxu1 %v8320_v28  ;;  %v8409_v27 = vld [vmem:[%s11650_s1 + $0x1144] ss:$16 sps:$4 sm:$0xff]   ;;  %v8412_v28 = vld [vmem:[%s11650_s1 + $0x114c] ss:$16 sps:$4 sm:$0xff]  }
 0x1f0   :  { %5060 = vmatprep.subr.bf16.mxu0 %v8325_v29  ;;  %5576 = vmatprep.subr.bf16.mxu1 %v8328_v30  ;;  %v8407_v29 = vld [vmem:[%s11650_s1 + $0x1140] ss:$16 sps:$4 sm:$0xff]   ;;  %v8410_v30 = vld [vmem:[%s11650_s1 + $0x1148] ss:$16 sps:$4 sm:$0xff]  }
 0x1f3   :  { %5061 = vmatpush1.bf16.msra.mxu0 %v8323_v31  ;;  %5577 = vmatpush1.bf16.msra.mxu1 %v8326_v32  ;;  %v8415_v31 = vld [vmem:[%s11650_s1 + $0x1164] ss:$16 sps:$4 sm:$0xff]   ;;  %v8418_v32 = vld [vmem:[%s11650_s1 + $0x116c] ss:$16 sps:$4 sm:$0xff]  }
 0x1f4   :  { %5062 = vmatprep.subr.bf16.mxu0 %v8331_v33  ;;  %5578 = vmatprep.subr.bf16.mxu1 %v8334_v34  ;;  %v8413_v33 = vld [vmem:[%s11650_s1 + $0x1160] ss:$16 sps:$4 sm:$0xff]   ;;  %v8416_v34 = vld [vmem:[%s11650_s1 + $0x1168] ss:$16 sps:$4 sm:$0xff]  }
 0x1f7   :  { %5063 = vmatpush1.bf16.msra.mxu0 %v8329_v35  ;;  %5579 = vmatpush1.bf16.msra.mxu1 %v8332_v36  ;;  %v8421_v35 = vld [vmem:[%s11650_s1 + $0x1184] ss:$16 sps:$4 sm:$0xff]   ;;  %v8424_v36 = vld [vmem:[%s11650_s1 + $0x118c] ss:$16 sps:$4 sm:$0xff]  }
 0x1f8   :  { %5064 = vmatprep.subr.bf16.mxu0 %v8337_v37  ;;  %5580 = vmatprep.subr.bf16.mxu1 %v8340_v38  ;;  %v8419_v37 = vld [vmem:[%s11650_s1 + $0x1180] ss:$16 sps:$4 sm:$0xff]   ;;  %v8422_v38 = vld [vmem:[%s11650_s1 + $0x1188] ss:$16 sps:$4 sm:$0xff]  }
 0x1fb   :  { %5065 = vmatpush1.bf16.msra.mxu0 %v8335_v39  ;;  %5581 = vmatpush1.bf16.msra.mxu1 %v8338_v40  ;;  %v8427_v39 = vld [vmem:[%s11650_s1 + $0x11a4] ss:$16 sps:$4 sm:$0xff]   ;;  %v8430_v40 = vld [vmem:[%s11650_s1 + $0x11ac] ss:$16 sps:$4 sm:$0xff]  }
 0x1fc   :  { %5066 = vmatprep.subr.bf16.mxu0 %v8343_v41  ;;  %5582 = vmatprep.subr.bf16.mxu1 %v8346_v42  ;;  %v8425_v41 = vld [vmem:[%s11650_s1 + $0x11a0] ss:$16 sps:$4 sm:$0xff]   ;;  %v8428_v42 = vld [vmem:[%s11650_s1 + $0x11a8] ss:$16 sps:$4 sm:$0xff]  }
 0x1ff   :  { %5067 = vmatpush1.bf16.msra.mxu0 %v8341_v43  ;;  %5583 = vmatpush1.bf16.msra.mxu1 %v8344_v44  ;;  %v8433_v43 = vld [vmem:[%s11650_s1 + $0x11c4] ss:$16 sps:$4 sm:$0xff]   ;;  %v8436_v44 = vld [vmem:[%s11650_s1 + $0x11cc] ss:$16 sps:$4 sm:$0xff]  }
 0x200   :  { %5079 = vmatprep.subr.bf16.mxu0 %v8349_v47  ;;  %5595 = vmatprep.subr.bf16.mxu1 %v8352_v48  ;;  %v8439_v47 = vld [vmem:[%s11650_s1 + $0x11e4] ss:$16 sps:$4 sm:$0xff]   ;;  %v8442_v48 = vld [vmem:[%s11650_s1 + $0x11ec] ss:$16 sps:$4 sm:$0xff]  }
 0x202   :  { %5069 = vmatmul.mubr.bf16.vlgmr.msra.gmra.mrb[0].mxu0 %v95_v49  ;;  %5585 = vmatmul.mubr.bf16.vlgmr.msra.gmra.mrb[0].mxu1 %v95_v49  ;;  %v8437_v49 = vld [vmem:[%s11650_s1 + $0x11e0] ss:$16 sps:$4 sm:$0xff]  }
 0x203   :  { %5080 = vmatpush1.bf16.msra.mxu0 %v8347_v52  ;;  %5596 = vmatpush1.bf16.msra.mxu1 %v8350_v53  ;;  %v73_v52 = vld [vmem:[%s11651_s0 + $0x140] sm:$0xff] }
 0x204   :  { %5081 = vmatprep.subr.bf16.mxu0 %v8355_v54  ;;  %5597 = vmatprep.subr.bf16.mxu1 %v8358_v55  ;;  %v8445_v53 = vld [vmem:[%s11650_s1 + $0x1204] ss:$16 sps:$4 sm:$0xff]   ;;  %v8448_v54 = vld [vmem:[%s11650_s1 + $0x120c] ss:$16 sps:$4 sm:$0xff]   ;;  %v97_v55 = vpack.c.bf16 %v73_v52, %v49_v51  ;;  %v8527_v51 = vld [vmem:[%s11650_s1 + $0x13c0] ss:$16 sps:$4 sm:$0xff]  }
 0x205   :  { %5111 = vmatprep.mubr.bf16.mxu0 %v98_v56  ;;  %5627 = vmatprep.mubr.bf16.mxu1 %v98_v56  ;;  %v52_v56 = vld [vmem:[%s11651_s0 + $0x98] sm:$0xff] }
 0x206   :  { %v8530_v52 = vld [vmem:[%s11650_s1 + $0x13c8] ss:$16 sps:$4 sm:$0xff]  }
 0x207   :  { %5082 = vmatpush1.bf16.msra.mxu0 %v8353_v57  ;;  %5598 = vmatpush1.bf16.msra.mxu1 %v8356_v58  ;;  %v76_v57 = vld [vmem:[%s11651_s0 + $0x158] sm:$0xff]  ;;  %v8443_v58 = vld [vmem:[%s11650_s1 + $0x1200] ss:$16 sps:$4 sm:$0xff]  }
 0x208   :  { %5083 = vmatprep.subr.bf16.mxu0 %v8361_v59  ;;  %5599 = vmatprep.subr.bf16.mxu1 %v8364_v60  ;;  %v8446_v59 = vld [vmem:[%s11650_s1 + $0x1208] ss:$16 sps:$4 sm:$0xff]   ;;  %v8451_v60 = vld [vmem:[%s11650_s1 + $0x1224] ss:$16 sps:$4 sm:$0xff]  }
 0x20b   :  { %5084 = vmatpush1.bf16.msra.mxu0 %v8359_v61  ;;  %5600 = vmatpush1.bf16.msra.mxu1 %v8362_v62  ;;  %v8454_v61 = vld [vmem:[%s11650_s1 + $0x122c] ss:$16 sps:$4 sm:$0xff]   ;;  %v100_v62 = vpack.c.bf16 %v76_v57, %v52_v56  ;;  %v8536_v56 = vld [vmem:[%s11650_s1 + $0x13e8] ss:$16 sps:$4 sm:$0xff]   ;;  %v51_v57 = vld [vmem:[%s11651_s0 + $0x90] sm:$0xff] }
 0x20c   :  { %5085 = vmatprep.subr.bf16.mxu0 %v8367_v63  ;;  %5601 = vmatprep.subr.bf16.mxu1 %v8370_v0  ;;  %v8449_v63 = vld [vmem:[%s11650_s1 + $0x1220] ss:$16 sps:$4 sm:$0xff]   ;;  %v8452_v0 = vld [vmem:[%s11650_s1 + $0x1228] ss:$16 sps:$4 sm:$0xff]  }
 0x20f   :  { %5086 = vmatpush1.bf16.msra.mxu0 %v8365_v1  ;;  %5602 = vmatpush1.bf16.msra.mxu1 %v8368_v2  ;;  %v8457_v1 = vld [vmem:[%s11650_s1 + $0x1244] ss:$16 sps:$4 sm:$0xff]   ;;  %v8460_v2 = vld [vmem:[%s11650_s1 + $0x124c] ss:$16 sps:$4 sm:$0xff]  }
 0x210   :  { %5087 = vmatprep.subr.bf16.mxu0 %v8373_v3  ;;  %5603 = vmatprep.subr.bf16.mxu1 %v8376_v4  ;;  %v8455_v3 = vld [vmem:[%s11650_s1 + $0x1240] ss:$16 sps:$4 sm:$0xff]   ;;  %v8458_v4 = vld [vmem:[%s11650_s1 + $0x1248] ss:$16 sps:$4 sm:$0xff]  }
 0x213   :  { %5088 = vmatpush1.bf16.msra.mxu0 %v8371_v5  ;;  %5604 = vmatpush1.bf16.msra.mxu1 %v8374_v6  ;;  %v8463_v5 = vld [vmem:[%s11650_s1 + $0x1264] ss:$16 sps:$4 sm:$0xff]   ;;  %v8466_v6 = vld [vmem:[%s11650_s1 + $0x126c] ss:$16 sps:$4 sm:$0xff]  }
 0x214   :  { %5089 = vmatprep.subr.bf16.mxu0 %v8379_v7  ;;  %5605 = vmatprep.subr.bf16.mxu1 %v8382_v8  ;;  %v8461_v7 = vld [vmem:[%s11650_s1 + $0x1260] ss:$16 sps:$4 sm:$0xff]   ;;  %v8464_v8 = vld [vmem:[%s11650_s1 + $0x1268] ss:$16 sps:$4 sm:$0xff]  }
 0x217   :  { %5090 = vmatpush1.bf16.msra.mxu0 %v8377_v9  ;;  %5606 = vmatpush1.bf16.msra.mxu1 %v8380_v10  ;;  %v8469_v9 = vld [vmem:[%s11650_s1 + $0x1284] ss:$16 sps:$4 sm:$0xff]   ;;  %v8472_v10 = vld [vmem:[%s11650_s1 + $0x128c] ss:$16 sps:$4 sm:$0xff]  }
 0x218   :  { %5091 = vmatprep.subr.bf16.mxu0 %v8385_v11  ;;  %5607 = vmatprep.subr.bf16.mxu1 %v8388_v12  ;;  %v8467_v11 = vld [vmem:[%s11650_s1 + $0x1280] ss:$16 sps:$4 sm:$0xff]   ;;  %v8470_v12 = vld [vmem:[%s11650_s1 + $0x1288] ss:$16 sps:$4 sm:$0xff]  }
 0x21b   :  { %5092 = vmatpush1.bf16.msra.mxu0 %v8383_v13  ;;  %5608 = vmatpush1.bf16.msra.mxu1 %v8386_v14  ;;  %v8475_v13 = vld [vmem:[%s11650_s1 + $0x12a4] ss:$16 sps:$4 sm:$0xff]   ;;  %v8478_v14 = vld [vmem:[%s11650_s1 + $0x12ac] ss:$16 sps:$4 sm:$0xff]  }
 0x21c   :  { %5093 = vmatprep.subr.bf16.mxu0 %v8391_v15  ;;  %5609 = vmatprep.subr.bf16.mxu1 %v8394_v16  ;;  %v8473_v15 = vld [vmem:[%s11650_s1 + $0x12a0] ss:$16 sps:$4 sm:$0xff]   ;;  %v8476_v16 = vld [vmem:[%s11650_s1 + $0x12a8] ss:$16 sps:$4 sm:$0xff]  }
 0x21f   :  { %5094 = vmatpush1.bf16.msra.mxu0 %v8389_v17  ;;  %5610 = vmatpush1.bf16.msra.mxu1 %v8392_v18  ;;  %v8481_v17 = vld [vmem:[%s11650_s1 + $0x12c4] ss:$16 sps:$4 sm:$0xff]   ;;  %v8484_v18 = vld [vmem:[%s11650_s1 + $0x12cc] ss:$16 sps:$4 sm:$0xff]  }
 0x220   :  { %5095 = vmatprep.subr.bf16.mxu0 %v8397_v19  ;;  %5611 = vmatprep.subr.bf16.mxu1 %v8400_v20  ;;  %v8479_v19 = vld [vmem:[%s11650_s1 + $0x12c0] ss:$16 sps:$4 sm:$0xff]   ;;  %v8482_v20 = vld [vmem:[%s11650_s1 + $0x12c8] ss:$16 sps:$4 sm:$0xff]  }
 0x223   :  { %5096 = vmatpush1.bf16.msra.mxu0 %v8395_v21  ;;  %5612 = vmatpush1.bf16.msra.mxu1 %v8398_v22  ;;  %v8487_v21 = vld [vmem:[%s11650_s1 + $0x12e4] ss:$16 sps:$4 sm:$0xff]   ;;  %v8490_v22 = vld [vmem:[%s11650_s1 + $0x12ec] ss:$16 sps:$4 sm:$0xff]  }
 0x224   :  { %5097 = vmatprep.subr.bf16.mxu0 %v8403_v23  ;;  %5613 = vmatprep.subr.bf16.mxu1 %v8406_v24  ;;  %v8485_v23 = vld [vmem:[%s11650_s1 + $0x12e0] ss:$16 sps:$4 sm:$0xff]   ;;  %v8488_v24 = vld [vmem:[%s11650_s1 + $0x12e8] ss:$16 sps:$4 sm:$0xff]  }
 0x227   :  { %5098 = vmatpush1.bf16.msra.mxu0 %v8401_v25  ;;  %5614 = vmatpush1.bf16.msra.mxu1 %v8404_v26  ;;  %v8493_v25 = vld [vmem:[%s11650_s1 + $0x1304] ss:$16 sps:$4 sm:$0xff]   ;;  %v8496_v26 = vld [vmem:[%s11650_s1 + $0x130c] ss:$16 sps:$4 sm:$0xff]  }
 0x228   :  { %5099 = vmatprep.subr.bf16.mxu0 %v8409_v27  ;;  %5615 = vmatprep.subr.bf16.mxu1 %v8412_v28  ;;  %v8491_v27 = vld [vmem:[%s11650_s1 + $0x1300] ss:$16 sps:$4 sm:$0xff]   ;;  %v8494_v28 = vld [vmem:[%s11650_s1 + $0x1308] ss:$16 sps:$4 sm:$0xff]  }
 0x22b   :  { %5100 = vmatpush1.bf16.msra.mxu0 %v8407_v29  ;;  %5616 = vmatpush1.bf16.msra.mxu1 %v8410_v30  ;;  %v8499_v29 = vld [vmem:[%s11650_s1 + $0x1324] ss:$16 sps:$4 sm:$0xff]   ;;  %v8502_v30 = vld [vmem:[%s11650_s1 + $0x132c] ss:$16 sps:$4 sm:$0xff]  }
 0x22c   :  { %5101 = vmatprep.subr.bf16.mxu0 %v8415_v31  ;;  %5617 = vmatprep.subr.bf16.mxu1 %v8418_v32  ;;  %v8497_v31 = vld [vmem:[%s11650_s1 + $0x1320] ss:$16 sps:$4 sm:$0xff]   ;;  %v8500_v32 = vld [vmem:[%s11650_s1 + $0x1328] ss:$16 sps:$4 sm:$0xff]  }
 0x22f   :  { %5102 = vmatpush1.bf16.msra.mxu0 %v8413_v33  ;;  %5618 = vmatpush1.bf16.msra.mxu1 %v8416_v34  ;;  %v8505_v33 = vld [vmem:[%s11650_s1 + $0x1344] ss:$16 sps:$4 sm:$0xff]   ;;  %v8508_v34 = vld [vmem:[%s11650_s1 + $0x134c] ss:$16 sps:$4 sm:$0xff]  }
 0x230   :  { %5103 = vmatprep.subr.bf16.mxu0 %v8421_v35  ;;  %5619 = vmatprep.subr.bf16.mxu1 %v8424_v36  ;;  %v8503_v35 = vld [vmem:[%s11650_s1 + $0x1340] ss:$16 sps:$4 sm:$0xff]   ;;  %v8506_v36 = vld [vmem:[%s11650_s1 + $0x1348] ss:$16 sps:$4 sm:$0xff]  }
 0x233   :  { %5104 = vmatpush1.bf16.msra.mxu0 %v8419_v37  ;;  %5620 = vmatpush1.bf16.msra.mxu1 %v8422_v38  ;;  %v8511_v37 = vld [vmem:[%s11650_s1 + $0x1364] ss:$16 sps:$4 sm:$0xff]   ;;  %v8514_v38 = vld [vmem:[%s11650_s1 + $0x136c] ss:$16 sps:$4 sm:$0xff]  }
 0x234   :  { %5105 = vmatprep.subr.bf16.mxu0 %v8427_v39  ;;  %5621 = vmatprep.subr.bf16.mxu1 %v8430_v40  ;;  %v8509_v39 = vld [vmem:[%s11650_s1 + $0x1360] ss:$16 sps:$4 sm:$0xff]   ;;  %v8512_v40 = vld [vmem:[%s11650_s1 + $0x1368] ss:$16 sps:$4 sm:$0xff]  }
 0x237   :  { %5106 = vmatpush1.bf16.msra.mxu0 %v8425_v41  ;;  %5622 = vmatpush1.bf16.msra.mxu1 %v8428_v42  ;;  %v8517_v41 = vld [vmem:[%s11650_s1 + $0x1384] ss:$16 sps:$4 sm:$0xff]   ;;  %v8520_v42 = vld [vmem:[%s11650_s1 + $0x138c] ss:$16 sps:$4 sm:$0xff]  }
 0x238   :  { %5107 = vmatprep.subr.bf16.mxu0 %v8433_v43  ;;  %5623 = vmatprep.subr.bf16.mxu1 %v8436_v44  ;;  %v8515_v43 = vld [vmem:[%s11650_s1 + $0x1380] ss:$16 sps:$4 sm:$0xff]   ;;  %v8518_v44 = vld [vmem:[%s11650_s1 + $0x1388] ss:$16 sps:$4 sm:$0xff]  }
 0x23b   :  { %5108 = vmatpush1.bf16.msra.mxu0 %v8431_v45  ;;  %5624 = vmatpush1.bf16.msra.mxu1 %v8434_v46  ;;  %v8523_v45 = vld [vmem:[%s11650_s1 + $0x13a4] ss:$16 sps:$4 sm:$0xff]   ;;  %v8526_v46 = vld [vmem:[%s11650_s1 + $0x13ac] ss:$16 sps:$4 sm:$0xff]  }
 0x23c   :  { %5109 = vmatprep.subr.bf16.mxu0 %v8439_v47  ;;  %5625 = vmatprep.subr.bf16.mxu1 %v8442_v48  ;;  %v8521_v47 = vld [vmem:[%s11650_s1 + $0x13a0] ss:$16 sps:$4 sm:$0xff]   ;;  %v8524_v48 = vld [vmem:[%s11650_s1 + $0x13a8] ss:$16 sps:$4 sm:$0xff]  }
 0x23f   :  { %5110 = vmatpush1.bf16.msra.mxu0 %v8437_v49  ;;  %5626 = vmatpush1.bf16.msra.mxu1 %v8440_v50  ;;  %v8529_v49 = vld [vmem:[%s11650_s1 + $0x13c4] ss:$16 sps:$4 sm:$0xff]   ;;  %v8532_v50 = vld [vmem:[%s11650_s1 + $0x13cc] ss:$16 sps:$4 sm:$0xff]  }
 0x240   :  { %5122 = vmatprep.subr.bf16.mxu0 %v8445_v53  ;;  %5638 = vmatprep.subr.bf16.mxu1 %v8448_v54  ;;  %v8535_v53 = vld [vmem:[%s11650_s1 + $0x13e4] ss:$16 sps:$4 sm:$0xff]   ;;  %v8538_v54 = vld [vmem:[%s11650_s1 + $0x13ec] ss:$16 sps:$4 sm:$0xff]  }
 0x242   :  { %5112 = vmatmul.mubr.bf16.vlgmr.msra.gmra.mrb[0].mxu0 %v97_v55  ;;  %5628 = vmatmul.mubr.bf16.vlgmr.msra.gmra.mrb[0].mxu1 %v97_v55  ;;  %v8533_v55 = vld [vmem:[%s11650_s1 + $0x13e0] ss:$16 sps:$4 sm:$0xff]  }
 0x243   :  { %5123 = vmatpush1.bf16.msra.mxu0 %v8443_v58  ;;  %5639 = vmatpush1.bf16.msra.mxu1 %v8446_v59  ;;  %v75_v58 = vld [vmem:[%s11651_s0 + $0x150] sm:$0xff] }
 0x244   :  { %5124 = vmatprep.subr.bf16.mxu0 %v8451_v60  ;;  %5640 = vmatprep.subr.bf16.mxu1 %v8454_v61  ;;  %v8541_v59 = vld [vmem:[%s11650_s1 + $0x1404] ss:$16 sps:$4 sm:$0xff]   ;;  %v8544_v60 = vld [vmem:[%s11650_s1 + $0x140c] ss:$16 sps:$4 sm:$0xff]   ;;  %v99_v61 = vpack.c.bf16 %v75_v58, %v51_v57  ;;  %v8623_v57 = vld [vmem:[%s11650_s1 + $0x15c0] ss:$16 sps:$4 sm:$0xff]  }
 0x245   :  { %5154 = vmatprep.mubr.bf16.mxu0 %v100_v62  ;;  %5670 = vmatprep.mubr.bf16.mxu1 %v100_v62  ;;  %v54_v62 = vld [vmem:[%s11651_s0 + $0xa8] sm:$0xff] }
 0x246   :  { %v8626_v58 = vld [vmem:[%s11650_s1 + $0x15c8] ss:$16 sps:$4 sm:$0xff]  }
 0x247   :  { %5125 = vmatpush1.bf16.msra.mxu0 %v8449_v63  ;;  %5641 = vmatpush1.bf16.msra.mxu1 %v8452_v0  ;;  %v78_v63 = vld [vmem:[%s11651_s0 + $0x168] sm:$0xff]  ;;  %v8539_v0 = vld [vmem:[%s11650_s1 + $0x1400] ss:$16 sps:$4 sm:$0xff]  }
 0x248   :  { %5126 = vmatprep.subr.bf16.mxu0 %v8457_v1  ;;  %5642 = vmatprep.subr.bf16.mxu1 %v8460_v2  ;;  %v8542_v1 = vld [vmem:[%s11650_s1 + $0x1408] ss:$16 sps:$4 sm:$0xff]   ;;  %v8547_v2 = vld [vmem:[%s11650_s1 + $0x1424] ss:$16 sps:$4 sm:$0xff]  }
 0x24b   :  { %5127 = vmatpush1.bf16.msra.mxu0 %v8455_v3  ;;  %5643 = vmatpush1.bf16.msra.mxu1 %v8458_v4  ;;  %v8550_v3 = vld [vmem:[%s11650_s1 + $0x142c] ss:$16 sps:$4 sm:$0xff]   ;;  %v102_v4 = vpack.c.bf16 %v78_v63, %v54_v62  ;;  %v8632_v62 = vld [vmem:[%s11650_s1 + $0x15e8] ss:$16 sps:$4 sm:$0xff]   ;;  %v53_v63 = vld [vmem:[%s11651_s0 + $0xa0] sm:$0xff] }
 0x24c   :  { %5128 = vmatprep.subr.bf16.mxu0 %v8463_v5  ;;  %5644 = vmatprep.subr.bf16.mxu1 %v8466_v6  ;;  %v8545_v5 = vld [vmem:[%s11650_s1 + $0x1420] ss:$16 sps:$4 sm:$0xff]   ;;  %v8548_v6 = vld [vmem:[%s11650_s1 + $0x1428] ss:$16 sps:$4 sm:$0xff]  }
 0x24f   :  { %5129 = vmatpush1.bf16.msra.mxu0 %v8461_v7  ;;  %5645 = vmatpush1.bf16.msra.mxu1 %v8464_v8  ;;  %v8553_v7 = vld [vmem:[%s11650_s1 + $0x1444] ss:$16 sps:$4 sm:$0xff]   ;;  %v8556_v8 = vld [vmem:[%s11650_s1 + $0x144c] ss:$16 sps:$4 sm:$0xff]  }
 0x250   :  { %5130 = vmatprep.subr.bf16.mxu0 %v8469_v9  ;;  %5646 = vmatprep.subr.bf16.mxu1 %v8472_v10  ;;  %v8551_v9 = vld [vmem:[%s11650_s1 + $0x1440] ss:$16 sps:$4 sm:$0xff]   ;;  %v8554_v10 = vld [vmem:[%s11650_s1 + $0x1448] ss:$16 sps:$4 sm:$0xff]  }
 0x253   :  { %5131 = vmatpush1.bf16.msra.mxu0 %v8467_v11  ;;  %5647 = vmatpush1.bf16.msra.mxu1 %v8470_v12  ;;  %v8559_v11 = vld [vmem:[%s11650_s1 + $0x1464] ss:$16 sps:$4 sm:$0xff]   ;;  %v8562_v12 = vld [vmem:[%s11650_s1 + $0x146c] ss:$16 sps:$4 sm:$0xff]  }
 0x254   :  { %5132 = vmatprep.subr.bf16.mxu0 %v8475_v13  ;;  %5648 = vmatprep.subr.bf16.mxu1 %v8478_v14  ;;  %v8557_v13 = vld [vmem:[%s11650_s1 + $0x1460] ss:$16 sps:$4 sm:$0xff]   ;;  %v8560_v14 = vld [vmem:[%s11650_s1 + $0x1468] ss:$16 sps:$4 sm:$0xff]  }
 0x257   :  { %5133 = vmatpush1.bf16.msra.mxu0 %v8473_v15  ;;  %5649 = vmatpush1.bf16.msra.mxu1 %v8476_v16  ;;  %v8565_v15 = vld [vmem:[%s11650_s1 + $0x1484] ss:$16 sps:$4 sm:$0xff]   ;;  %v8568_v16 = vld [vmem:[%s11650_s1 + $0x148c] ss:$16 sps:$4 sm:$0xff]  }
 0x258   :  { %5134 = vmatprep.subr.bf16.mxu0 %v8481_v17  ;;  %5650 = vmatprep.subr.bf16.mxu1 %v8484_v18  ;;  %v8563_v17 = vld [vmem:[%s11650_s1 + $0x1480] ss:$16 sps:$4 sm:$0xff]   ;;  %v8566_v18 = vld [vmem:[%s11650_s1 + $0x1488] ss:$16 sps:$4 sm:$0xff]  }
 0x25b   :  { %5135 = vmatpush1.bf16.msra.mxu0 %v8479_v19  ;;  %5651 = vmatpush1.bf16.msra.mxu1 %v8482_v20  ;;  %v8571_v19 = vld [vmem:[%s11650_s1 + $0x14a4] ss:$16 sps:$4 sm:$0xff]   ;;  %v8574_v20 = vld [vmem:[%s11650_s1 + $0x14ac] ss:$16 sps:$4 sm:$0xff]  }
 0x25c   :  { %5136 = vmatprep.subr.bf16.mxu0 %v8487_v21  ;;  %5652 = vmatprep.subr.bf16.mxu1 %v8490_v22  ;;  %v8569_v21 = vld [vmem:[%s11650_s1 + $0x14a0] ss:$16 sps:$4 sm:$0xff]   ;;  %v8572_v22 = vld [vmem:[%s11650_s1 + $0x14a8] ss:$16 sps:$4 sm:$0xff]  }
 0x25f   :  { %5137 = vmatpush1.bf16.msra.mxu0 %v8485_v23  ;;  %5653 = vmatpush1.bf16.msra.mxu1 %v8488_v24  ;;  %v8577_v23 = vld [vmem:[%s11650_s1 + $0x14c4] ss:$16 sps:$4 sm:$0xff]   ;;  %v8580_v24 = vld [vmem:[%s11650_s1 + $0x14cc] ss:$16 sps:$4 sm:$0xff]  }
 0x260   :  { %5138 = vmatprep.subr.bf16.mxu0 %v8493_v25  ;;  %5654 = vmatprep.subr.bf16.mxu1 %v8496_v26  ;;  %v8575_v25 = vld [vmem:[%s11650_s1 + $0x14c0] ss:$16 sps:$4 sm:$0xff]   ;;  %v8578_v26 = vld [vmem:[%s11650_s1 + $0x14c8] ss:$16 sps:$4 sm:$0xff]  }
 0x263   :  { %5139 = vmatpush1.bf16.msra.mxu0 %v8491_v27  ;;  %5655 = vmatpush1.bf16.msra.mxu1 %v8494_v28  ;;  %v8583_v27 = vld [vmem:[%s11650_s1 + $0x14e4] ss:$16 sps:$4 sm:$0xff]   ;;  %v8586_v28 = vld [vmem:[%s11650_s1 + $0x14ec] ss:$16 sps:$4 sm:$0xff]  }
 0x264   :  { %5140 = vmatprep.subr.bf16.mxu0 %v8499_v29  ;;  %5656 = vmatprep.subr.bf16.mxu1 %v8502_v30  ;;  %v8581_v29 = vld [vmem:[%s11650_s1 + $0x14e0] ss:$16 sps:$4 sm:$0xff]   ;;  %v8584_v30 = vld [vmem:[%s11650_s1 + $0x14e8] ss:$16 sps:$4 sm:$0xff]  }
 0x267   :  { %5141 = vmatpush1.bf16.msra.mxu0 %v8497_v31  ;;  %5657 = vmatpush1.bf16.msra.mxu1 %v8500_v32  ;;  %v8589_v31 = vld [vmem:[%s11650_s1 + $0x1504] ss:$16 sps:$4 sm:$0xff]   ;;  %v8592_v32 = vld [vmem:[%s11650_s1 + $0x150c] ss:$16 sps:$4 sm:$0xff]  }
 0x268   :  { %5142 = vmatprep.subr.bf16.mxu0 %v8505_v33  ;;  %5658 = vmatprep.subr.bf16.mxu1 %v8508_v34  ;;  %v8587_v33 = vld [vmem:[%s11650_s1 + $0x1500] ss:$16 sps:$4 sm:$0xff]   ;;  %v8590_v34 = vld [vmem:[%s11650_s1 + $0x1508] ss:$16 sps:$4 sm:$0xff]  }
 0x26b   :  { %5143 = vmatpush1.bf16.msra.mxu0 %v8503_v35  ;;  %5659 = vmatpush1.bf16.msra.mxu1 %v8506_v36  ;;  %v8595_v35 = vld [vmem:[%s11650_s1 + $0x1524] ss:$16 sps:$4 sm:$0xff]   ;;  %v8598_v36 = vld [vmem:[%s11650_s1 + $0x152c] ss:$16 sps:$4 sm:$0xff]  }
 0x26c   :  { %5144 = vmatprep.subr.bf16.mxu0 %v8511_v37  ;;  %5660 = vmatprep.subr.bf16.mxu1 %v8514_v38  ;;  %v8593_v37 = vld [vmem:[%s11650_s1 + $0x1520] ss:$16 sps:$4 sm:$0xff]   ;;  %v8596_v38 = vld [vmem:[%s11650_s1 + $0x1528] ss:$16 sps:$4 sm:$0xff]  }
 0x26f   :  { %5145 = vmatpush1.bf16.msra.mxu0 %v8509_v39  ;;  %5661 = vmatpush1.bf16.msra.mxu1 %v8512_v40  ;;  %v8601_v39 = vld [vmem:[%s11650_s1 + $0x1544] ss:$16 sps:$4 sm:$0xff]   ;;  %v8604_v40 = vld [vmem:[%s11650_s1 + $0x154c] ss:$16 sps:$4 sm:$0xff]  }
 0x270   :  { %5146 = vmatprep.subr.bf16.mxu0 %v8517_v41  ;;  %5662 = vmatprep.subr.bf16.mxu1 %v8520_v42  ;;  %v8599_v41 = vld [vmem:[%s11650_s1 + $0x1540] ss:$16 sps:$4 sm:$0xff]   ;;  %v8602_v42 = vld [vmem:[%s11650_s1 + $0x1548] ss:$16 sps:$4 sm:$0xff]  }
 0x273   :  { %5147 = vmatpush1.bf16.msra.mxu0 %v8515_v43  ;;  %5663 = vmatpush1.bf16.msra.mxu1 %v8518_v44  ;;  %v8607_v43 = vld [vmem:[%s11650_s1 + $0x1564] ss:$16 sps:$4 sm:$0xff]   ;;  %v8610_v44 = vld [vmem:[%s11650_s1 + $0x156c] ss:$16 sps:$4 sm:$0xff]  }
 0x274   :  { %5148 = vmatprep.subr.bf16.mxu0 %v8523_v45  ;;  %5664 = vmatprep.subr.bf16.mxu1 %v8526_v46  ;;  %v8605_v45 = vld [vmem:[%s11650_s1 + $0x1560] ss:$16 sps:$4 sm:$0xff]   ;;  %v8608_v46 = vld [vmem:[%s11650_s1 + $0x1568] ss:$16 sps:$4 sm:$0xff]  }
 0x277   :  { %5149 = vmatpush1.bf16.msra.mxu0 %v8521_v47  ;;  %5665 = vmatpush1.bf16.msra.mxu1 %v8524_v48  ;;  %v8613_v47 = vld [vmem:[%s11650_s1 + $0x1584] ss:$16 sps:$4 sm:$0xff]   ;;  %v8616_v48 = vld [vmem:[%s11650_s1 + $0x158c] ss:$16 sps:$4 sm:$0xff]  }
 0x278   :  { %5150 = vmatprep.subr.bf16.mxu0 %v8529_v49  ;;  %5666 = vmatprep.subr.bf16.mxu1 %v8532_v50  ;;  %v8611_v49 = vld [vmem:[%s11650_s1 + $0x1580] ss:$16 sps:$4 sm:$0xff]   ;;  %v8614_v50 = vld [vmem:[%s11650_s1 + $0x1588] ss:$16 sps:$4 sm:$0xff]  }
 0x27b   :  { %5151 = vmatpush1.bf16.msra.mxu0 %v8527_v51  ;;  %5667 = vmatpush1.bf16.msra.mxu1 %v8530_v52  ;;  %v8619_v51 = vld [vmem:[%s11650_s1 + $0x15a4] ss:$16 sps:$4 sm:$0xff]   ;;  %v8622_v52 = vld [vmem:[%s11650_s1 + $0x15ac] ss:$16 sps:$4 sm:$0xff]  }
 0x27c   :  { %5152 = vmatprep.subr.bf16.mxu0 %v8535_v53  ;;  %5668 = vmatprep.subr.bf16.mxu1 %v8538_v54  ;;  %v8617_v53 = vld [vmem:[%s11650_s1 + $0x15a0] ss:$16 sps:$4 sm:$0xff]   ;;  %v8620_v54 = vld [vmem:[%s11650_s1 + $0x15a8] ss:$16 sps:$4 sm:$0xff]  }
 0x27f   :  { %5153 = vmatpush1.bf16.msra.mxu0 %v8533_v55  ;;  %5669 = vmatpush1.bf16.msra.mxu1 %v8536_v56  ;;  %v8625_v55 = vld [vmem:[%s11650_s1 + $0x15c4] ss:$16 sps:$4 sm:$0xff]   ;;  %v8628_v56 = vld [vmem:[%s11650_s1 + $0x15cc] ss:$16 sps:$4 sm:$0xff]  }
 0x280   :  { %5165 = vmatprep.subr.bf16.mxu0 %v8541_v59  ;;  %5681 = vmatprep.subr.bf16.mxu1 %v8544_v60  ;;  %v8631_v59 = vld [vmem:[%s11650_s1 + $0x15e4] ss:$16 sps:$4 sm:$0xff]   ;;  %v8634_v60 = vld [vmem:[%s11650_s1 + $0x15ec] ss:$16 sps:$4 sm:$0xff]  }
 0x282   :  { %5155 = vmatmul.mubr.bf16.vlgmr.msra.gmra.mrb[0].mxu0 %v99_v61  ;;  %5671 = vmatmul.mubr.bf16.vlgmr.msra.gmra.mrb[0].mxu1 %v99_v61  ;;  %v8629_v61 = vld [vmem:[%s11650_s1 + $0x15e0] ss:$16 sps:$4 sm:$0xff]  }
 0x283   :  { %5166 = vmatpush1.bf16.msra.mxu0 %v8539_v0  ;;  %5682 = vmatpush1.bf16.msra.mxu1 %v8542_v1  ;;  %v77_v0 = vld [vmem:[%s11651_s0 + $0x160] sm:$0xff] }
 0x284   :  { %5167 = vmatprep.subr.bf16.mxu0 %v8547_v2  ;;  %5683 = vmatprep.subr.bf16.mxu1 %v8550_v3  ;;  %v8637_v1 = vld [vmem:[%s11650_s1 + $0x1604] ss:$16 sps:$4 sm:$0xff]   ;;  %v8640_v2 = vld [vmem:[%s11650_s1 + $0x160c] ss:$16 sps:$4 sm:$0xff]   ;;  %v101_v3 = vpack.c.bf16 %v77_v0, %v53_v63  ;;  %v8719_v63 = vld [vmem:[%s11650_s1 + $0x17c0] ss:$16 sps:$4 sm:$0xff]  }
 0x285   :  { %5197 = vmatprep.mubr.bf16.mxu0 %v102_v4  ;;  %5713 = vmatprep.mubr.bf16.mxu1 %v102_v4  ;;  %v56_v4 = vld [vmem:[%s11651_s0 + $0xb8] sm:$0xff] }
 0x286   :  { %v8722_v0 = vld [vmem:[%s11650_s1 + $0x17c8] ss:$16 sps:$4 sm:$0xff]  }
 0x287   :  { %5168 = vmatpush1.bf16.msra.mxu0 %v8545_v5  ;;  %5684 = vmatpush1.bf16.msra.mxu1 %v8548_v6  ;;  %v80_v5 = vld [vmem:[%s11651_s0 + $0x178] sm:$0xff]  ;;  %v8635_v6 = vld [vmem:[%s11650_s1 + $0x1600] ss:$16 sps:$4 sm:$0xff]  }
 0x288   :  { %5169 = vmatprep.subr.bf16.mxu0 %v8553_v7  ;;  %5685 = vmatprep.subr.bf16.mxu1 %v8556_v8  ;;  %v8638_v7 = vld [vmem:[%s11650_s1 + $0x1608] ss:$16 sps:$4 sm:$0xff]   ;;  %v8643_v8 = vld [vmem:[%s11650_s1 + $0x1624] ss:$16 sps:$4 sm:$0xff]  }
 0x28b   :  { %5170 = vmatpush1.bf16.msra.mxu0 %v8551_v9  ;;  %5686 = vmatpush1.bf16.msra.mxu1 %v8554_v10  ;;  %v8646_v9 = vld [vmem:[%s11650_s1 + $0x162c] ss:$16 sps:$4 sm:$0xff]   ;;  %v104_v10 = vpack.c.bf16 %v80_v5, %v56_v4  ;;  %v8728_v4 = vld [vmem:[%s11650_s1 + $0x17e8] ss:$16 sps:$4 sm:$0xff]   ;;  %v55_v5 = vld [vmem:[%s11651_s0 + $0xb0] sm:$0xff] }
 0x28c   :  { %5171 = vmatprep.subr.bf16.mxu0 %v8559_v11  ;;  %5687 = vmatprep.subr.bf16.mxu1 %v8562_v12  ;;  %v8641_v11 = vld [vmem:[%s11650_s1 + $0x1620] ss:$16 sps:$4 sm:$0xff]   ;;  %v8644_v12 = vld [vmem:[%s11650_s1 + $0x1628] ss:$16 sps:$4 sm:$0xff]  }
 0x28f   :  { %5172 = vmatpush1.bf16.msra.mxu0 %v8557_v13  ;;  %5688 = vmatpush1.bf16.msra.mxu1 %v8560_v14  ;;  %v8649_v13 = vld [vmem:[%s11650_s1 + $0x1644] ss:$16 sps:$4 sm:$0xff]   ;;  %v8652_v14 = vld [vmem:[%s11650_s1 + $0x164c] ss:$16 sps:$4 sm:$0xff]  }
 0x290   :  { %5173 = vmatprep.subr.bf16.mxu0 %v8565_v15  ;;  %5689 = vmatprep.subr.bf16.mxu1 %v8568_v16  ;;  %v8647_v15 = vld [vmem:[%s11650_s1 + $0x1640] ss:$16 sps:$4 sm:$0xff]   ;;  %v8650_v16 = vld [vmem:[%s11650_s1 + $0x1648] ss:$16 sps:$4 sm:$0xff]  }
 0x293   :  { %5174 = vmatpush1.bf16.msra.mxu0 %v8563_v17  ;;  %5690 = vmatpush1.bf16.msra.mxu1 %v8566_v18  ;;  %v8655_v17 = vld [vmem:[%s11650_s1 + $0x1664] ss:$16 sps:$4 sm:$0xff]   ;;  %v8658_v18 = vld [vmem:[%s11650_s1 + $0x166c] ss:$16 sps:$4 sm:$0xff]  }
 0x294   :  { %5175 = vmatprep.subr.bf16.mxu0 %v8571_v19  ;;  %5691 = vmatprep.subr.bf16.mxu1 %v8574_v20  ;;  %v8653_v19 = vld [vmem:[%s11650_s1 + $0x1660] ss:$16 sps:$4 sm:$0xff]   ;;  %v8656_v20 = vld [vmem:[%s11650_s1 + $0x1668] ss:$16 sps:$4 sm:$0xff]  }
 0x297   :  { %5176 = vmatpush1.bf16.msra.mxu0 %v8569_v21  ;;  %5692 = vmatpush1.bf16.msra.mxu1 %v8572_v22  ;;  %v8661_v21 = vld [vmem:[%s11650_s1 + $0x1684] ss:$16 sps:$4 sm:$0xff]   ;;  %v8664_v22 = vld [vmem:[%s11650_s1 + $0x168c] ss:$16 sps:$4 sm:$0xff]  }
 0x298   :  { %5177 = vmatprep.subr.bf16.mxu0 %v8577_v23  ;;  %5693 = vmatprep.subr.bf16.mxu1 %v8580_v24  ;;  %v8659_v23 = vld [vmem:[%s11650_s1 + $0x1680] ss:$16 sps:$4 sm:$0xff]   ;;  %v8662_v24 = vld [vmem:[%s11650_s1 + $0x1688] ss:$16 sps:$4 sm:$0xff]  }
 0x29b   :  { %5178 = vmatpush1.bf16.msra.mxu0 %v8575_v25  ;;  %5694 = vmatpush1.bf16.msra.mxu1 %v8578_v26  ;;  %v8667_v25 = vld [vmem:[%s11650_s1 + $0x16a4] ss:$16 sps:$4 sm:$0xff]   ;;  %v8670_v26 = vld [vmem:[%s11650_s1 + $0x16ac] ss:$16 sps:$4 sm:$0xff]  }
 0x29c   :  { %5179 = vmatprep.subr.bf16.mxu0 %v8583_v27  ;;  %5695 = vmatprep.subr.bf16.mxu1 %v8586_v28  ;;  %v8665_v27 = vld [vmem:[%s11650_s1 + $0x16a0] ss:$16 sps:$4 sm:$0xff]   ;;  %v8668_v28 = vld [vmem:[%s11650_s1 + $0x16a8] ss:$16 sps:$4 sm:$0xff]  }
 0x29f   :  { %5180 = vmatpush1.bf16.msra.mxu0 %v8581_v29  ;;  %5696 = vmatpush1.bf16.msra.mxu1 %v8584_v30  ;;  %v8673_v29 = vld [vmem:[%s11650_s1 + $0x16c4] ss:$16 sps:$4 sm:$0xff]   ;;  %v8676_v30 = vld [vmem:[%s11650_s1 + $0x16cc] ss:$16 sps:$4 sm:$0xff]  }
 0x2a0   :  { %5181 = vmatprep.subr.bf16.mxu0 %v8589_v31  ;;  %5697 = vmatprep.subr.bf16.mxu1 %v8592_v32  ;;  %v8671_v31 = vld [vmem:[%s11650_s1 + $0x16c0] ss:$16 sps:$4 sm:$0xff]   ;;  %v8674_v32 = vld [vmem:[%s11650_s1 + $0x16c8] ss:$16 sps:$4 sm:$0xff]  }
 0x2a3   :  { %5182 = vmatpush1.bf16.msra.mxu0 %v8587_v33  ;;  %5698 = vmatpush1.bf16.msra.mxu1 %v8590_v34  ;;  %v8679_v33 = vld [vmem:[%s11650_s1 + $0x16e4] ss:$16 sps:$4 sm:$0xff]   ;;  %v8682_v34 = vld [vmem:[%s11650_s1 + $0x16ec] ss:$16 sps:$4 sm:$0xff]  }
 0x2a4   :  { %5183 = vmatprep.subr.bf16.mxu0 %v8595_v35  ;;  %5699 = vmatprep.subr.bf16.mxu1 %v8598_v36  ;;  %v8677_v35 = vld [vmem:[%s11650_s1 + $0x16e0] ss:$16 sps:$4 sm:$0xff]   ;;  %v8680_v36 = vld [vmem:[%s11650_s1 + $0x16e8] ss:$16 sps:$4 sm:$0xff]  }
 0x2a7   :  { %5184 = vmatpush1.bf16.msra.mxu0 %v8593_v37  ;;  %5700 = vmatpush1.bf16.msra.mxu1 %v8596_v38  ;;  %v8685_v37 = vld [vmem:[%s11650_s1 + $0x1704] ss:$16 sps:$4 sm:$0xff]   ;;  %v8688_v38 = vld [vmem:[%s11650_s1 + $0x170c] ss:$16 sps:$4 sm:$0xff]  }
 0x2a8   :  { %5185 = vmatprep.subr.bf16.mxu0 %v8601_v39  ;;  %5701 = vmatprep.subr.bf16.mxu1 %v8604_v40  ;;  %v8683_v39 = vld [vmem:[%s11650_s1 + $0x1700] ss:$16 sps:$4 sm:$0xff]   ;;  %v8686_v40 = vld [vmem:[%s11650_s1 + $0x1708] ss:$16 sps:$4 sm:$0xff]  }
 0x2ab   :  { %5186 = vmatpush1.bf16.msra.mxu0 %v8599_v41  ;;  %5702 = vmatpush1.bf16.msra.mxu1 %v8602_v42  ;;  %v8691_v41 = vld [vmem:[%s11650_s1 + $0x1724] ss:$16 sps:$4 sm:$0xff]   ;;  %v8694_v42 = vld [vmem:[%s11650_s1 + $0x172c] ss:$16 sps:$4 sm:$0xff]  }
 0x2ac   :  { %5187 = vmatprep.subr.bf16.mxu0 %v8607_v43  ;;  %5703 = vmatprep.subr.bf16.mxu1 %v8610_v44  ;;  %v8689_v43 = vld [vmem:[%s11650_s1 + $0x1720] ss:$16 sps:$4 sm:$0xff]   ;;  %v8692_v44 = vld [vmem:[%s11650_s1 + $0x1728] ss:$16 sps:$4 sm:$0xff]  }
 0x2af   :  { %5188 = vmatpush1.bf16.msra.mxu0 %v8605_v45  ;;  %5704 = vmatpush1.bf16.msra.mxu1 %v8608_v46  ;;  %v8697_v45 = vld [vmem:[%s11650_s1 + $0x1744] ss:$16 sps:$4 sm:$0xff]   ;;  %v8700_v46 = vld [vmem:[%s11650_s1 + $0x174c] ss:$16 sps:$4 sm:$0xff]  }
 0x2b0   :  { %5189 = vmatprep.subr.bf16.mxu0 %v8613_v47  ;;  %5705 = vmatprep.subr.bf16.mxu1 %v8616_v48  ;;  %v8695_v47 = vld [vmem:[%s11650_s1 + $0x1740] ss:$16 sps:$4 sm:$0xff]   ;;  %v8698_v48 = vld [vmem:[%s11650_s1 + $0x1748] ss:$16 sps:$4 sm:$0xff]  }
 0x2b3   :  { %5190 = vmatpush1.bf16.msra.mxu0 %v8611_v49  ;;  %5706 = vmatpush1.bf16.msra.mxu1 %v8614_v50  ;;  %v8703_v49 = vld [vmem:[%s11650_s1 + $0x1764] ss:$16 sps:$4 sm:$0xff]   ;;  %v8706_v50 = vld [vmem:[%s11650_s1 + $0x176c] ss:$16 sps:$4 sm:$0xff]  }
 0x2b4   :  { %5191 = vmatprep.subr.bf16.mxu0 %v8619_v51  ;;  %5707 = vmatprep.subr.bf16.mxu1 %v8622_v52  ;;  %v8701_v51 = vld [vmem:[%s11650_s1 + $0x1760] ss:$16 sps:$4 sm:$0xff]   ;;  %v8704_v52 = vld [vmem:[%s11650_s1 + $0x1768] ss:$16 sps:$4 sm:$0xff]  }
 0x2b7   :  { %5192 = vmatpush1.bf16.msra.mxu0 %v8617_v53  ;;  %5708 = vmatpush1.bf16.msra.mxu1 %v8620_v54  ;;  %v8709_v53 = vld [vmem:[%s11650_s1 + $0x1784] ss:$16 sps:$4 sm:$0xff]   ;;  %v8712_v54 = vld [vmem:[%s11650_s1 + $0x178c] ss:$16 sps:$4 sm:$0xff]  }
 0x2b8   :  { %5193 = vmatprep.subr.bf16.mxu0 %v8625_v55  ;;  %5709 = vmatprep.subr.bf16.mxu1 %v8628_v56  ;;  %v8707_v55 = vld [vmem:[%s11650_s1 + $0x1780] ss:$16 sps:$4 sm:$0xff]   ;;  %v8710_v56 = vld [vmem:[%s11650_s1 + $0x1788] ss:$16 sps:$4 sm:$0xff]  }
 0x2bb   :  { %5194 = vmatpush1.bf16.msra.mxu0 %v8623_v57  ;;  %5710 = vmatpush1.bf16.msra.mxu1 %v8626_v58  ;;  %v8715_v57 = vld [vmem:[%s11650_s1 + $0x17a4] ss:$16 sps:$4 sm:$0xff]   ;;  %v8718_v58 = vld [vmem:[%s11650_s1 + $0x17ac] ss:$16 sps:$4 sm:$0xff]  }
 0x2bc   :  { %5195 = vmatprep.subr.bf16.mxu0 %v8631_v59  ;;  %5711 = vmatprep.subr.bf16.mxu1 %v8634_v60  ;;  %v8713_v59 = vld [vmem:[%s11650_s1 + $0x17a0] ss:$16 sps:$4 sm:$0xff]   ;;  %v8716_v60 = vld [vmem:[%s11650_s1 + $0x17a8] ss:$16 sps:$4 sm:$0xff]  }
 0x2bf   :  { %5196 = vmatpush1.bf16.msra.mxu0 %v8629_v61  ;;  %5712 = vmatpush1.bf16.msra.mxu1 %v8632_v62  ;;  %v8721_v61 = vld [vmem:[%s11650_s1 + $0x17c4] ss:$16 sps:$4 sm:$0xff]   ;;  %v8724_v62 = vld [vmem:[%s11650_s1 + $0x17cc] ss:$16 sps:$4 sm:$0xff]  }
 0x2c0   :  { %5208 = vmatprep.subr.bf16.mxu0 %v8637_v1  ;;  %5724 = vmatprep.subr.bf16.mxu1 %v8640_v2  ;;  %v8727_v1 = vld [vmem:[%s11650_s1 + $0x17e4] ss:$16 sps:$4 sm:$0xff]   ;;  %v8730_v2 = vld [vmem:[%s11650_s1 + $0x17ec] ss:$16 sps:$4 sm:$0xff]  }
 0x2c2   :  { %5198 = vmatmul.mubr.bf16.vlgmr.msra.gmra.mrb[0].mxu0 %v101_v3  ;;  %5714 = vmatmul.mubr.bf16.vlgmr.msra.gmra.mrb[0].mxu1 %v101_v3  ;;  %v8725_v3 = vld [vmem:[%s11650_s1 + $0x17e0] ss:$16 sps:$4 sm:$0xff]  }
 0x2c3   :  { %5209 = vmatpush1.bf16.msra.mxu0 %v8635_v6  ;;  %5725 = vmatpush1.bf16.msra.mxu1 %v8638_v7  ;;  %v79_v6 = vld [vmem:[%s11651_s0 + $0x170] sm:$0xff]  ;;  %v8733_v7 = vld [vmem:[%s11652_s3 + $0x4] ss:$8 sps:$4 sm:$0xff]  }
 0x2c4   :  { %5210 = vmatprep.subr.bf16.mxu0 %v8643_v8  ;;  %5726 = vmatprep.subr.bf16.mxu1 %v8646_v9  ;;  %v103_v8 = vpack.c.bf16 %v79_v6, %v55_v5  ;;  %v8731_v9 = vld [vmem:[%s11652_s3] ss:$8 sps:$4 sm:$0xff]  }
 0x2c5   :  { %5240 = vmatprep.mubr.bf16.mxu0 %v104_v10  ;;  %5756 = vmatprep.mubr.bf16.mxu1 %v104_v10  ;;  %v8736_v10 = vld [vmem:[%s11652_s3 + $0x14] ss:$8 sps:$4 sm:$0xff]  }
 0x2c7   :  { %5211 = vmatpush1.bf16.msra.mxu0 %v8641_v11  ;;  %5727 = vmatpush1.bf16.msra.mxu1 %v8644_v12  ;;  %v8734_v11 = vld [vmem:[%s11652_s3 + $0x10] ss:$8 sps:$4 sm:$0xff]   ;;  %v8739_v12 = vld [vmem:[%s11652_s3 + $0x24] ss:$8 sps:$4 sm:$0xff]  }
 0x2c8   :  { %5212 = vmatprep.subr.bf16.mxu0 %v8649_v13  ;;  %5728 = vmatprep.subr.bf16.mxu1 %v8652_v14  ;;  %v8737_v13 = vld [vmem:[%s11652_s3 + $0x20] ss:$8 sps:$4 sm:$0xff]   ;;  %v8742_v14 = vld [vmem:[%s11652_s3 + $0x34] ss:$8 sps:$4 sm:$0xff]  }
 0x2cb   :  { %5213 = vmatpush1.bf16.msra.mxu0 %v8647_v15  ;;  %5729 = vmatpush1.bf16.msra.mxu1 %v8650_v16  ;;  %v8740_v15 = vld [vmem:[%s11652_s3 + $0x30] ss:$8 sps:$4 sm:$0xff]   ;;  %v8745_v16 = vld [vmem:[%s11652_s3 + $0x44] ss:$8 sps:$4 sm:$0xff]  }
 0x2cc   :  { %5214 = vmatprep.subr.bf16.mxu0 %v8655_v17  ;;  %5730 = vmatprep.subr.bf16.mxu1 %v8658_v18  ;;  %v8743_v17 = vld [vmem:[%s11652_s3 + $0x40] ss:$8 sps:$4 sm:$0xff]   ;;  %v8748_v18 = vld [vmem:[%s11652_s3 + $0x54] ss:$8 sps:$4 sm:$0xff]  }
 0x2cf   :  { %5215 = vmatpush1.bf16.msra.mxu0 %v8653_v19  ;;  %5731 = vmatpush1.bf16.msra.mxu1 %v8656_v20  ;;  %v8746_v19 = vld [vmem:[%s11652_s3 + $0x50] ss:$8 sps:$4 sm:$0xff]   ;;  %v8751_v20 = vld [vmem:[%s11652_s3 + $0x64] ss:$8 sps:$4 sm:$0xff]  }
 0x2d0   :  { %5216 = vmatprep.subr.bf16.mxu0 %v8661_v21  ;;  %5732 = vmatprep.subr.bf16.mxu1 %v8664_v22  ;;  %v8749_v21 = vld [vmem:[%s11652_s3 + $0x60] ss:$8 sps:$4 sm:$0xff]   ;;  %v8754_v22 = vld [vmem:[%s11652_s3 + $0x74] ss:$8 sps:$4 sm:$0xff]  }
 0x2d3   :  { %5217 = vmatpush1.bf16.msra.mxu0 %v8659_v23  ;;  %5733 = vmatpush1.bf16.msra.mxu1 %v8662_v24  ;;  %v8752_v23 = vld [vmem:[%s11652_s3 + $0x70] ss:$8 sps:$4 sm:$0xff]   ;;  %v8757_v24 = vld [vmem:[%s11652_s3 + $0x84] ss:$8 sps:$4 sm:$0xff]  }
 0x2d4   :  { %5218 = vmatprep.subr.bf16.mxu0 %v8667_v25  ;;  %5734 = vmatprep.subr.bf16.mxu1 %v8670_v26  ;;  %v8755_v25 = vld [vmem:[%s11652_s3 + $0x80] ss:$8 sps:$4 sm:$0xff]   ;;  %v8760_v26 = vld [vmem:[%s11652_s3 + $0x94] ss:$8 sps:$4 sm:$0xff]  }
 0x2d7   :  { %5219 = vmatpush1.bf16.msra.mxu0 %v8665_v27  ;;  %5735 = vmatpush1.bf16.msra.mxu1 %v8668_v28  ;;  %v8758_v27 = vld [vmem:[%s11652_s3 + $0x90] ss:$8 sps:$4 sm:$0xff]   ;;  %v8763_v28 = vld [vmem:[%s11652_s3 + $0xa4] ss:$8 sps:$4 sm:$0xff]  }
 0x2d8   :  { %5220 = vmatprep.subr.bf16.mxu0 %v8673_v29  ;;  %5736 = vmatprep.subr.bf16.mxu1 %v8676_v30  ;;  %v8761_v29 = vld [vmem:[%s11652_s3 + $0xa0] ss:$8 sps:$4 sm:$0xff]   ;;  %v8766_v30 = vld [vmem:[%s11652_s3 + $0xb4] ss:$8 sps:$4 sm:$0xff]  }
 0x2db   :  { %5221 = vmatpush1.bf16.msra.mxu0 %v8671_v31  ;;  %5737 = vmatpush1.bf16.msra.mxu1 %v8674_v32  ;;  %v8764_v31 = vld [vmem:[%s11652_s3 + $0xb0] ss:$8 sps:$4 sm:$0xff]   ;;  %v8769_v32 = vld [vmem:[%s11652_s3 + $0xc4] ss:$8 sps:$4 sm:$0xff]  }
 0x2dc   :  { %5222 = vmatprep.subr.bf16.mxu0 %v8679_v33  ;;  %5738 = vmatprep.subr.bf16.mxu1 %v8682_v34  ;;  %v8767_v33 = vld [vmem:[%s11652_s3 + $0xc0] ss:$8 sps:$4 sm:$0xff]   ;;  %v8772_v34 = vld [vmem:[%s11652_s3 + $0xd4] ss:$8 sps:$4 sm:$0xff]  }
 0x2df   :  { %5223 = vmatpush1.bf16.msra.mxu0 %v8677_v35  ;;  %5739 = vmatpush1.bf16.msra.mxu1 %v8680_v36  ;;  %v8770_v35 = vld [vmem:[%s11652_s3 + $0xd0] ss:$8 sps:$4 sm:$0xff]   ;;  %v8775_v36 = vld [vmem:[%s11652_s3 + $0xe4] ss:$8 sps:$4 sm:$0xff]  }
 0x2e0   :  { %5224 = vmatprep.subr.bf16.mxu0 %v8685_v37  ;;  %5740 = vmatprep.subr.bf16.mxu1 %v8688_v38  ;;  %v8773_v37 = vld [vmem:[%s11652_s3 + $0xe0] ss:$8 sps:$4 sm:$0xff]   ;;  %v8778_v38 = vld [vmem:[%s11652_s3 + $0xf4] ss:$8 sps:$4 sm:$0xff]  }
 0x2e3   :  { %5225 = vmatpush1.bf16.msra.mxu0 %v8683_v39  ;;  %5741 = vmatpush1.bf16.msra.mxu1 %v8686_v40  ;;  %v8776_v39 = vld [vmem:[%s11652_s3 + $0xf0] ss:$8 sps:$4 sm:$0xff]   ;;  %v8781_v40 = vld [vmem:[%s11652_s3 + $0x104] ss:$8 sps:$4 sm:$0xff]  }
 0x2e4   :  { %5226 = vmatprep.subr.bf16.mxu0 %v8691_v41  ;;  %5742 = vmatprep.subr.bf16.mxu1 %v8694_v42  ;;  %v8827_v41 = vld [vmem:[%s11653_s5 + $0x40] sm:$0xff]  }
 0x2e5   :  { %v8828_v42 = vld [vmem:[%s11653_s5] sm:$0xff]  }
 0x2e7   :  { %5227 = vmatpush1.bf16.msra.mxu0 %v8689_v43  ;;  %5743 = vmatpush1.bf16.msra.mxu1 %v8692_v44  ;;  %v8829_v43 = vld [vmem:[%s11653_s5 + $0x48] sm:$0xff]  }
 0x2e8   :  { %5228 = vmatprep.subr.bf16.mxu0 %v8697_v45  ;;  %5744 = vmatprep.subr.bf16.mxu1 %v8700_v46  ;;  %v8830_v44 = vld [vmem:[%s11653_s5 + $0x8] sm:$0xff]   ;;  %v8831_v45 = vld [vmem:[%s11653_s5 + $0x50] sm:$0xff]  }
 0x2e9   :  { %v8832_v46 = vld [vmem:[%s11653_s5 + $0x10] sm:$0xff]  }
 0x2eb   :  { %5229 = vmatpush1.bf16.msra.mxu0 %v8695_v47  ;;  %5745 = vmatpush1.bf16.msra.mxu1 %v8698_v48  ;;  %v8833_v47 = vld [vmem:[%s11653_s5 + $0x58] sm:$0xff]  }
 0x2ec   :  { %5230 = vmatprep.subr.bf16.mxu0 %v8703_v49  ;;  %5746 = vmatprep.subr.bf16.mxu1 %v8706_v50  ;;  %v8834_v48 = vld [vmem:[%s11653_s5 + $0x18] sm:$0xff]   ;;  %v8835_v49 = vld [vmem:[%s11653_s5 + $0x60] sm:$0xff]  }
 0x2ed   :  { %v8836_v50 = vld [vmem:[%s11653_s5 + $0x20] sm:$0xff]  }
 0x2ef   :  { %5231 = vmatpush1.bf16.msra.mxu0 %v8701_v51  ;;  %5747 = vmatpush1.bf16.msra.mxu1 %v8704_v52  ;;  %v8837_v51 = vld [vmem:[%s11653_s5 + $0x68] sm:$0xff]   ;;  %v875_v52 = vlaneseq }
 0x2f0   :  { %5232 = vmatprep.subr.bf16.mxu0 %v8709_v53  ;;  %5748 = vmatprep.subr.bf16.mxu1 %v8712_v54 }
 0x2f1   :  { %v11483_v53 = vshrl.u32 %v875_v52, 7  ;;  %v8820_v52 = vld [vmem:[%s11652_s3 + $0x1d4] ss:$8 sps:$4 sm:$0xff]  }
 0x2f3   :  { %5233 = vmatpush1.bf16.msra.mxu0 %v8707_v55  ;;  %5749 = vmatpush1.bf16.msra.mxu1 %v8710_v56  ;;  %v877_v54 = vsub.s32 0, %v11483_v53  ;;  %v885_v55 = vsub.s32 2, %v11483_v53  ;;  %v873_v56 = vld [vmem:[%s11654_s2] sm:$0xf] }
 0x2f4   :  { %5234 = vmatprep.subr.bf16.mxu0 %v8715_v57  ;;  %5750 = vmatprep.subr.bf16.mxu1 %v8718_v58  ;;  %v881_v57 = vsub.s32 1, %v11483_v53  ;;  %v889_v58 = vsub.s32 3, %v11483_v53  ;;  %v8844_v53 = vld [vmem:[%s11655_s7 + $0x8] sm:$0xff]  }
 0x2f7   :  { %5235 = vmatpush1.bf16.msra.mxu0 %v8713_v59  ;;  %5751 = vmatpush1.bf16.msra.mxu1 %v8716_v60  ;;  %v878_v59 = vrot.slane %v873_v56, %v877_v54  ;;  %v886_v60 = vrot.slane %v873_v56, %v885_v55  ;;  %v8818_v55 = vld [vmem:[%s11652_s3 + $0x1d0] ss:$8 sps:$4 sm:$0xff]  }
 0x2f8   :  { %5236 = vmatprep.subr.bf16.mxu0 %v8721_v61  ;;  %5752 = vmatprep.subr.bf16.mxu1 %v8724_v62  ;;  %v882_v61 = vrot.slane %v873_v56, %v881_v57  ;;  %v890_v62 = vrot.slane %v873_v56, %v889_v58  ;;  %v8823_v56 = vld [vmem:[%s11652_s3 + $0x1e4] ss:$8 sps:$4 sm:$0xff]   ;;  %v8821_v58 = vld [vmem:[%s11652_s3 + $0x1e0] ss:$8 sps:$4 sm:$0xff]  }
 0x2fb   :  { %5237 = vmatpush1.bf16.msra.mxu0 %v8719_v63  ;;  %5753 = vmatpush1.bf16.msra.mxu1 %v8722_v0 }
 0x2fc   :  { %5238 = vmatprep.subr.bf16.mxu0 %v8727_v1  ;;  %5754 = vmatprep.subr.bf16.mxu1 %v8730_v2 }
 0x2ff   :  { %5239 = vmatpush1.bf16.msra.mxu0 %v8725_v3  ;;  %5755 = vmatpush1.bf16.msra.mxu1 %v8728_v4 }
 0x300   :  { %6175 = vmatprep.subr.bf16.mxu0 %v8733_v7  ;;  %7422 = vmatprep.subr.bf16.mxu1 %v8827_v41  ;;  %v8800_v41 = vld [vmem:[%s11652_s3 + $0x170] ss:$8 sps:$4 sm:$0xff]  }
 0x302   :  { %5241 = vmatmul.mubr.bf16.vlgmr.msra.gmra.mrb[0].mxu0 %v103_v8  ;;  %5757 = vmatmul.mubr.bf16.vlgmr.msra.gmra.mrb[0].mxu1 %v103_v8 }
 0x303   :  { %6176 = vmatpush1.bf16.msra.mxu0 %v8731_v9  ;;  %7423 = vmatpush3.bf16.msra.mxu1 %v8828_v42  ;;  %v8805_v42 = vld [vmem:[%s11652_s3 + $0x184] ss:$8 sps:$4 sm:$0xff]  }
 0x304   :  { %6177 = vmatprep.subr.bf16.mxu0 %v8736_v10  ;;  %7424 = vmatprep.subr.bf16.mxu1 %v8829_v43  ;;  %v8803_v43 = vld [vmem:[%s11652_s3 + $0x180] ss:$8 sps:$4 sm:$0xff]  }
 0x307   :  { %6178 = vmatpush1.bf16.msra.mxu0 %v8734_v11  ;;  %7425 = vmatpush3.bf16.msra.mxu1 %v8830_v44  ;;  %v8808_v44 = vld [vmem:[%s11652_s3 + $0x194] ss:$8 sps:$4 sm:$0xff]  }
 0x308   :  { %6179 = vmatprep.subr.bf16.mxu0 %v8739_v12  ;;  %7426 = vmatprep.subr.bf16.mxu1 %v8831_v45  ;;  %v8806_v45 = vld [vmem:[%s11652_s3 + $0x190] ss:$8 sps:$4 sm:$0xff]  }
 0x30b   :  { %6180 = vmatpush1.bf16.msra.mxu0 %v8737_v13  ;;  %7427 = vmatpush3.bf16.msra.mxu1 %v8832_v46  ;;  %v8811_v46 = vld [vmem:[%s11652_s3 + $0x1a4] ss:$8 sps:$4 sm:$0xff]  }
 0x30c   :  { %6181 = vmatprep.subr.bf16.mxu0 %v8742_v14  ;;  %7428 = vmatprep.subr.bf16.mxu1 %v8833_v47  ;;  %v8809_v47 = vld [vmem:[%s11652_s3 + $0x1a0] ss:$8 sps:$4 sm:$0xff]  }
 0x30f   :  { %6182 = vmatpush1.bf16.msra.mxu0 %v8740_v15  ;;  %7429 = vmatpush3.bf16.msra.mxu1 %v8834_v48  ;;  %v8814_v48 = vld [vmem:[%s11652_s3 + $0x1b4] ss:$8 sps:$4 sm:$0xff]  }
 0x310   :  { %6183 = vmatprep.subr.bf16.mxu0 %v8745_v16  ;;  %7430 = vmatprep.subr.bf16.mxu1 %v8835_v49  ;;  %v8812_v49 = vld [vmem:[%s11652_s3 + $0x1b0] ss:$8 sps:$4 sm:$0xff]  }
 0x313   :  { %6184 = vmatpush1.bf16.msra.mxu0 %v8743_v17  ;;  %7431 = vmatpush3.bf16.msra.mxu1 %v8836_v50  ;;  %v8817_v50 = vld [vmem:[%s11652_s3 + $0x1c4] ss:$8 sps:$4 sm:$0xff]  }
 0x314   :  { %6185 = vmatprep.subr.bf16.mxu0 %v8748_v18  ;;  %7432 = vmatprep.subr.bf16.mxu1 %v8837_v51  ;;  %v8815_v51 = vld [vmem:[%s11652_s3 + $0x1c0] ss:$8 sps:$4 sm:$0xff]  }
 0x317   :  { %6186 = vmatpush1.bf16.msra.mxu0 %v8746_v19 }
 0x318   :  { %6187 = vmatprep.subr.bf16.mxu0 %v8751_v20 }
 0x31b   :  { %6188 = vmatpush1.bf16.msra.mxu0 %v8749_v21 }
 0x31c   :  { %6189 = vmatprep.subr.bf16.mxu0 %v8754_v22 }
 0x31f   :  { %6190 = vmatpush1.bf16.msra.mxu0 %v8752_v23 }
 0x320   :  { %6191 = vmatprep.subr.bf16.mxu0 %v8757_v24 }
 0x323   :  { %6192 = vmatpush1.bf16.msra.mxu0 %v8755_v25 }
 0x324   :  { %6193 = vmatprep.subr.bf16.mxu0 %v8760_v26 }
 0x327   :  { %6194 = vmatpush1.bf16.msra.mxu0 %v8758_v27  ;;  %v8779_v27 = vld [vmem:[%s11652_s3 + $0x100] ss:$8 sps:$4 sm:$0xff]  }
 0x328   :  { %6195 = vmatprep.subr.bf16.mxu0 %v8763_v28  ;;  %v8784_v28 = vld [vmem:[%s11652_s3 + $0x114] ss:$8 sps:$4 sm:$0xff]  }
 0x32b   :  { %6196 = vmatpush1.bf16.msra.mxu0 %v8761_v29  ;;  %v8782_v29 = vld [vmem:[%s11652_s3 + $0x110] ss:$8 sps:$4 sm:$0xff]  }
 0x32c   :  { %6197 = vmatprep.subr.bf16.mxu0 %v8766_v30  ;;  %v8787_v30 = vld [vmem:[%s11652_s3 + $0x124] ss:$8 sps:$4 sm:$0xff]  }
 0x32f   :  { %6198 = vmatpush1.bf16.msra.mxu0 %v8764_v31  ;;  %v8785_v31 = vld [vmem:[%s11652_s3 + $0x120] ss:$8 sps:$4 sm:$0xff]  }
 0x330   :  { %6199 = vmatprep.subr.bf16.mxu0 %v8769_v32  ;;  %v8790_v32 = vld [vmem:[%s11652_s3 + $0x134] ss:$8 sps:$4 sm:$0xff]  }
 0x333   :  { %6200 = vmatpush1.bf16.msra.mxu0 %v8767_v33  ;;  %v8788_v33 = vld [vmem:[%s11652_s3 + $0x130] ss:$8 sps:$4 sm:$0xff]  }
 0x334   :  { %6201 = vmatprep.subr.bf16.mxu0 %v8772_v34  ;;  %v8793_v34 = vld [vmem:[%s11652_s3 + $0x144] ss:$8 sps:$4 sm:$0xff]  }
 0x337   :  { %6202 = vmatpush1.bf16.msra.mxu0 %v8770_v35  ;;  %v8791_v35 = vld [vmem:[%s11652_s3 + $0x140] ss:$8 sps:$4 sm:$0xff]  }
 0x338   :  { %6203 = vmatprep.subr.bf16.mxu0 %v8775_v36  ;;  %v8796_v36 = vld [vmem:[%s11652_s3 + $0x154] ss:$8 sps:$4 sm:$0xff]  }
 0x33b   :  { %6204 = vmatpush1.bf16.msra.mxu0 %v8773_v37  ;;  %v8794_v37 = vld [vmem:[%s11652_s3 + $0x150] ss:$8 sps:$4 sm:$0xff]  }
 0x33c   :  { %6205 = vmatprep.subr.bf16.mxu0 %v8778_v38  ;;  %v8799_v38 = vld [vmem:[%s11652_s3 + $0x164] ss:$8 sps:$4 sm:$0xff]  }
 0x33f   :  { %6206 = vmatpush1.bf16.msra.mxu0 %v8776_v39  ;;  %v8797_v39 = vld [vmem:[%s11652_s3 + $0x160] ss:$8 sps:$4 sm:$0xff]  }
 0x340   :  { %6218 = vmatprep.subr.bf16.mxu0 %v8781_v40  ;;  %v8802_v40 = vld [vmem:[%s11652_s3 + $0x174] ss:$8 sps:$4 sm:$0xff]  }
 0x3d5   :  { %v5242_v63 = vpop.f32.mrb[0].mxu0  ;;  %v5758_v0 = vpop.f32.mrb[0].mxu1 }
 0x3d6   :  { %v7473_v1 = vadd.f32 %v5242_v63, %v878_v59  ;;  %v7477_v2 = vadd.f32 %v5758_v0, %v886_v60  ;;  %v5244_v3 = vpop.f32.mrb[1].mxu0  ;;  %v5760_v4 = vpop.f32.mrb[1].mxu1  ;;  %v8840_v63 = vld [vmem:[%s11653_s5 + $0x30] sm:$0xff]   ;;  %v8841_v0 = vld [vmem:[%s11653_s5 + $0x78] sm:$0xff]  }
 0x3d7   :  { %v7474_v5 = vadd.f32 %v5244_v3, %v882_v61  ;;  %v7478_v6 = vadd.f32 %v5760_v4, %v890_v62  ;;  %v5246_v7 = vpop.f32.mrb[2].mxu0  ;;  %v5762_v8 = vpop.f32.mrb[2].mxu1  ;;  %v5843_v3 = vld [vmem:[%s11656_s4] sm:$0x3] }
 0x3d8   :  { %v7475_v9 = vadd.f32 %v5246_v7, %v878_v59  ;;  %v7479_v10 = vadd.f32 %v5762_v8, %v886_v60  ;;  %v5248_v11 = vpop.f32.mrb[3].mxu0  ;;  %v5764_v12 = vpop.f32.mrb[3].mxu1  ;;  %v5767_v15 = vmax.f32 %v7473_v1, 0.0  ;;  %v5769_v16 = vmax.f32 %v7477_v2, 0.0  ;;  %v8826_v59 = vld [vmem:[%s11652_s3 + $0x1f4] ss:$8 sps:$4 sm:$0xff]  }
 0x3d9   :  { %v7476_v13 = vadd.f32 %v5248_v11, %v882_v61  ;;  %v7480_v14 = vadd.f32 %v5764_v12, %v890_v62  ;;  %v5768_v19 = vmax.f32 %v7474_v5, 0.0  ;;  %v5770_v20 = vmax.f32 %v7478_v6, 0.0  ;;  %v8824_v60 = vld [vmem:[%s11652_s3 + $0x1f0] ss:$8 sps:$4 sm:$0xff]   ;;  %v8838_v61 = vld [vmem:[%s11653_s5 + $0x28] sm:$0xff]  }
 0x3da   :  { %v5771_v17 = vmax.f32 %v7475_v9, 0.0  ;;  %v5773_v18 = vmax.f32 %v7479_v10, 0.0  ;;  %7433 = vmatpush3.bf16.msra.mxu1 %v8838_v61  ;;  %v8839_v62 = vld [vmem:[%s11653_s5 + $0x70] sm:$0xff]   ;;  %v8842_v1 = vld [vmem:[%s11653_s5 + $0x38] sm:$0xff]   ;;  %v8851_v2 = vmov 0.0   ;;  %v5848_v4 = vrot.slane %v5843_v3, %v877_v54  ;;  %v8843_v54 = vld [vmem:[%s11655_s7] sm:$0xff]  }
 0x3db   :  { %v5772_v21 = vmax.f32 %v7476_v13, 0.0  ;;  %v5774_v22 = vmax.f32 %v7480_v14, 0.0  ;;  %7434 = vmatprep.subr.bf16.mxu1 %v8839_v62  ;;  %v5852_v5 = vrot.slane %v5843_v3, %v881_v57  ;;  %v8845_v57 = vld [vmem:[%s11655_s7 + $0x10] sm:$0xff]  }
 0x3dc   :  { %v5775_v23 = vpack.c.bf16 %v5771_v17, %v5767_v15  ;;  %v11496_v24 = vpack.c.bf16 %v5773_v18, %v5769_v16 }
 0x3dd   :  { %v5776_v25 = vpack.c.bf16 %v5772_v21, %v5768_v19  ;;  %v5778_v26 = vpack.c.bf16 %v5774_v22, %v5770_v20  ;;  %v8846_v20 = vld [vmem:[%s11655_s7 + $0x18] sm:$0xff]   ;;  %v8847_v21 = vld [vmem:[%s11655_s7 + $0x20] sm:$0xff]   ;;  %v8848_v22 = vld [vmem:[%s11655_s7 + $0x28] sm:$0xff]  }
 0x3de   :  { %7435 = vmatpush3.bf16.msra.mxu1 %v8840_v63 }
 0x3df   :  { %6207 = vmatprep.mubr.bf16.mxu0 %v5776_v25  ;;  %7436 = vmatprep.subr.bf16.mxu1 %v8841_v0 }
 0x3e0   :  { %6208 = vmatmul.mubr.bf16.vlgmr.msra.gmra.mrb[4].mxu0 %v5775_v23  ;;  %v8849_v23 = vld [vmem:[%s11655_s7 + $0x30] sm:$0xff]  }
 0x3e1   :  { %6219 = vmatpush1.bf16.msra.mxu0 %v8779_v27  ;;  %6250 = vmatprep.mubr.bf16.mxu0 %v5778_v26  ;;  %v7396_v26 = vld [vmem:[%s11657_s6] ss:$0 sm:$0xff] }
 0x3e2   :  { %6220 = vmatprep.subr.bf16.mxu0 %v8784_v28  ;;  %7437 = vmatpush3.bf16.msra.mxu1 %v8842_v1 }
 0x3e3   :  { %7453 = vmatprep.subr.bf16.mxu1 %v8851_v2 }
 0x3e5   :  { %6221 = vmatpush1.bf16.msra.mxu0 %v8782_v29 }
 0x3e6   :  { %6222 = vmatprep.subr.bf16.mxu0 %v8787_v30 }
 0x3e9   :  { %6223 = vmatpush1.bf16.msra.mxu0 %v8785_v31 }
 0x3ea   :  { %6224 = vmatprep.subr.bf16.mxu0 %v8790_v32 }
 0x3ed   :  { %6225 = vmatpush1.bf16.msra.mxu0 %v8788_v33 }
 0x3ee   :  { %6226 = vmatprep.subr.bf16.mxu0 %v8793_v34 }
 0x3f1   :  { %6227 = vmatpush1.bf16.msra.mxu0 %v8791_v35 }
 0x3f2   :  { %6228 = vmatprep.subr.bf16.mxu0 %v8796_v36 }
 0x3f5   :  { %6229 = vmatpush1.bf16.msra.mxu0 %v8794_v37  ;;  %v7413_v37 = vld [vmem:[%s11658_s8] ss:$0 sm:$0xff] }
 0x3f6   :  { %6230 = vmatprep.subr.bf16.mxu0 %v8799_v38 }
 0x3f9   :  { %6231 = vmatpush1.bf16.msra.mxu0 %v8797_v39 }
 0x3fa   :  { %6232 = vmatprep.subr.bf16.mxu0 %v8802_v40 }
 0x3fd   :  { %6233 = vmatpush1.bf16.msra.mxu0 %v8800_v41 }
 0x3fe   :  { %6234 = vmatprep.subr.bf16.mxu0 %v8805_v42 }
 0x401   :  { %6235 = vmatpush1.bf16.msra.mxu0 %v8803_v43 }
 0x402   :  { %6236 = vmatprep.subr.bf16.mxu0 %v8808_v44 }
 0x405   :  { %6237 = vmatpush1.bf16.msra.mxu0 %v8806_v45 }
 0x406   :  { %6238 = vmatprep.subr.bf16.mxu0 %v8811_v46 }
 0x409   :  { %6239 = vmatpush1.bf16.msra.mxu0 %v8809_v47 }
 0x40a   :  { %6240 = vmatprep.subr.bf16.mxu0 %v8814_v48 }
 0x40d   :  { %6241 = vmatpush1.bf16.msra.mxu0 %v8812_v49 }
 0x40e   :  { %6242 = vmatprep.subr.bf16.mxu0 %v8817_v50 }
 0x411   :  { %6243 = vmatpush1.bf16.msra.mxu0 %v8815_v51 }
 0x412   :  { %6244 = vmatprep.subr.bf16.mxu0 %v8820_v52 }
 0x415   :  { %6245 = vmatpush1.bf16.msra.mxu0 %v8818_v55 }
 0x416   :  { %6246 = vmatprep.subr.bf16.mxu0 %v8823_v56 }
 0x419   :  { %6247 = vmatpush1.bf16.msra.mxu0 %v8821_v58 }
 0x41a   :  { %6248 = vmatprep.subr.bf16.mxu0 %v8826_v59 }
 0x41d   :  { %6249 = vmatpush1.bf16.msra.mxu0 %v8824_v60 }
 0x420   :  { %6251 = vmatmul.mubr.bf16.vlgmr.msra.gmra.mrb[4].mxu0 %v11496_v24  ;;  %v8850_v24 = vld [vmem:[%s11655_s7 + $0x38] sm:$0xff]  }
 0x4f3   :  { %v6252_v6 = vpop.f32.mrb[4].mxu0 }
 0x4f4   :  { %v7481_v7 = vadd.f32 %v6252_v6, %v5848_v4  ;;  %v6254_v8 = vpop.f32.mrb[5].mxu0 }
 0x4f5   :  { %v7482_v9 = vadd.f32 %v6254_v8, %v5852_v5  ;;  %v6256_v10 = vpop.f32.mrb[6].mxu0 }
 0x4f6   :  { %v7483_v11 = vadd.f32 %v6256_v10, %v5848_v4  ;;  %v6258_v12 = vpop.f32.mrb[7].mxu0  ;;  %v6261_v14 = vmax.f32 %v7481_v7, 0.0 }
 0x4f7   :  { %v7484_v13 = vadd.f32 %v6258_v12, %v5852_v5  ;;  %v6262_v16 = vmax.f32 %v7482_v9, 0.0 }
 0x4f8   :  { %v6263_v15 = vmax.f32 %v7483_v11, 0.0 }
 0x4f9   :  { %v6264_v17 = vmax.f32 %v7484_v13, 0.0 }
 0x4fa   :  { %v6265_v18 = vpack.c.bf16 %v6263_v15, %v6261_v14 }
 0x4fb   :  { %v6266_v19 = vpack.c.bf16 %v6264_v17, %v6262_v16 }
 0x4fd   :  { %6434 = vmatprep.mubr.bf16.mxu1 %v6266_v19 }
 0x4fe   :  { %6435 = vmatmul.mubr.bf16.vlgmr.msra.gmra.mrb[4].mxu1 %v6265_v18 }
 0x4ff   :  { %7454 = vmatpush3.bf16.msra.mxu1 %v8843_v54  ;;  %7469 = vmatprep.mubr.msk.bf16.mxu1 %vm8852_vm0, %v8851_v2 }
 0x500   :  { %7455 = vmatprep.subr.bf16.mxu1 %v8851_v2 }
 0x503   :  { %7456 = vmatpush3.bf16.msra.mxu1 %v8844_v53 }
 0x504   :  { %7457 = vmatprep.subr.bf16.mxu1 %v8851_v2 }
 0x507   :  { %7458 = vmatpush3.bf16.msra.mxu1 %v8845_v57 }
 0x508   :  { %7459 = vmatprep.subr.bf16.mxu1 %v8851_v2 }
 0x50b   :  { %7460 = vmatpush3.bf16.msra.mxu1 %v8846_v20 }
 0x50c   :  { %7461 = vmatprep.subr.bf16.mxu1 %v8851_v2 }
 0x50f   :  { %7462 = vmatpush3.bf16.msra.mxu1 %v8847_v21 }
 0x510   :  { %7463 = vmatprep.subr.bf16.mxu1 %v8851_v2 }
 0x513   :  { %7464 = vmatpush3.bf16.msra.mxu1 %v8848_v22 }
 0x514   :  { %7465 = vmatprep.subr.bf16.mxu1 %v8851_v2 }
 0x517   :  { %7466 = vmatpush3.bf16.msra.mxu1 %v8849_v23 }
 0x518   :  { %7467 = vmatprep.subr.bf16.mxu1 %v8851_v2 }
 0x51b   :  { %7468 = vmatpush3.bf16.msra.mxu1 %v8850_v24 }
 0x5d1   :  { %v7438_v25 = vpop.f32.mrb[4].mxu1 }
 0x5d2   :  { %v7439_v27 = vpop.f32.mrb[5].mxu1 }
 0x5d3   :  { %v7440_v28 = vadd.f32 %v7439_v27, %v7438_v25  ;;  %v7441_v29 = vpop.f32.mrb[6].mxu1 }
 0x5d4   :  { %v7442_v30 = vpop.f32.mrb[7].mxu1 }
 0x5d5   :  { %v6437_v31 = vadd.f32 %v7440_v28, %v7396_v26  ;;  %v7443_v32 = vadd.f32 %v7442_v30, %v7441_v29 }
 0x5d7   :  { %v6440_v33 = vadd.f32 %v7443_v32, %v7396_v26  ;;  %v6443_v34 = vmax.f32 %v6437_v31, 0.0 }
 0x5d9   :  { %v6444_v35 = vmax.f32 %v6440_v33, 0.0 }
 0x5db   :  { %v6445_v36 = vpack.c.bf16 %v6444_v35, %v6443_v34 }
 0x5dd   :  { %7470 = vmatmul.mubr.bf16.vlgmr.msra.gmra.mrb[8].mxu1 %v6445_v36 }
 0x6b0   :  { %v6551_v38 = vpop.f32.mrb[8].mxu1 }
 0x6b1   :  { %v6552_v39 = vadd.f32 %v7413_v37, %v6551_v38  ;;  %v7471_v40 = vpop.f32.mrb[9].mxu1 }
 0x6b2   :  { %v6554_v41 = vpop.f32.mrb[10].mxu1 }
 0x6b3   :  { %6558 = vst [vmem:[%s11659_s9] sm:$0xff] %v6552_v39  ;;  %v6555_v42 = vadd.f32 %v7413_v37, %v6554_v41  ;;  %v7472_v43 = vpop.f32.mrb[11].mxu1 }
 0x6b5   :  { %6559 = vst [vmem:[%s11659_s9 + $0x8] sm:$0xff] %v6555_v42 }

</bundles_post_ra>
